<compile_context>
chip_gen: v5e
topology: v5e:2x2
jax: 0.10.0
libtpu: 0.0.40
codegen_flags: <defaults>
</compile_context>

<pallas_src>
import jax
import jax.numpy as jnp
import numpy as np
from jax import lax
from jax.experimental import pallas as pl
from jax.experimental.pallas import tpu as pltpu

LN_EPS = 1e-5
NEG_INF = -1e30   # large finite negative: avoids NaN if a row were fully masked


def _make_block_kernel(num_heads: int, head_size: int):
    C = num_heads * head_size

    def kernel(x_ref, wqkv_ref, bqkv_ref, wp_ref, bp_ref,
               w1_ref, b1_ref, w2_ref, b2_ref, o_ref):
        TB, T, _ = x_ref.shape
        x = x_ref[...].reshape(TB * T, C)              # (M, C) f32, M = TB*T

        # ---- LayerNorm 1 (affine folded into wqkv/bqkv in the wrapper) ----
        mu = jnp.mean(x, axis=-1, keepdims=True)
        var = jnp.mean((x - mu) ** 2, axis=-1, keepdims=True)
        n1 = (x - mu) * lax.rsqrt(var + LN_EPS)

        # ---- fused QKV projection: one (M, C) x (C, 3C) bf16 matmul ----
        qkv = jnp.dot(n1.astype(jnp.bfloat16), wqkv_ref[...],
                      preferred_element_type=jnp.float32) + bqkv_ref[0]
        # softmax scale is pre-folded into the Q columns of wqkv
        q = qkv[:, :C].reshape(TB, T, C).astype(jnp.bfloat16)
        k = qkv[:, C:2 * C].reshape(TB, T, C).astype(jnp.bfloat16)
        v = qkv[:, 2 * C:].reshape(TB, T, C).astype(jnp.bfloat16)

        # causal mask (T, T), computed once per grid step
        row = lax.broadcasted_iota(jnp.int32, (T, T), 0)
        col = lax.broadcasted_iota(jnp.int32, (T, T), 1)
        causal = row >= col

        head_outs = []
        for hi in range(num_heads):
            s = hi * head_size
            qh = q[:, :, s:s + head_size]
            kh = k[:, :, s:s + head_size]
            vh = v[:, :, s:s + head_size]
            # 'btd,bsd->bts' — contract last dims, no kh.T materialized
            scores = lax.dot_general(
                qh, kh, (((2,), (2,)), ((0,), (0,))),
                preferred_element_type=jnp.float32)             # (TB, T, T)
            scores = jnp.where(causal, scores, NEG_INF)
            m = jnp.max(scores, axis=-1, keepdims=True)
            p = jnp.exp(scores - m)                             # f32
            inv_l = pl.reciprocal(jnp.sum(p, axis=-1, keepdims=True),
                                  approx=True)
            # 'bts,bsd->btd'; normalize after the matmul (fewer multiplies)
            oh = lax.dot_general(
                p.astype(jnp.bfloat16), vh, (((2,), (1,)), ((0,), (0,))),
                preferred_element_type=jnp.float32) * inv_l     # (TB, T, hs)
            # TODO(synk): attention-weight dropout skipped (inference / eval mode)
            head_outs.append(oh)
        att = jnp.concatenate(head_outs, axis=-1).reshape(TB * T, C)

        # ---- output projection + residual ----
        proj = jnp.dot(att.astype(jnp.bfloat16), wp_ref[...],
                       preferred_element_type=jnp.float32) + bp_ref[0]
        # TODO(synk): projection dropout skipped (inference / eval mode)
        x1 = x + proj                                           # (M, C) f32

        # ---- LayerNorm 2 (affine folded into w1/b1 in the wrapper) ----
        mu2 = jnp.mean(x1, axis=-1, keepdims=True)
        var2 = jnp.mean((x1 - mu2) ** 2, axis=-1, keepdims=True)
        n2 = (x1 - mu2) * lax.rsqrt(var2 + LN_EPS)

        # ---- FeedForward (Linear -> ReLU -> Linear) + residual ----
        ff = jnp.dot(n2.astype(jnp.bfloat16), w1_ref[...],
                     preferred_element_type=jnp.float32) + b1_ref[0]
        ff = jnp.maximum(ff, 0.0)
        ff = jnp.dot(ff.astype(jnp.bfloat16), w2_ref[...],
                     preferred_element_type=jnp.float32) + b2_ref[0]
        # TODO(synk): feed-forward dropout skipped (inference / eval mode)

        o_ref[...] = (x1 + ff).reshape(TB, T, C)

    return kernel


def block_forward(x, params, num_heads, *, batch_tile=2):
    B, T, C = x.shape
    head_size = C // num_heads
    hidden = 4 * C
    assert B % batch_tile == 0
    TB = batch_tile

    kernel = _make_block_kernel(num_heads, head_size)

    # --- wrapper-side weight preparation (all f32, then bf16 cast) ---
    scale = head_size ** (-0.5)
    # Fuse QKV, fold softmax scale into Wq columns.
    wqkv_f32 = jnp.concatenate(
        [params["wq"] * scale, params["wk"], params["wv"]], axis=1)  # (C, 3C)
    g1, be1 = params["g1"][0], params["be1"][0]
    bqkv = be1[None, :] @ wqkv_f32                       # (1, 3C) f32 bias
    wqkv = (g1[:, None] * wqkv_f32).astype(jnp.bfloat16)  # gamma folded, bf16

    g2, be2 = params["g2"][0], params["be2"][0]
    w1_f32 = params["w1"]
    b1 = params["b1"] + be2[None, :] @ w1_f32            # (1, hidden) f32
    w1 = (g2[:, None] * w1_f32).astype(jnp.bfloat16)

    wp = params["wp"].astype(jnp.bfloat16)
    w2 = params["w2"].astype(jnp.bfloat16)

    full2d = lambda shape: pl.BlockSpec(shape, lambda b: (0, 0))

    in_specs = [
        pl.BlockSpec((TB, T, C), lambda b: (b, 0, 0)),  # x
        full2d((C, 3 * C)),                             # Wqkv (bf16, g1/scale folded)
        full2d((1, 3 * C)),                             # bqkv (be1 folded)
        full2d((C, C)),                                 # Wproj (bf16)
        full2d((1, C)),                                 # bproj
        full2d((C, hidden)),                            # W1 (bf16, g2 folded)
        full2d((1, hidden)),                            # b1 (be2 folded)
        full2d((hidden, C)),                            # W2 (bf16)
        full2d((1, C)),                                 # b2
    ]

    # Advisory cost estimate for the whole call.
    flops = (2 * B * T * C * 3 * C            # QKV
             + 4 * B * T * T * C              # scores + p@V over all heads
             + 2 * B * T * C * C              # output projection
             + 4 * B * T * C * hidden)        # MLP (two GEMMs)
    transcendentals = B * num_heads * T * T + 4 * B * T
    bytes_accessed = (2 * B * T * C * 4
                      + (3 * C * C + C * C + 2 * C * hidden) * 2
                      + (3 * C + 2 * hidden + C) * 4)

    return pl.pallas_call(
        kernel,
        out_shape=jax.ShapeDtypeStruct((B, T, C), jnp.float32),
        grid_spec=pltpu.PrefetchScalarGridSpec(
            num_scalar_prefetch=0,
            grid=(B // TB,),
            in_specs=in_specs,
            out_specs=pl.BlockSpec((TB, T, C), lambda b: (b, 0, 0)),
        ),
        compiler_params=pltpu.CompilerParams(
            dimension_semantics=("parallel",)),
        cost_estimate=pl.CostEstimate(
            flops=flops, transcendentals=transcendentals,
            bytes_accessed=bytes_accessed),
    )(x, wqkv, bqkv, wp, params["bp"], w1, b1, w2, params["b2"])


def reference_block(x, params, num_heads):
    """Pure-JAX f32 reference of the PyTorch Block forward (eval mode)."""
    B, T, C = x.shape
    hs = C // num_heads

    def ln(z, g, b):
        mu = jnp.mean(z, axis=-1, keepdims=True)
        var = jnp.mean((z - mu) ** 2, axis=-1, keepdims=True)
        return (z - mu) / jnp.sqrt(var + LN_EPS) * g + b

    h = ln(x, params["g1"][0], params["be1"][0])
    q = h @ params["wq"]
    k = h @ params["wk"]
    v = h @ params["wv"]
    mask = jnp.tril(jnp.ones((T, T), dtype=bool))
    outs = []
    for hi in range(num_heads):
        s = hi * hs
        qh, kh, vh = q[..., s:s + hs], k[..., s:s + hs], v[..., s:s + hs]
        w = jnp.einsum("btd,bsd->bts", qh, kh) * hs ** (-0.5)
        w = jnp.where(mask, w, -jnp.inf)
        w = jax.nn.softmax(w, axis=-1)
        outs.append(jnp.einsum("bts,bsd->btd", w, vh))
    att = jnp.concatenate(outs, axis=-1)
    x1 = x + att @ params["wp"] + params["bp"][0]
    h2 = ln(x1, params["g2"][0], params["be2"][0])
    ff = jnp.maximum(h2 @ params["w1"] + params["b1"][0], 0.0) @ params["w2"] + params["b2"][0]
    return x1 + ff


def init_params(key, C, num_heads):
    hidden = 4 * C
    ks = jax.random.split(key, 12)
    scale = 0.02
    return {
        "wq": scale * jax.random.normal(ks[0], (C, C), jnp.float32),
        "wk": scale * jax.random.normal(ks[1], (C, C), jnp.float32),
        "wv": scale * jax.random.normal(ks[2], (C, C), jnp.float32),
        "wp": scale * jax.random.normal(ks[3], (C, C), jnp.float32),
        "bp": jnp.zeros((1, C), jnp.float32),
        "w1": scale * jax.random.normal(ks[4], (C, hidden), jnp.float32),
        "b1": 0.01 * jnp.ones((1, hidden), jnp.float32),
        "w2": scale * jax.random.normal(ks[5], (hidden, C), jnp.float32),
        "b2": 0.01 * jnp.ones((1, C), jnp.float32),
        # non-trivial LN affines so the weight-folding path is actually tested
        "g1": 1.0 + 0.1 * jax.random.normal(ks[6], (1, C), jnp.float32),
        "be1": 0.1 * jax.random.normal(ks[7], (1, C), jnp.float32),
        "g2": 1.0 + 0.1 * jax.random.normal(ks[8], (1, C), jnp.float32),
        "be2": 0.1 * jax.random.normal(ks[9], (1, C), jnp.float32),
    }


if __name__ == "__main__":
    # Small, module-consistent config: embedding C=128, num_heads=4
    # (head_size=32), seq T=64 <= block_size, batch B=4 (TB=2 per grid step).
    B, T, C, NUM_HEADS = 4, 64, 128, 4

    key = jax.random.PRNGKey(0)
    kx, kp = jax.random.split(key)
    x = jax.random.normal(kx, (B, T, C), jnp.float32)
    params = init_params(kp, C, NUM_HEADS)

    out = block_forward(x, params, NUM_HEADS, batch_tile=2)
    out = jax.block_until_ready(out)

    ref = jax.block_until_ready(reference_block(x, params, NUM_HEADS))
    # bf16 MXU operands + approx reciprocal => looser tolerance than pure f32.
    np.testing.assert_allclose(np.asarray(out), np.asarray(ref),
                               atol=2e-2, rtol=2e-2)

    print("KERNEL_OK")
</pallas_src>

<mosaic_0001>
module attributes {stable_mosaic.version = 11 : i64} {
  func.func @kernel(%arg0: i32, %arg1: memref<2x64x128xf32, #tpu.memory_space<vmem>>, %arg2: memref<128x384xbf16, #tpu.memory_space<vmem>>, %arg3: memref<1x384xf32, #tpu.memory_space<vmem>>, %arg4: memref<128x128xbf16, #tpu.memory_space<vmem>>, %arg5: memref<1x128xf32, #tpu.memory_space<vmem>>, %arg6: memref<128x512xbf16, #tpu.memory_space<vmem>>, %arg7: memref<1x512xf32, #tpu.memory_space<vmem>>, %arg8: memref<512x128xbf16, #tpu.memory_space<vmem>>, %arg9: memref<1x128xf32, #tpu.memory_space<vmem>>, %arg10: memref<2x64x128xf32, #tpu.memory_space<vmem>>) attributes {dimension_semantics = [#tpu.dimension_semantics<parallel>], iteration_bounds = array<i64: 2>, scalar_prefetch = 0 : i64, scratch_operands = 0 : i64, tpu.core_type = #tpu.core_type<tc>, window_params = [{transform_indices = @transform_0, window_bounds = array<i64: 2, 64, 128>}, {pipeline_mode = #tpu.pipeline_mode<synchronous>, transform_indices = @transform_1, window_bounds = array<i64: 128, 384>}, {pipeline_mode = #tpu.pipeline_mode<synchronous>, transform_indices = @transform_2, window_bounds = array<i64: 1, 384>}, {pipeline_mode = #tpu.pipeline_mode<synchronous>, transform_indices = @transform_3, window_bounds = array<i64: 128, 128>}, {pipeline_mode = #tpu.pipeline_mode<synchronous>, transform_indices = @transform_4, window_bounds = array<i64: 1, 128>}, {pipeline_mode = #tpu.pipeline_mode<synchronous>, transform_indices = @transform_5, window_bounds = array<i64: 128, 512>}, {pipeline_mode = #tpu.pipeline_mode<synchronous>, transform_indices = @transform_6, window_bounds = array<i64: 1, 512>}, {pipeline_mode = #tpu.pipeline_mode<synchronous>, transform_indices = @transform_7, window_bounds = array<i64: 512, 128>}, {pipeline_mode = #tpu.pipeline_mode<synchronous>, transform_indices = @transform_8, window_bounds = array<i64: 1, 128>}, {transform_indices = @transform_9, window_bounds = array<i64: 2, 64, 128>}]} {
    %c0 = arith.constant 0 : index
    %c0_0 = arith.constant 0 : index
    %c0_1 = arith.constant 0 : index
    %0 = vector.load %arg1[%c0, %c0_0, %c0_1] : memref<2x64x128xf32, #tpu.memory_space<vmem>>, vector<2x64x128xf32>
    %1 = vector.shape_cast %0 : vector<2x64x128xf32> to vector<128x128xf32>
    %cst = arith.constant dense<0.000000e+00> : vector<128xf32>
    %2 = vector.multi_reduction <add>, %1, %cst [1] : vector<128x128xf32> to vector<128xf32>
    %3 = vector.shape_cast %2 : vector<128xf32> to vector<128x1xf32>
    %cst_2 = arith.constant 1.280000e+02 : f32
    %4 = vector.broadcast %cst_2 : f32 to vector<128x1xf32>
    %5 = arith.divf %3, %4 : vector<128x1xf32>
    %6 = vector.broadcast %5 : vector<128x1xf32> to vector<128x128xf32>
    %7 = arith.subf %1, %6 : vector<128x128xf32>
    %8 = arith.mulf %7, %7 : vector<128x128xf32>
    %cst_3 = arith.constant dense<0.000000e+00> : vector<128xf32>
    %9 = vector.multi_reduction <add>, %8, %cst_3 [1] : vector<128x128xf32> to vector<128xf32>
    %10 = vector.shape_cast %9 : vector<128xf32> to vector<128x1xf32>
    %cst_4 = arith.constant 1.280000e+02 : f32
    %11 = vector.broadcast %cst_4 : f32 to vector<128x1xf32>
    %12 = arith.divf %10, %11 : vector<128x1xf32>
    %13 = vector.broadcast %5 : vector<128x1xf32> to vector<128x128xf32>
    %14 = arith.subf %1, %13 : vector<128x128xf32>
    %cst_5 = arith.constant 9.99999974E-6 : f32
    %15 = vector.broadcast %cst_5 : f32 to vector<128x1xf32>
    %16 = arith.addf %12, %15 : vector<128x1xf32>
    %17 = math.rsqrt %16 : vector<128x1xf32>
    %18 = vector.broadcast %17 : vector<128x1xf32> to vector<128x128xf32>
    %19 = arith.mulf %14, %18 : vector<128x128xf32>
    %20 = arith.truncf %19 : vector<128x128xf32> to vector<128x128xbf16>
    %c0_6 = arith.constant 0 : index
    %c0_7 = arith.constant 0 : index
    %21 = vector.load %arg2[%c0_6, %c0_7] : memref<128x384xbf16, #tpu.memory_space<vmem>>, vector<128x384xbf16>
    %cst_8 = arith.constant dense<0.000000e+00> : vector<128x384xf32>
    %22 = tpu.matmul %20, %21, %cst_8 {dimension_numbers = #tpu.dot_dimension_numbers<[1], [0], [0], [1], [0, 0, 1, 1], [], []>} : vector<128x128xbf16>, vector<128x384xbf16>, vector<128x384xf32> -> vector<128x384xf32>
    %c0_9 = arith.constant 0 : index
    %c0_10 = arith.constant 0 : index
    %23 = vector.load %arg3[%c0_9, %c0_10] : memref<1x384xf32, #tpu.memory_space<vmem>>, vector<1x384xf32>
    %24 = vector.shape_cast %23 : vector<1x384xf32> to vector<384xf32>
    %25 = vector.shape_cast %24 : vector<384xf32> to vector<1x384xf32>
    %26 = vector.broadcast %25 : vector<1x384xf32> to vector<128x384xf32>
    %27 = arith.addf %22, %26 : vector<128x384xf32>
    %28 = vector.extract_strided_slice %27 {offsets = [0, 0], sizes = [128, 128], strides = [1, 1]} : vector<128x384xf32> to vector<128x128xf32>
    %29 = vector.shape_cast %28 : vector<128x128xf32> to vector<2x64x128xf32>
    %30 = arith.truncf %29 : vector<2x64x128xf32> to vector<2x64x128xbf16>
    %31 = vector.extract_strided_slice %27 {offsets = [0, 128], sizes = [128, 128], strides = [1, 1]} : vector<128x384xf32> to vector<128x128xf32>
    %32 = vector.shape_cast %31 : vector<128x128xf32> to vector<2x64x128xf32>
    %33 = arith.truncf %32 : vector<2x64x128xf32> to vector<2x64x128xbf16>
    %34 = vector.extract_strided_slice %27 {offsets = [0, 256], sizes = [128, 128], strides = [1, 1]} : vector<128x384xf32> to vector<128x128xf32>
    %35 = vector.shape_cast %34 : vector<128x128xf32> to vector<2x64x128xf32>
    %36 = arith.truncf %35 : vector<2x64x128xf32> to vector<2x64x128xbf16>
    %37 = tpu.iota {dimensions = array<i32: 0>} : vector<64x64xi32>
    %38 = tpu.iota {dimensions = array<i32: 1>} : vector<64x64xi32>
    %39 = arith.cmpi sge, %37, %38 : vector<64x64xi32>
    %40 = vector.extract_strided_slice %30 {offsets = [0, 0, 0], sizes = [2, 64, 32], strides = [1, 1, 1]} : vector<2x64x128xbf16> to vector<2x64x32xbf16>
    %41 = vector.extract_strided_slice %33 {offsets = [0, 0, 0], sizes = [2, 64, 32], strides = [1, 1, 1]} : vector<2x64x128xbf16> to vector<2x64x32xbf16>
    %42 = vector.extract_strided_slice %36 {offsets = [0, 0, 0], sizes = [2, 64, 32], strides = [1, 1, 1]} : vector<2x64x128xbf16> to vector<2x64x32xbf16>
    %cst_11 = arith.constant dense<0.000000e+00> : vector<2x64x64xf32>
    %43 = tpu.matmul %40, %41, %cst_11 {dimension_numbers = #tpu.dot_dimension_numbers<[2], [2], [1], [1], [0, 0, 0, 1, 1, 1], [0], [0]>} : vector<2x64x32xbf16>, vector<2x64x32xbf16>, vector<2x64x64xf32> -> vector<2x64x64xf32>
    %cst_12 = arith.constant -1.000000e+30 : f32
    %44 = vector.shape_cast %39 : vector<64x64xi1> to vector<1x64x64xi1>
    %45 = vector.broadcast %44 : vector<1x64x64xi1> to vector<2x64x64xi1>
    %46 = vector.broadcast %cst_12 : f32 to vector<2x64x64xf32>
    %47 = arith.select %45, %43, %46 : vector<2x64x64xi1>, vector<2x64x64xf32>
    %cst_13 = arith.constant dense<0xFF800000> : vector<2x64xf32>
    %48 = vector.multi_reduction <maximumf>, %47, %cst_13 [2] : vector<2x64x64xf32> to vector<2x64xf32>
    %49 = vector.shape_cast %48 : vector<2x64xf32> to vector<2x64x1xf32>
    %50 = vector.broadcast %49 : vector<2x64x1xf32> to vector<2x64x64xf32>
    %51 = arith.subf %47, %50 : vector<2x64x64xf32>
    %52 = math.exp %51 : vector<2x64x64xf32>
    %cst_14 = arith.constant dense<0.000000e+00> : vector<2x64xf32>
    %53 = vector.multi_reduction <add>, %52, %cst_14 [2] : vector<2x64x64xf32> to vector<2x64xf32>
    %54 = vector.shape_cast %53 : vector<2x64xf32> to vector<2x64x1xf32>
    %55 = tpu.reciprocal %54 {approx = true} : vector<2x64x1xf32> -> vector<2x64x1xf32>
    %56 = arith.truncf %52 : vector<2x64x64xf32> to vector<2x64x64xbf16>
    %cst_15 = arith.constant dense<0.000000e+00> : vector<2x64x32xf32>
    %57 = tpu.matmul %56, %42, %cst_15 {dimension_numbers = #tpu.dot_dimension_numbers<[2], [1], [1], [2], [0, 0, 0, 1, 1, 2], [0], [0]>} : vector<2x64x64xbf16>, vector<2x64x32xbf16>, vector<2x64x32xf32> -> vector<2x64x32xf32>
    %58 = vector.broadcast %55 : vector<2x64x1xf32> to vector<2x64x32xf32>
    %59 = arith.mulf %57, %58 : vector<2x64x32xf32>
    %60 = vector.extract_strided_slice %30 {offsets = [0, 0, 32], sizes = [2, 64, 32], strides = [1, 1, 1]} : vector<2x64x128xbf16> to vector<2x64x32xbf16>
    %61 = vector.extract_strided_slice %33 {offsets = [0, 0, 32], sizes = [2, 64, 32], strides = [1, 1, 1]} : vector<2x64x128xbf16> to vector<2x64x32xbf16>
    %62 = vector.extract_strided_slice %36 {offsets = [0, 0, 32], sizes = [2, 64, 32], strides = [1, 1, 1]} : vector<2x64x128xbf16> to vector<2x64x32xbf16>
    %cst_16 = arith.constant dense<0.000000e+00> : vector<2x64x64xf32>
    %63 = tpu.matmul %60, %61, %cst_16 {dimension_numbers = #tpu.dot_dimension_numbers<[2], [2], [1], [1], [0, 0, 0, 1, 1, 1], [0], [0]>} : vector<2x64x32xbf16>, vector<2x64x32xbf16>, vector<2x64x64xf32> -> vector<2x64x64xf32>
    %cst_17 = arith.constant -1.000000e+30 : f32
    %64 = vector.shape_cast %39 : vector<64x64xi1> to vector<1x64x64xi1>
    %65 = vector.broadcast %64 : vector<1x64x64xi1> to vector<2x64x64xi1>
    %66 = vector.broadcast %cst_17 : f32 to vector<2x64x64xf32>
    %67 = arith.select %65, %63, %66 : vector<2x64x64xi1>, vector<2x64x64xf32>
    %cst_18 = arith.constant dense<0xFF800000> : vector<2x64xf32>
    %68 = vector.multi_reduction <maximumf>, %67, %cst_18 [2] : vector<2x64x64xf32> to vector<2x64xf32>
    %69 = vector.shape_cast %68 : vector<2x64xf32> to vector<2x64x1xf32>
    %70 = vector.broadcast %69 : vector<2x64x1xf32> to vector<2x64x64xf32>
    %71 = arith.subf %67, %70 : vector<2x64x64xf32>
    %72 = math.exp %71 : vector<2x64x64xf32>
    %cst_19 = arith.constant dense<0.000000e+00> : vector<2x64xf32>
    %73 = vector.multi_reduction <add>, %72, %cst_19 [2] : vector<2x64x64xf32> to vector<2x64xf32>
    %74 = vector.shape_cast %73 : vector<2x64xf32> to vector<2x64x1xf32>
    %75 = tpu.reciprocal %74 {approx = true} : vector<2x64x1xf32> -> vector<2x64x1xf32>
    %76 = arith.truncf %72 : vector<2x64x64xf32> to vector<2x64x64xbf16>
    %cst_20 = arith.constant dense<0.000000e+00> : vector<2x64x32xf32>
    %77 = tpu.matmul %76, %62, %cst_20 {dimension_numbers = #tpu.dot_dimension_numbers<[2], [1], [1], [2], [0, 0, 0, 1, 1, 2], [0], [0]>} : vector<2x64x64xbf16>, vector<2x64x32xbf16>, vector<2x64x32xf32> -> vector<2x64x32xf32>
    %78 = vector.broadcast %75 : vector<2x64x1xf32> to vector<2x64x32xf32>
    %79 = arith.mulf %77, %78 : vector<2x64x32xf32>
    %80 = vector.extract_strided_slice %30 {offsets = [0, 0, 64], sizes = [2, 64, 32], strides = [1, 1, 1]} : vector<2x64x128xbf16> to vector<2x64x32xbf16>
    %81 = vector.extract_strided_slice %33 {offsets = [0, 0, 64], sizes = [2, 64, 32], strides = [1, 1, 1]} : vector<2x64x128xbf16> to vector<2x64x32xbf16>
    %82 = vector.extract_strided_slice %36 {offsets = [0, 0, 64], sizes = [2, 64, 32], strides = [1, 1, 1]} : vector<2x64x128xbf16> to vector<2x64x32xbf16>
    %cst_21 = arith.constant dense<0.000000e+00> : vector<2x64x64xf32>
    %83 = tpu.matmul %80, %81, %cst_21 {dimension_numbers = #tpu.dot_dimension_numbers<[2], [2], [1], [1], [0, 0, 0, 1, 1, 1], [0], [0]>} : vector<2x64x32xbf16>, vector<2x64x32xbf16>, vector<2x64x64xf32> -> vector<2x64x64xf32>
    %cst_22 = arith.constant -1.000000e+30 : f32
    %84 = vector.shape_cast %39 : vector<64x64xi1> to vector<1x64x64xi1>
    %85 = vector.broadcast %84 : vector<1x64x64xi1> to vector<2x64x64xi1>
    %86 = vector.broadcast %cst_22 : f32 to vector<2x64x64xf32>
    %87 = arith.select %85, %83, %86 : vector<2x64x64xi1>, vector<2x64x64xf32>
    %cst_23 = arith.constant dense<0xFF800000> : vector<2x64xf32>
    %88 = vector.multi_reduction <maximumf>, %87, %cst_23 [2] : vector<2x64x64xf32> to vector<2x64xf32>
    %89 = vector.shape_cast %88 : vector<2x64xf32> to vector<2x64x1xf32>
    %90 = vector.broadcast %89 : vector<2x64x1xf32> to vector<2x64x64xf32>
    %91 = arith.subf %87, %90 : vector<2x64x64xf32>
    %92 = math.exp %91 : vector<2x64x64xf32>
    %cst_24 = arith.constant dense<0.000000e+00> : vector<2x64xf32>
    %93 = vector.multi_reduction <add>, %92, %cst_24 [2] : vector<2x64x64xf32> to vector<2x64xf32>
    %94 = vector.shape_cast %93 : vector<2x64xf32> to vector<2x64x1xf32>
    %95 = tpu.reciprocal %94 {approx = true} : vector<2x64x1xf32> -> vector<2x64x1xf32>
    %96 = arith.truncf %92 : vector<2x64x64xf32> to vector<2x64x64xbf16>
    %cst_25 = arith.constant dense<0.000000e+00> : vector<2x64x32xf32>
    %97 = tpu.matmul %96, %82, %cst_25 {dimension_numbers = #tpu.dot_dimension_numbers<[2], [1], [1], [2], [0, 0, 0, 1, 1, 2], [0], [0]>} : vector<2x64x64xbf16>, vector<2x64x32xbf16>, vector<2x64x32xf32> -> vector<2x64x32xf32>
    %98 = vector.broadcast %95 : vector<2x64x1xf32> to vector<2x64x32xf32>
    %99 = arith.mulf %97, %98 : vector<2x64x32xf32>
    %100 = vector.extract_strided_slice %30 {offsets = [0, 0, 96], sizes = [2, 64, 32], strides = [1, 1, 1]} : vector<2x64x128xbf16> to vector<2x64x32xbf16>
    %101 = vector.extract_strided_slice %33 {offsets = [0, 0, 96], sizes = [2, 64, 32], strides = [1, 1, 1]} : vector<2x64x128xbf16> to vector<2x64x32xbf16>
    %102 = vector.extract_strided_slice %36 {offsets = [0, 0, 96], sizes = [2, 64, 32], strides = [1, 1, 1]} : vector<2x64x128xbf16> to vector<2x64x32xbf16>
    %cst_26 = arith.constant dense<0.000000e+00> : vector<2x64x64xf32>
    %103 = tpu.matmul %100, %101, %cst_26 {dimension_numbers = #tpu.dot_dimension_numbers<[2], [2], [1], [1], [0, 0, 0, 1, 1, 1], [0], [0]>} : vector<2x64x32xbf16>, vector<2x64x32xbf16>, vector<2x64x64xf32> -> vector<2x64x64xf32>
    %cst_27 = arith.constant -1.000000e+30 : f32
    %104 = vector.shape_cast %39 : vector<64x64xi1> to vector<1x64x64xi1>
    %105 = vector.broadcast %104 : vector<1x64x64xi1> to vector<2x64x64xi1>
    %106 = vector.broadcast %cst_27 : f32 to vector<2x64x64xf32>
    %107 = arith.select %105, %103, %106 : vector<2x64x64xi1>, vector<2x64x64xf32>
    %cst_28 = arith.constant dense<0xFF800000> : vector<2x64xf32>
    %108 = vector.multi_reduction <maximumf>, %107, %cst_28 [2] : vector<2x64x64xf32> to vector<2x64xf32>
    %109 = vector.shape_cast %108 : vector<2x64xf32> to vector<2x64x1xf32>
    %110 = vector.broadcast %109 : vector<2x64x1xf32> to vector<2x64x64xf32>
    %111 = arith.subf %107, %110 : vector<2x64x64xf32>
    %112 = math.exp %111 : vector<2x64x64xf32>
    %cst_29 = arith.constant dense<0.000000e+00> : vector<2x64xf32>
    %113 = vector.multi_reduction <add>, %112, %cst_29 [2] : vector<2x64x64xf32> to vector<2x64xf32>
    %114 = vector.shape_cast %113 : vector<2x64xf32> to vector<2x64x1xf32>
    %115 = tpu.reciprocal %114 {approx = true} : vector<2x64x1xf32> -> vector<2x64x1xf32>
    %116 = arith.truncf %112 : vector<2x64x64xf32> to vector<2x64x64xbf16>
    %cst_30 = arith.constant dense<0.000000e+00> : vector<2x64x32xf32>
    %117 = tpu.matmul %116, %102, %cst_30 {dimension_numbers = #tpu.dot_dimension_numbers<[2], [1], [1], [2], [0, 0, 0, 1, 1, 2], [0], [0]>} : vector<2x64x64xbf16>, vector<2x64x32xbf16>, vector<2x64x32xf32> -> vector<2x64x32xf32>
    %118 = vector.broadcast %115 : vector<2x64x1xf32> to vector<2x64x32xf32>
    %119 = arith.mulf %117, %118 : vector<2x64x32xf32>
    %120 = tpu.concatenate %59, %79, %99, %119 in 2 : vector<2x64x32xf32>, vector<2x64x32xf32>, vector<2x64x32xf32>, vector<2x64x32xf32> -> vector<2x64x128xf32>
    %121 = vector.shape_cast %120 : vector<2x64x128xf32> to vector<128x128xf32>
    %122 = arith.truncf %121 : vector<128x128xf32> to vector<128x128xbf16>
    %c0_31 = arith.constant 0 : index
    %c0_32 = arith.constant 0 : index
    %123 = vector.load %arg4[%c0_31, %c0_32] : memref<128x128xbf16, #tpu.memory_space<vmem>>, vector<128x128xbf16>
    %cst_33 = arith.constant dense<0.000000e+00> : vector<128x128xf32>
    %124 = tpu.matmul %122, %123, %cst_33 {dimension_numbers = #tpu.dot_dimension_numbers<[1], [0], [0], [1], [0, 0, 1, 1], [], []>} : vector<128x128xbf16>, vector<128x128xbf16>, vector<128x128xf32> -> vector<128x128xf32>
    %c0_34 = arith.constant 0 : index
    %c0_35 = arith.constant 0 : index
    %125 = vector.load %arg5[%c0_34, %c0_35] : memref<1x128xf32, #tpu.memory_space<vmem>>, vector<1x128xf32>
    %126 = vector.shape_cast %125 : vector<1x128xf32> to vector<128xf32>
    %127 = vector.shape_cast %126 : vector<128xf32> to vector<1x128xf32>
    %128 = vector.broadcast %127 : vector<1x128xf32> to vector<128x128xf32>
    %129 = arith.addf %124, %128 : vector<128x128xf32>
    %130 = arith.addf %1, %129 : vector<128x128xf32>
    %cst_36 = arith.constant dense<0.000000e+00> : vector<128xf32>
    %131 = vector.multi_reduction <add>, %130, %cst_36 [1] : vector<128x128xf32> to vector<128xf32>
    %132 = vector.shape_cast %131 : vector<128xf32> to vector<128x1xf32>
    %cst_37 = arith.constant 1.280000e+02 : f32
    %133 = vector.broadcast %cst_37 : f32 to vector<128x1xf32>
    %134 = arith.divf %132, %133 : vector<128x1xf32>
    %135 = vector.broadcast %134 : vector<128x1xf32> to vector<128x128xf32>
    %136 = arith.subf %130, %135 : vector<128x128xf32>
    %137 = arith.mulf %136, %136 : vector<128x128xf32>
    %cst_38 = arith.constant dense<0.000000e+00> : vector<128xf32>
    %138 = vector.multi_reduction <add>, %137, %cst_38 [1] : vector<128x128xf32> to vector<128xf32>
    %139 = vector.shape_cast %138 : vector<128xf32> to vector<128x1xf32>
    %cst_39 = arith.constant 1.280000e+02 : f32
    %140 = vector.broadcast %cst_39 : f32 to vector<128x1xf32>
    %141 = arith.divf %139, %140 : vector<128x1xf32>
    %142 = vector.broadcast %134 : vector<128x1xf32> to vector<128x128xf32>
    %143 = arith.subf %130, %142 : vector<128x128xf32>
    %cst_40 = arith.constant 9.99999974E-6 : f32
    %144 = vector.broadcast %cst_40 : f32 to vector<128x1xf32>
    %145 = arith.addf %141, %144 : vector<128x1xf32>
    %146 = math.rsqrt %145 : vector<128x1xf32>
    %147 = vector.broadcast %146 : vector<128x1xf32> to vector<128x128xf32>
    %148 = arith.mulf %143, %147 : vector<128x128xf32>
    %149 = arith.truncf %148 : vector<128x128xf32> to vector<128x128xbf16>
    %c0_41 = arith.constant 0 : index
    %c0_42 = arith.constant 0 : index
    %150 = vector.load %arg6[%c0_41, %c0_42] : memref<128x512xbf16, #tpu.memory_space<vmem>>, vector<128x512xbf16>
    %cst_43 = arith.constant dense<0.000000e+00> : vector<128x512xf32>
    %151 = tpu.matmul %149, %150, %cst_43 {dimension_numbers = #tpu.dot_dimension_numbers<[1], [0], [0], [1], [0, 0, 1, 1], [], []>} : vector<128x128xbf16>, vector<128x512xbf16>, vector<128x512xf32> -> vector<128x512xf32>
    %c0_44 = arith.constant 0 : index
    %c0_45 = arith.constant 0 : index
    %152 = vector.load %arg7[%c0_44, %c0_45] : memref<1x512xf32, #tpu.memory_space<vmem>>, vector<1x512xf32>
    %153 = vector.shape_cast %152 : vector<1x512xf32> to vector<512xf32>
    %154 = vector.shape_cast %153 : vector<512xf32> to vector<1x512xf32>
    %155 = vector.broadcast %154 : vector<1x512xf32> to vector<128x512xf32>
    %156 = arith.addf %151, %155 : vector<128x512xf32>
    %cst_46 = arith.constant 0.000000e+00 : f32
    %157 = vector.broadcast %cst_46 : f32 to vector<128x512xf32>
    %158 = arith.maximumf %156, %157 : vector<128x512xf32>
    %159 = arith.truncf %158 : vector<128x512xf32> to vector<128x512xbf16>
    %c0_47 = arith.constant 0 : index
    %c0_48 = arith.constant 0 : index
    %160 = vector.load %arg8[%c0_47, %c0_48] : memref<512x128xbf16, #tpu.memory_space<vmem>>, vector<512x128xbf16>
    %cst_49 = arith.constant dense<0.000000e+00> : vector<128x128xf32>
    %161 = tpu.matmul %159, %160, %cst_49 {dimension_numbers = #tpu.dot_dimension_numbers<[1], [0], [0], [1], [0, 0, 1, 1], [], []>} : vector<128x512xbf16>, vector<512x128xbf16>, vector<128x128xf32> -> vector<128x128xf32>
    %c0_50 = arith.constant 0 : index
    %c0_51 = arith.constant 0 : index
    %162 = vector.load %arg9[%c0_50, %c0_51] : memref<1x128xf32, #tpu.memory_space<vmem>>, vector<1x128xf32>
    %163 = vector.shape_cast %162 : vector<1x128xf32> to vector<128xf32>
    %164 = vector.shape_cast %163 : vector<128xf32> to vector<1x128xf32>
    %165 = vector.broadcast %164 : vector<1x128xf32> to vector<128x128xf32>
    %166 = arith.addf %161, %165 : vector<128x128xf32>
    %167 = arith.addf %130, %166 : vector<128x128xf32>
    %168 = vector.shape_cast %167 : vector<128x128xf32> to vector<2x64x128xf32>
    %c0_52 = arith.constant 0 : index
    %c0_53 = arith.constant 0 : index
    %c0_54 = arith.constant 0 : index
    %169 = vector.load %arg10[%c0_52, %c0_53, %c0_54] : memref<2x64x128xf32, #tpu.memory_space<vmem>>, vector<2x64x128xf32>
    tpu.vector_store %arg10[%c0_52, %c0_53, %c0_54], %168 {strides = array<i32>} : memref<2x64x128xf32, #tpu.memory_space<vmem>>, vector<2x64x128xf32>,
    return
  }
  func.func @transform_0(%arg0: i32) -> (i32, i32, i32) {
    %c0_i32 = arith.constant 0 : i32
    %c0_i32_0 = arith.constant 0 : i32
    %c0_i32_1 = arith.constant 0 : i32
    return %arg0, %c0_i32, %c0_i32_0 : i32, i32, i32
  }
  func.func @transform_1(%arg0: i32) -> (i32, i32) {
    %c0_i32 = arith.constant 0 : i32
    %c0_i32_0 = arith.constant 0 : i32
    %c0_i32_1 = arith.constant 0 : i32
    return %c0_i32, %c0_i32_0 : i32, i32
  }
  func.func @transform_2(%arg0: i32) -> (i32, i32) {
    %c0_i32 = arith.constant 0 : i32
    %c0_i32_0 = arith.constant 0 : i32
    %c0_i32_1 = arith.constant 0 : i32
    return %c0_i32, %c0_i32_0 : i32, i32
  }
  func.func @transform_3(%arg0: i32) -> (i32, i32) {
    %c0_i32 = arith.constant 0 : i32
    %c0_i32_0 = arith.constant 0 : i32
    %c0_i32_1 = arith.constant 0 : i32
    return %c0_i32, %c0_i32_0 : i32, i32
  }
  func.func @transform_4(%arg0: i32) -> (i32, i32) {
    %c0_i32 = arith.constant 0 : i32
    %c0_i32_0 = arith.constant 0 : i32
    %c0_i32_1 = arith.constant 0 : i32
    return %c0_i32, %c0_i32_0 : i32, i32
  }
  func.func @transform_5(%arg0: i32) -> (i32, i32) {
    %c0_i32 = arith.constant 0 : i32
    %c0_i32_0 = arith.constant 0 : i32
    %c0_i32_1 = arith.constant 0 : i32
    return %c0_i32, %c0_i32_0 : i32, i32
  }
  func.func @transform_6(%arg0: i32) -> (i32, i32) {
    %c0_i32 = arith.constant 0 : i32
    %c0_i32_0 = arith.constant 0 : i32
    %c0_i32_1 = arith.constant 0 : i32
    return %c0_i32, %c0_i32_0 : i32, i32
  }
  func.func @transform_7(%arg0: i32) -> (i32, i32) {
    %c0_i32 = arith.constant 0 : i32
    %c0_i32_0 = arith.constant 0 : i32
    %c0_i32_1 = arith.constant 0 : i32
    return %c0_i32, %c0_i32_0 : i32, i32
  }
  func.func @transform_8(%arg0: i32) -> (i32, i32) {
    %c0_i32 = arith.constant 0 : i32
    %c0_i32_0 = arith.constant 0 : i32
    %c0_i32_1 = arith.constant 0 : i32
    return %c0_i32, %c0_i32_0 : i32, i32
  }
  func.func @transform_9(%arg0: i32) -> (i32, i32, i32) {
    %c0_i32 = arith.constant 0 : i32
    %c0_i32_0 = arith.constant 0 : i32
    %c0_i32_1 = arith.constant 0 : i32
    return %arg0, %c0_i32, %c0_i32_0 : i32, i32, i32
  }
}

</mosaic_0001>

<bundles_post_ra>
// kernel: tpu_custom_call.1
= control target key start
LH: loop header
LB: loop body
LE: loop exit
PB: predicated region body
PF: predicated region fallthrough
CT: control target
= control target key end

     0   :  { %s8946_s0 = inlined_call_operand.hbm [shape: f32[4,64,128], index: 0, kind: input, shape index: {}]   ;;  %s8947_s1 = inlined_call_operand.hbm [shape: bf16[128,384], index: 1, kind: input, shape index: {}]   ;;  %s8948_s2 = inlined_call_operand.hbm [shape: f32[1,384], index: 2, kind: input, shape index: {}]   ;;  %s8949_s3 = inlined_call_operand.hbm [shape: bf16[128,128], index: 3, kind: input, shape index: {}]   ;;  %s8950_s4 = inlined_call_operand.vmem [shape: f32[1,128], index: 4, kind: input, shape index: {}]   ;;  %s8951_s5 = inlined_call_operand.hbm [shape: bf16[128,512], index: 5, kind: input, shape index: {}]   ;;  %s8952_s6 = inlined_call_operand.vmem [shape: f32[1,512], index: 6, kind: input, shape index: {}]   ;;  %s8953_s7 = inlined_call_operand.hbm [shape: bf16[512,128], index: 7, kind: input, shape index: {}]   ;;  %s8954_s8 = inlined_call_operand.vmem [shape: f32[1,128], index: 8, kind: input, shape index: {}]   ;;  %s8955_s9 = inlined_call_operand.hbm [shape: f32[4,64,128], index: 9, kind: output, shape index: {}]  }
   0x1   :  { %8965 = sst [smem:[#allocation34_spill]] %s8947_s1 }
   0x2   :  { %8966 = sst [smem:[#allocation35_spill]] %s8948_s2 }
   0x3   :  { %8967 = sst [smem:[#allocation36_spill]] %s8949_s3 }
   0x4   :  { %8968 = sst [smem:[#allocation37_spill]] %s8951_s5 }
   0x5   :  { %14 = vsyncpa [#allocation3], 0 }
   0x6   :  { %16 = vsyncpa [#allocation3 + $0x1], 0 }
   0x7   :  { %17 = vsyncpa [#allocation6], 0 }
   0x8   :  { %18 = vsyncpa [#allocation9], 0 }
   0x9   :  { %19 = vsyncpa [#allocation12], 0 }
   0xa   :  { %20 = vsyncpa [#allocation4], 0 }
   0xb   :  { %22 = vsyncpa [#allocation4 + $0x1], 0  ;;  %s6541_s30 = smov 0   ;;  %s6543_s10 = smov 0  }
   0xc   :  { %s6545_s11 = smov 0   ;;  %s6547_s12 = smov 0  }
   0xd LB: > { %s8969_s1 = sld [smem:[#allocation34_spill]]  ;;  %s6565_s16 = sadd.s32 4294967295, %s6470_s12   ;;  %s6470_s12 = sphi %s6547_s12, %s9041_s12   ;;  %s6466_s11 = sphi %s6545_s11, %s9040_s11   ;;  %s6462_s10 = sphi %s6543_s10, %s9039_s10   ;;  %s6458_s30 = sphi %s6541_s30, %s9038_s30  }
   0xe   : > { %p5060_p0 = scmp.ge.s32.totalorder %s6470_s12, 1  ;;  %p49_p1 = scmp.eq.s32.totalorder %s6565_s16, 0 }
   0xf   : > { %p253_p2 = scmp.lt.s32.totalorder %s6470_s12, 3  ;;  %s6472_s18 = smov [#allocation5]  }
  0x10   : > { %s266_s19 = sshll.u32 %s6472_s18, 4  ;;  %s8971_s3 = sld [smem:[#allocation36_spill]]  ;;  %s267_s19 = int_to_ptr.vmem [resolvable:$true] %s266_s19 }
  0x11   : > { %p6570_p3 = pnand %p5060_p0, %p253_p2  ;;  %s6473_s24 = smov [#allocation8]  }
  0x12   : > { %s292_s25 = sshll.u32 %s6473_s24, 4  ;;  %s6474_s26 = smov 192   ;;  %s293_s25 = int_to_ptr.vmem [resolvable:$true] %s292_s25 }
  0x13   : > { %s264_s15 = sshll.u32 %s8969_s1, 4  ;;  %p5665_p4 = pneg %p6570_p3  ;;  %s265_s15 = int_to_ptr.hbm [resolvable:$true] %s264_s15 }
  0x14   : > { %s6475_s27 = smov 12   ;;  %s6476_s28 = smov 64  }
  0x15   : > { %p6582_p6 = pnand %p5665_p4, %p49_p1  ;;  %s6477_s29 = smov 4  }
  0x16   : > { %s290_s22 = sshll.u32 %s8971_s3, 4  ;;  %s8973_s2 = sld [smem:[#allocation35_spill]]  ;;  %s291_s22 = int_to_ptr.hbm [resolvable:$true] %s290_s22 }
  0x17   : > { %5668 = dma.hbm_to_vmem [thread:$0]  (!%p6582_p6), %s265_s15, 3072, %s267_s19, [#allocation6], %s6474_s26, %s6474_s26, %s6475_s27  }
  0x18   : > { %5674 = dma.hbm_to_vmem [thread:$0]  (!%p6582_p6), %s291_s22, 1024, %s293_s25, [#allocation9], %s6476_s28, %s6476_s28, %s6477_s29  }
  0x19   : > { %s6478_s20 = smov [#allocation7]   ;;  %s8974_s5 = sld [smem:[#allocation37_spill]] }
  0x1a   : > { %s281_s21 = sshll.u32 %s6478_s20, 4  ;;  %s6479_s19 = smov [#allocation10]   ;;  %s282_s21 = int_to_ptr.vmem [resolvable:$true] %s281_s21 }
  0x1b   : > { %s309_s22 = sshll.u32 %s6479_s19, 4  ;;  %s6480_s25 = smov 256   ;;  %s310_s22 = int_to_ptr.vmem [resolvable:$true] %s309_s22 }
  0x1c   : > { %s279_s18 = sshll.u32 %s8973_s2, 4  ;;  %s6481_s26 = smov 16   ;;  %s280_s18 = int_to_ptr.hbm [resolvable:$true] %s279_s18 }
  0x1d   : > { %5671 = dma.hbm_to_vmem [thread:$0]  (!%p6582_p6), %s280_s18, 48, %s282_s21, [#allocation6]  }
  0x1e   : > { %s324_s13 = sshll.u32 %s8953_s7, 4  ;;  %s6482_s14 = smov [#allocation11]   ;;  %s325_s13 = int_to_ptr.hbm [resolvable:$true] %s324_s13 }
  0x1f   : > { %s307_s15 = sshll.u32 %s8974_s5, 4  ;;  %s326_s18 = sshll.u32 %s6482_s14, 4  ;;  %s308_s15 = int_to_ptr.hbm [resolvable:$true] %s307_s15  ;;  %s327_s18 = int_to_ptr.vmem [resolvable:$true] %s326_s18 }
  0x20   : > { %5677 = dma.hbm_to_vmem [thread:$0]  (!%p6582_p6), %s308_s15, 4096, %s310_s22, [#allocation9], %s6480_s25, %s6480_s25, %s6481_s26  }
  0x21   : > { %5680 = dma.hbm_to_vmem [thread:$0]  (!%p6582_p6), %s325_s13, 4096, %s327_s18, [#allocation12], %s6476_s28, %s6476_s28, %s6477_s29  }
  0x22   : > { %s5059_s20 = sadd.s32 4294967294, %s6470_s12   ;;  %s6607_s21 = sadd.s32 1, %s6470_s12  }
  0x23   : > { %s35_s24 = sadd.s32 1, %s6466_s11  ;;  %s32_s15 = ssub.s32 %s6470_s12, %s6607_s21 }
  0x24   : > { %p42_p7 = scmp.ne.s32.totalorder %s6466_s11, %s6462_s10  ;;  %p33_p8 = scmp.eq.s32.totalorder %s32_s15, 0 }
  0x25   : > { %p43_p9 = scmp.eq.s32.totalorder %s6470_s12, 0  ;;  %p48_p10 = scmp.ne.s32.totalorder %s6462_s10, %s6458_s30 }
  0x26   : > { %p240_p11 = scmp.eq.s32.totalorder %s6565_s16, 1  ;;  %p246_p2 = scmp.eq.s32.totalorder %s5059_s20, 1 }
  0x27   : > { %s6619_s19 = scalar_select %p33_p8, %s6466_s11, %s35_s24  }
  0x28   : > { %p6621_p12 = por %p43_p9, %p42_p7  ;;  %p6627_p13 = por %p49_p1, %p48_p10 }
  0x29   : > { %p6631_p0 = por %p240_p11, %p42_p7  ;;  %p5694_p4 = scmp.lt.s32.totalorder %s6470_s12, 2 }
  0x2a   : > { %s343_s29 = sand.u32 1, %s6466_s11   ;;  %p6637_p6 = por %p246_p2, %p48_p10 }
  0x2b   : > { %s5067_s26 = sshll.u32 %s343_s29, 7  ;;  %s5534_s1 = sshll.u32 %s6470_s12, 7 }
  0x2c   : > { %s353_s14 = scalar_lea.hbm %s8946_s0, %s5534_s1  ;;  %s347_s24 = scalar_lea.vmem [#allocation2], %s5067_s26 }
  0x2d   : > { %s354_s18 = sshll.u32 %s353_s14, 4  ;;  %s356_s15 = sshll.u32 %s347_s24, 4  ;;  %s355_s18 = int_to_ptr.hbm [resolvable:$true] %s354_s18  ;;  %s357_s15 = int_to_ptr.vmem [resolvable:$true] %s356_s15 }
  0x2e   : > { %p6647_p7 = pnand %p5694_p4, %p6621_p12  ;;  %s344_s2 = scalar_lea.sflag [#allocation3], %s343_s29 }
  0x2f   : > { %s6362_s3 = sshra.s32 %s355_s18, 4  ;;  %s6369_s27 = scalar_lea.hbm %s8946_s0, 256  ;;  %s6363_s3 = int_to_ptr.hbm [resolvable:$true] %s6362_s3 }
  0x30   : > { %s6364_s5 = scalar_lea.hbm %s6363_s3, 128  ;;  %p6366_p9 = pneg %p6647_p7 }
  0x31   : > { %p6365_p8 = scmp.ne.s32.totalorder %s6363_s3, %s6364_s5  ;;  %p6370_p12 = scmp.lt.s32.totalorder %s6363_s3, %s8946_s0 }
  0x32   : > { %p6371_p2 = scmp.lt.s32.totalorder %s6369_s27, %s6364_s5 }
  0x33   : > { %p6367_p10 = pnand %p6366_p9, %p6365_p8 }
  0x34   : > { %p6372_p4 = por %p6371_p2, %p6370_p12 }
  0x35   : > { %p6368_p11 = pneg %p6367_p10 }
  0x37   : > { %p6373_p5 = pnand %p6372_p4, %p6368_p11 }
  0x39   : > { %6376 = shalt.err (!%p6373_p5)
}
  0x3a   : > { %s6483_s29 = smov 128   ;;  %s6484_s14 = smov 8  }
  0x3b   : > { %5684 = dma.hbm_to_vmem [thread:$0]  (!%p6647_p7), %s355_s18, 2048, %s357_s15, %s344_s2, %s6483_s29, %s6483_s29, %s6484_s14  }
  0x3c   : > { %368 = sbr.rel (%p6570_p3) target bundleno = 2499 (0x9c3), region = 56 }
  0x41   : > { %s6664_s24 = sand.u32 1, %s6462_s10  }
  0x42   : > { %s5072_s3 = sshll.u32 %s6664_s24, 7  ;;  %s371_s5 = scalar_lea.sflag [#allocation3], %s6664_s24 }
  0x43   : > { %s6670_s1 = scalar_lea.vmem [#allocation2], %s5072_s3 }
  0x44   : > { %6437 = dma.done.wait (%p6627_p13), %s371_s5, 2048  }
  0x45   : > { %6439 = vsyncadd (%p6627_p13), %s371_s5, 4294965248 }
  0x46   : > { %6441 = dma.done.wait (%p49_p1), [#allocation6], 3120  }
  0x47   : > { %6443 = vsyncadd (%p49_p1), [#allocation6], 4294964176 }
  0x48   : > { %6445 = dma.done.wait (%p49_p1), [#allocation9], 5120  }
  0x49   : > { %6447 = vsyncadd (%p49_p1), [#allocation9], 4294962176 }
  0x4a   : > { %6449 = dma.done.wait (%p49_p1), [#allocation12], 4096  }
  0x4b   : > { %6451 = vsyncadd (%p49_p1), [#allocation12], 4294963200  ;;  %v440_v0 = vld [vmem:[%s6670_s1 + $0x10] sm:$0xff]  ;;  %v438_v1 = vld [vmem:[%s6670_s1] sm:$0xff]  ;;  %v6485_v8 = vmov 128.0   ;;  %s6486_s2 = smov 96  }
  0x4c   : > { %458 = vadd.xlane.f32.xlu1 %v440_v0  ;;  %454 = vadd.xlane.f32.xlu0 %v438_v1  ;;  %v442_v2 = vld [vmem:[%s6670_s1 + $0x20] sm:$0xff]  ;;  %v441_v3 = vld [vmem:[%s6670_s1 + $0x18] sm:$0xff]  ;;  %v439_v4 = vld [vmem:[%s6670_s1 + $0x8] sm:$0xff]  ;;  %5874 = vrcp.f32 %v6485_v8  ;;  %s6487_s17 = smov 64   ;;  %s6488_s23 = smov 32  }
  0x4d   : > { %462 = vadd.xlane.f32.xlu2 %v442_v2  ;;  %v443_v5 = vld [vmem:[%s6670_s1 + $0x28] sm:$0xff]  ;;  %v444_v6 = vld [vmem:[%s6670_s1 + $0x30] sm:$0xff]  ;;  %v449_v7 = vld [vmem:[%s6670_s1 + $0x58] sm:$0xff]  ;;  %s8865_s22 = scalar_lea.vmem [#allocation13], %s5072_s3  ;;  %s5632_s29 = sshll.u32 %s6565_s16, 7 }
  0x4e   : > { %v6712_v29 = vld [vmem:[%s6670_s1 + $0x38] sm:$0xff]  ;;  %v6727_v37 = vld [vmem:[%s6670_s1 + $0x40] sm:$0xff]  ;;  %v6741_v44 = vld [vmem:[%s6670_s1 + $0x48] sm:$0xff]  ;;  %s4934_s5 = scalar_lea.hbm %s8955_s9, %s5632_s29  ;;  %s4922_s16 = scalar_lea.sflag [#allocation4], %s6664_s24 }
  0x4f   : > { %v6738_v43 = vld [vmem:[%s6670_s1 + $0x60] sm:$0xff]  ;;  %v6750_v47 = vld [vmem:[%s6670_s1 + $0x50] sm:$0xff]  ;;  %v6754_v48 = vld [vmem:[%s6670_s1 + $0x68] sm:$0xff]  ;;  %s6412_s20 = scalar_lea.hbm %s8955_s9, 256 }
  0x50   : > { %v6759_v51 = vld [vmem:[%s6670_s1 + $0x70] sm:$0xff]  ;;  %v5165_v54 = vld [vmem:[#allocation5 + $0xa8] sm:$0xf]  ;;  %v5556_v56 = vld [vmem:[#allocation5 + $0xac] sm:$0xf] }
  0x51   : > { %v5557_v55 = vld [vmem:[#allocation5 + $0xb0] sm:$0xf0]  ;;  %v5167_v58 = vld [vmem:[#allocation5 + $0xb4] sm:$0xf0]  ;;  %v5173_v59 = vld [vmem:[#allocation5 + $0xb0] sm:$0xf] }
  0x52   : > { %v5875_v9 = vpop.eup %5874  ;;  %v5166_v57 = vor.u32 %v5557_v55, %v5165_v54  ;;  %v5558_v60 = vld [vmem:[#allocation5 + $0xb8] sm:$0xf0]  ;;  %v5170_v61 = vor.u32 %v5556_v56, %v5167_v58  ;;  %v5153_v63 = vld [vmem:[#allocation5 + $0x90] sm:$0xf]  ;;  %v5141_v8 = vld [vmem:[#allocation5 + $0x78] sm:$0xf] }
  0x53   : > { %v487_v10 = vmul.f32 128.0, %v5875_v9  ;;  %vm491_vm0 = vweird.f32 %v5875_v9  ;;  %v5174_v62 = vor.u32 %v5558_v60, %v5173_v59  ;;  %v5107_v55 = vld [vmem:[#allocation5 + $0x3c] sm:$0xf0]  ;;  %v5113_v56 = vld [vmem:[#allocation5 + $0x38] sm:$0xf] }
  0x54   : > { %460 = vadd.xlane.f32.xlu1 %v441_v3  ;;  %456 = vadd.xlane.f32.xlu0 %v439_v4  ;;  %v5093_v60 = vld [vmem:[#allocation5 + $0x18] sm:$0xf] }
  0x55   : > { %464 = vadd.xlane.f32.xlu2 %v443_v5  ;;  %v488_v11 = vsub.f32 1.0, %v487_v10  ;;  %957 = vmatpush.bf16.msra.mxu0 %v5166_v57  ;;  %v5550_v10 = vld [vmem:[#allocation5 + $0x7c] sm:$0xf]  ;;  %v5543_v57 = vld [vmem:[#allocation5 + $0x40] sm:$0xf0] }
  0x56   : > { %1006 = vmatpush.bf16.msra.mxu1 %v5170_v61  ;;  %1055 = vmatpush.bf16.msra.mxu2 %v5174_v62  ;;  %v5114_v59 = vor.u32 %v5543_v57, %v5113_v56  ;;  %v5539_v61 = vld [vmem:[#allocation5 + $0x20] sm:$0xf0] }
  0x57   : > { %v489_v12 = vmul.f32 %v5875_v9, %v488_v11  ;;  %5633 = vmatpush.bf16.msra.mxu3 %v5174_v62  ;;  %v5538_v62 = vld [vmem:[#allocation5 + $0x1c] sm:$0xf] }
  0x59   : > { %v490_v13 = vadd.f32 %v5875_v9, %v489_v12  ;;  %v5143_v12 = vld [vmem:[#allocation5 + $0x84] sm:$0xf0] }
  0x5b   : > { %v6696_v14 = vsel %vm491_vm0, %v5875_v9, %v490_v13  ;;  %v5551_v9 = vld [vmem:[#allocation5 + $0x80] sm:$0xf0]  ;;  %v5149_v13 = vld [vmem:[#allocation5 + $0x80] sm:$0xf] }
  0x5c   : > { %8980 = vst [vmem:[#allocation19_spill] sm:$0xff] %v6696_v14  ;;  %v5142_v11 = vor.u32 %v5551_v9, %v5141_v8  ;;  %v5083_v9 = vld [vmem:[#allocation5 + $0xc] sm:$0xf0] }
  0x5d   : > { %466 = vadd.xlane.f32.xlu2 %v444_v6 }
  0x65   : > { %476 = vadd.xlane.f32.xlu2 %v449_v7 }
  0xbf   : > { %v459_v15 = vpop.xlane.xlu1 %458  ;;  %v455_v16 = vpop.xlane.xlu0 %454 }
  0xc0   : > { %v493_v17 = vmul.f32 %v6696_v14, %v455_v16  ;;  %v463_v19 = vpop.xlane.xlu2 %462  ;;  %v495_v28 = vmul.f32 %v6696_v14, %v459_v15  ;;  %v5552_v15 = vld [vmem:[#allocation5 + $0x88] sm:$0xf0]  ;;  %v5146_v16 = vor.u32 %v5550_v10, %v5143_v12  ;;  %v5089_v10 = vld [vmem:[#allocation5 + $0x8] sm:$0xf] }
  0xc1   : > { %v497_v27 = vmul.f32 %v6696_v14, %v463_v19  ;;  %v5129_v19 = vld [vmem:[#allocation5 + $0x60] sm:$0xf] }
  0xc2   : > { %v6699_v18 = vsub.f32 %v438_v1, %v493_v17  ;;  %v6721_v34 = vsub.f32 %v440_v0, %v495_v28  ;;  %v5554_v0 = vld [vmem:[#allocation5 + $0x98] sm:$0xf0]  ;;  %v5553_v1 = vld [vmem:[#allocation5 + $0x94] sm:$0xf]  ;;  %v5150_v17 = vor.u32 %v5552_v15, %v5149_v13 }
  0xc3   : > { %v6719_v33 = vsub.f32 %v442_v2, %v497_v27  ;;  %v5154_v2 = vor.u32 %v5554_v0, %v5153_v63  ;;  %v5549_v27 = vld [vmem:[#allocation5 + $0x70] sm:$0xf0]  ;;  %v5094_v63 = vor.u32 %v5539_v61, %v5093_v60  ;;  %v5095_v0 = vld [vmem:[#allocation5 + $0x24] sm:$0xf0] }
  0xc4   : > { %v525_v20 = vmul.f32 %v6699_v18, %v6699_v18  ;;  %v527_v38 = vmul.f32 %v6721_v34, %v6721_v34  ;;  %v5537_v13 = vld [vmem:[#allocation5 + $0x10] sm:$0xf0] }
  0xc5   : > { %v529_v35 = vmul.f32 %v6719_v33, %v6719_v33  ;;  %958 = vmatpush.bf16.msra.mxu0 %v5154_v2  ;;  %v5540_v2 = vld [vmem:[#allocation5 + $0x28] sm:$0xf0] }
  0xc6   : > { %541 = vadd.xlane.f32.xlu0 %v525_v20  ;;  %v5548_v20 = vld [vmem:[#allocation5 + $0x68] sm:$0xf0] }
  0xc7   : > { %v461_v21 = vpop.xlane.xlu1 %460  ;;  %v457_v22 = vpop.xlane.xlu0 %456 }
  0xc8   : > { %v496_v23 = vmul.f32 %v6696_v14, %v461_v21  ;;  %v494_v24 = vmul.f32 %v6696_v14, %v457_v22  ;;  %v465_v32 = vpop.xlane.xlu2 %464  ;;  %v5547_v21 = vld [vmem:[#allocation5 + $0x64] sm:$0xf]  ;;  %v5130_v22 = vor.u32 %v5548_v20, %v5129_v19 }
  0xc9   : > { %v498_v36 = vmul.f32 %v6696_v14, %v465_v32  ;;  %959 = vmatpush.bf16.msra.mxu0 %v5142_v11  ;;  %v5545_v32 = vld [vmem:[#allocation5 + $0x50] sm:$0xf0] }
  0xca   : > { %v6705_v25 = vsub.f32 %v441_v3, %v496_v23  ;;  %v6707_v26 = vsub.f32 %v439_v4, %v494_v24  ;;  %v5155_v3 = vld [vmem:[#allocation5 + $0x9c] sm:$0xf0]  ;;  %v5161_v4 = vld [vmem:[#allocation5 + $0x98] sm:$0xf]  ;;  %v5131_v23 = vld [vmem:[#allocation5 + $0x6c] sm:$0xf0] }
  0xcb   : > { %v6732_v39 = vsub.f32 %v443_v5, %v498_v36  ;;  %v5555_v5 = vld [vmem:[#allocation5 + $0xa0] sm:$0xf0]  ;;  %v5137_v24 = vld [vmem:[#allocation5 + $0x68] sm:$0xf]  ;;  %v5134_v28 = vor.u32 %v5547_v21, %v5131_v23 }
  0xcc   : > { %v528_v30 = vmul.f32 %v6705_v25, %v6705_v25  ;;  %v526_v31 = vmul.f32 %v6707_v26, %v6707_v26 }
  0xcd   : > { %v530_v41 = vmul.f32 %v6732_v39, %v6732_v39  ;;  %960 = vmatpush.bf16.msra.mxu0 %v5130_v22 }
  0xce   : > { %547 = vadd.xlane.f32.xlu2 %v528_v30  ;;  %468 = vadd.xlane.f32.xlu0 %v6712_v29  ;;  %v5138_v30 = vor.u32 %v5549_v27, %v5137_v24 }
  0xcf   : > { %543 = vadd.xlane.f32.xlu1 %v526_v31  ;;  %v5117_v31 = vld [vmem:[#allocation5 + $0x48] sm:$0xf] }
  0xd0   : > { %v467_v40 = vpop.xlane.xlu2 %466  ;;  %v5118_v36 = vor.u32 %v5545_v32, %v5117_v31 }
  0xd1   : > { %v499_v42 = vmul.f32 %v6696_v14, %v467_v40  ;;  %v5125_v40 = vld [vmem:[#allocation5 + $0x50] sm:$0xf] }
  0xd2   : > { %961 = vmatpush.bf16.msra.mxu0 %v5118_v36 }
  0xd3   : > { %v6744_v45 = vsub.f32 %v444_v6, %v499_v42  ;;  %v5158_v6 = vor.u32 %v5553_v1, %v5155_v3  ;;  %v5101_v1 = vld [vmem:[#allocation5 + $0x20] sm:$0xf]  ;;  %v5098_v3 = vor.u32 %v5538_v62, %v5095_v0 }
  0xd5   : > { %v531_v46 = vmul.f32 %v6744_v45, %v6744_v45  ;;  %1007 = vmatpush.bf16.msra.mxu1 %v5158_v6  ;;  %v5536_v6 = vld [vmem:[#allocation5 + $0x8] sm:$0xf0] }
  0xd6   : > { %549 = vadd.xlane.f32.xlu2 %v529_v35  ;;  %470 = vadd.xlane.f32.xlu0 %v6727_v37  ;;  %v5544_v35 = vld [vmem:[#allocation5 + $0x4c] sm:$0xf] }
  0xd7   : > { %545 = vadd.xlane.f32.xlu1 %v527_v38  ;;  %v5119_v38 = vld [vmem:[#allocation5 + $0x54] sm:$0xf0] }
  0xd8   : > { %v477_v49 = vpop.xlane.xlu2 %476  ;;  %v5122_v42 = vor.u32 %v5544_v35, %v5119_v38 }
  0xd9   : > { %v504_v50 = vmul.f32 %v6696_v14, %v477_v49  ;;  %1008 = vmatpush.bf16.msra.mxu1 %v5146_v16  ;;  %v5105_v49 = vld [vmem:[#allocation5 + $0x30] sm:$0xf]  ;;  %v5090_v16 = vor.u32 %v5537_v13, %v5089_v10 }
  0xdb   : > { %v6762_v52 = vsub.f32 %v449_v7, %v504_v50  ;;  %v5162_v7 = vor.u32 %v5555_v5, %v5161_v4  ;;  %v5542_v50 = vld [vmem:[#allocation5 + $0x38] sm:$0xf0]  ;;  %v5102_v4 = vor.u32 %v5540_v2, %v5101_v1  ;;  %v5081_v5 = vld [vmem:[#allocation5] sm:$0xf] }
  0xdc   : > { %v5106_v54 = vor.u32 %v5542_v50, %v5105_v49  ;;  %v5082_v8 = vor.u32 %v5536_v6, %v5081_v5 }
  0xdd   : > { %v536_v53 = vmul.f32 %v6762_v52, %v6762_v52  ;;  %1056 = vmatpush.bf16.msra.mxu2 %v5162_v7  ;;  %5634 = vmatpush.bf16.msra.mxu3 %v5162_v7  ;;  %v5535_v7 = vld [vmem:[#allocation5 + $0x4] sm:$0xf] }
  0xde   : > { %551 = vadd.xlane.f32.xlu0 %v530_v41  ;;  %478 = vadd.xlane.f32.xlu2 %v6738_v43  ;;  %v5546_v41 = vld [vmem:[#allocation5 + $0x58] sm:$0xf0]  ;;  %v5086_v12 = vor.u32 %v5535_v7, %v5083_v9 }
  0xdf   : > { %472 = vadd.xlane.f32.xlu1 %v6741_v44  ;;  %1009 = vmatpush.bf16.msra.mxu1 %v5134_v28 }
  0xe0   : > { %962 = vmatpush.bf16.msra.mxu0 %v5106_v54 }
  0xe1   : > { %1057 = vmatpush.bf16.msra.mxu2 %v5150_v17  ;;  %5635 = vmatpush.bf16.msra.mxu3 %v5150_v17 }
  0xe3   : > { %1010 = vmatpush.bf16.msra.mxu1 %v5122_v42 }
  0xe4   : > { %963 = vmatpush.bf16.msra.mxu0 %v5094_v63 }
  0xe5   : > { %1058 = vmatpush.bf16.msra.mxu2 %v5138_v30  ;;  %5636 = vmatpush.bf16.msra.mxu3 %v5138_v30 }
  0xe6   : > { %553 = vadd.xlane.f32.xlu0 %v531_v46  ;;  %v5126_v46 = vor.u32 %v5546_v41, %v5125_v40 }
  0xe7   : > { %474 = vadd.xlane.f32.xlu1 %v6750_v47 }
  0xe8   : > { %964 = vmatpush.bf16.msra.mxu0 %v5082_v8 }
  0xe9   : > { %1059 = vmatpush.bf16.msra.mxu2 %v5126_v46  ;;  %5637 = vmatpush.bf16.msra.mxu3 %v5126_v46 }
  0xed   : > { %1060 = vmatpush.bf16.msra.mxu2 %v5114_v59  ;;  %5638 = vmatpush.bf16.msra.mxu3 %v5114_v59 }
  0xee   : > { %480 = vadd.xlane.f32.xlu0 %v6754_v48 }
  0xf1   : > { %1061 = vmatpush.bf16.msra.mxu2 %v5102_v4  ;;  %5639 = vmatpush.bf16.msra.mxu3 %v5102_v4 }
  0xf5   : > { %1062 = vmatpush.bf16.msra.mxu2 %v5090_v16  ;;  %5640 = vmatpush.bf16.msra.mxu3 %v5090_v16 }
  0xf6   : > { %482 = vadd.xlane.f32.xlu0 %v6759_v51 }
  0xfe   : > { %563 = vadd.xlane.f32.xlu0 %v536_v53  ;;  %v5541_v53 = vld [vmem:[#allocation5 + $0x34] sm:$0xf] }
  0xff   : > { %v5110_v58 = vor.u32 %v5541_v53, %v5107_v55 }
 0x101   : > { %1011 = vmatpush.bf16.msra.mxu1 %v5110_v58 }
 0x105   : > { %1012 = vmatpush.bf16.msra.mxu1 %v5098_v3 }
 0x109   : > { %1013 = vmatpush.bf16.msra.mxu1 %v5086_v12 }
 0x139   : > { %v542_v11 = vpop.xlane.xlu0 %541 }
 0x13a   : > { %v573_v15 = vmul.f32 %v542_v11, %v6696_v14  ;;  %v6815_v11 = vld [vmem:[%s6670_s1 + $0x78] sm:$0xff] }
 0x13c   : > { %v589_v17 = vadd.f32 1e-05, %v573_v15 }
 0x13e   : > { %5876 = vrsqrt.f32 %v589_v17  ;;  %vm611_vm2 = vweird.f32 %v589_v17 }
 0x141   : > { %v548_v19 = vpop.xlane.xlu2 %547  ;;  %v469_v20 = vpop.xlane.xlu0 %468 }
 0x142   : > { %v576_v21 = vmul.f32 %v548_v19, %v6696_v14  ;;  %v544_v22 = vpop.xlane.xlu1 %543  ;;  %v500_v23 = vmul.f32 %v6696_v14, %v469_v20 }
 0x143   : > { %v574_v24 = vmul.f32 %v544_v22, %v6696_v14 }
 0x144   : > { %v6770_v27 = vpop.eup %5876  ;;  %v6773_v28 = vsub.f32 %v6712_v29, %v500_v23  ;;  %v6776_v32 = vadd.f32 1e-05, %v576_v21 }
 0x145   : > { %v606_v30 = vmul.f32 %v6770_v27, %v589_v17  ;;  %v590_v31 = vadd.f32 1e-05, %v574_v24  ;;  %vm612_vm1 = vweird.f32 %v6770_v27 }
 0x146   : > { %v532_v35 = vmul.f32 %v6773_v28, %v6773_v28  ;;  %vm6807_vm5 = vmor %vm611_vm2, %vm612_vm1  ;;  %vm641_vm7 = vweird.f32 %v6776_v32 }
 0x147   : > { %v607_v36 = vmul.f32 %v6770_v27, %v606_v30  ;;  %5878 = vrsqrt.f32 %v590_v31  ;;  %vm621_vm3 = vweird.f32 %v590_v31 }
 0x148   : > { %555 = vadd.xlane.f32.xlu1 %v532_v35  ;;  %5880 = vrsqrt.f32 %v6776_v32 }
 0x149   : > { %v471_v38 = vpop.xlane.xlu0 %470  ;;  %v550_v40 = vpop.xlane.xlu2 %549  ;;  %v608_v42 = vmul.f32 0.5, %v607_v36 }
 0x14a   : > { %v546_v41 = vpop.xlane.xlu1 %545  ;;  %v501_v29 = vmul.f32 %v6696_v14, %v471_v38  ;;  %v577_v61 = vmul.f32 %v550_v40, %v6696_v14 }
 0x14b   : > { %v575_v46 = vmul.f32 %v546_v41, %v6696_v14  ;;  %v609_v55 = vsub.f32 1.5, %v608_v42 }
 0x14c   : > { %v6785_v49 = vsub.f32 %v6727_v37, %v501_v29  ;;  %v6811_v9 = vadd.f32 1e-05, %v577_v61 }
 0x14d   : > { %v5879_v50 = vpop.eup %5878  ;;  %v6787_v53 = vadd.f32 1e-05, %v575_v46  ;;  %v610_v2 = vmul.f32 %v6770_v27, %v609_v55 }
 0x14e   : > { %v616_v54 = vmul.f32 %v5879_v50, %v590_v31  ;;  %v533_v56 = vmul.f32 %v6785_v49, %v6785_v49  ;;  %v6792_v57 = vpop.eup %5880  ;;  %vm622_vm4 = vweird.f32 %v5879_v50  ;;  %vm651_vm15 = vweird.f32 %v6811_v9 }
 0x14f   : > { %5882 = vrsqrt.f32 %v6787_v53  ;;  %v636_v0 = vmul.f32 %v6792_v57, %v6776_v32  ;;  %vm623_vm6 = vmor %vm621_vm3, %vm622_vm4  ;;  %vm642_vm8 = vweird.f32 %v6792_v57  ;;  %vm631_vm9 = vweird.f32 %v6787_v53 }
 0x150   : > { %v617_v58 = vmul.f32 %v5879_v50, %v616_v54  ;;  %557 = vadd.xlane.f32.xlu1 %v533_v56  ;;  %vm643_vm11 = vmor %vm641_vm7, %vm642_vm8 }
 0x151   : > { %v552_v59 = vpop.xlane.xlu0 %551  ;;  %v479_v63 = vpop.xlane.xlu2 %478  ;;  %v637_v12 = vmul.f32 %v6792_v57, %v636_v0 }
 0x152   : > { %v618_v60 = vmul.f32 0.5, %v617_v58  ;;  %v473_v37 = vpop.xlane.xlu1 %472  ;;  %v578_v62 = vmul.f32 %v552_v59, %v6696_v14  ;;  %v505_v7 = vmul.f32 %v6696_v14, %v479_v63 }
 0x153   : > { %v502_v1 = vmul.f32 %v6696_v14, %v473_v37 }
 0x154   : > { %v619_v3 = vsub.f32 1.5, %v618_v60  ;;  %v6801_v4 = vadd.f32 1e-05, %v578_v62  ;;  %v6828_v20 = vsub.f32 %v6738_v43, %v505_v7 }
 0x155   : > { %v5883_v5 = vpop.eup %5882  ;;  %v6804_v6 = vsub.f32 %v6741_v44, %v502_v1  ;;  %v614_v44 = vsel %vm6807_vm5, %v6770_v27, %v610_v2  ;;  %v638_v27 = vmul.f32 0.5, %v637_v12 }
 0x156   : > { %v626_v10 = vmul.f32 %v5883_v5, %v6787_v53  ;;  %v620_v15 = vmul.f32 %v5879_v50, %v619_v3  ;;  %5884 = vrsqrt.f32 %v6801_v4  ;;  %v765_v23 = vmul.f32 %v614_v44, %v6699_v18 }
 0x157   : > { %v534_v13 = vmul.f32 %v6804_v6, %v6804_v6  ;;  %5886 = vrsqrt.f32 %v6811_v9  ;;  %v537_v43 = vmul.f32 %v6828_v20, %v6828_v20  ;;  %v639_v40 = vsub.f32 1.5, %v638_v27 }
 0x158   : > { %v627_v16 = vmul.f32 %v5883_v5, %v626_v10  ;;  %484 = vadd.xlane.f32.xlu1 %v6815_v11  ;;  %v624_v19 = vsel %vm623_vm6, %v5879_v50, %v620_v15  ;;  %vm632_vm10 = vweird.f32 %v5883_v5  ;;  %vm661_vm13 = vweird.f32 %v6801_v4 }
 0x159   : > { %559 = vadd.xlane.f32.xlu2 %v534_v13  ;;  %v6825_v17 = vpop.xlane.xlu0 %553  ;;  %v766_v24 = vmul.f32 %v624_v19, %v6707_v26  ;;  %v640_v50 = vmul.f32 %v6792_v57, %v639_v40  ;;  %vm633_vm12 = vmor %vm631_vm9, %vm632_vm10 }
 0x15a   : > { %v628_v21 = vmul.f32 0.5, %v627_v16  ;;  %v475_v22 = vpop.xlane.xlu1 %474 }
 0x15b   : > { %v503_v30 = vmul.f32 %v6696_v14, %v475_v22  ;;  %v781_v31 = vpack.c.bf16 %v766_v24, %v765_v23  ;;  %v644_v58 = vsel %vm643_vm11, %v6792_v57, %v640_v50 }
 0x15c   : > { %v629_v35 = vsub.f32 1.5, %v628_v21  ;;  %v5885_v38 = vpop.eup %5884  ;;  %v768_v62 = vmul.f32 %v644_v58, %v6705_v25 }
 0x15d   : > { %v6835_v36 = vsub.f32 %v6750_v47, %v503_v30  ;;  %965 = vmatmul.bf16.vlgmr.msra.gmra.mxu0 %v781_v31  ;;  %1014 = vmatmul.bf16.vlgmr.msra.gmra.mxu1 %v781_v31  ;;  %v5887_v26 = vpop.eup %5886  ;;  %v656_v47 = vmul.f32 %v5885_v38, %v6801_v4  ;;  %vm662_vm14 = vweird.f32 %v5885_v38  ;;  %v579_v4 = vmul.f32 %v6825_v17, %v6696_v14 }
 0x15e   : > { %1063 = vmatmul.bf16.vlgmr.msra.gmra.mxu2 %v781_v31  ;;  %v630_v29 = vmul.f32 %v5883_v5, %v629_v35  ;;  %v646_v46 = vmul.f32 %v5887_v26, %v6811_v9  ;;  %vm652_vm0 = vweird.f32 %v5887_v26  ;;  %vm663_vm1 = vmor %vm661_vm13, %vm662_vm14 }
 0x15f   : > { %v535_v18 = vmul.f32 %v6835_v36, %v6835_v36  ;;  %v657_v54 = vmul.f32 %v5885_v38, %v656_v47  ;;  %vm653_vm2 = vmor %vm651_vm15, %vm652_vm0  ;;  %v595_v10 = vadd.f32 1e-05, %v579_v4 }
 0x160   : > { %565 = vadd.xlane.f32.xlu1 %v537_v43  ;;  %v634_v53 = vsel %vm633_vm12, %v5883_v5, %v630_v29  ;;  %v647_v56 = vmul.f32 %v5887_v26, %v646_v46 }
 0x161   : > { %561 = vadd.xlane.f32.xlu2 %v535_v18  ;;  %v481_v41 = vpop.xlane.xlu0 %480  ;;  %v767_v59 = vmul.f32 %v634_v53, %v6721_v34  ;;  %v658_v60 = vmul.f32 0.5, %v657_v54  ;;  %5888 = vrsqrt.f32 %v595_v10  ;;  %vm671_vm3 = vweird.f32 %v595_v10 }
 0x162   : > { %v506_v42 = vmul.f32 %v6696_v14, %v481_v41  ;;  %v648_v63 = vmul.f32 0.5, %v647_v56 }
 0x163   : > { %v659_v1 = vsub.f32 1.5, %v658_v60 }
 0x164   : > { %v6849_v32 = vsub.f32 %v6754_v48, %v506_v42  ;;  %v782_v48 = vpack.c.bf16 %v768_v62, %v767_v59  ;;  %v649_v2 = vsub.f32 1.5, %v648_v63 }
 0x165   : > { %v660_v25 = vmul.f32 %v5885_v38, %v659_v1 }
 0x166   : > { %v538_v55 = vmul.f32 %v6849_v32, %v6849_v32  ;;  %v650_v34 = vmul.f32 %v5887_v26, %v649_v2 }
 0x167   : > { %v5889_v9 = vpop.eup %5888 }
 0x168   : > { %v654_v3 = vsel %vm653_vm2, %v5887_v26, %v650_v34  ;;  %v666_v12 = vmul.f32 %v5889_v9, %v595_v10  ;;  %vm672_vm4 = vweird.f32 %v5889_v9 }
 0x169   : > { %567 = vadd.xlane.f32.xlu2 %v538_v55  ;;  %v483_v61 = vpop.xlane.xlu0 %482  ;;  %v769_v7 = vmul.f32 %v654_v3, %v6719_v33  ;;  %vm6873_vm5 = vmor %vm671_vm3, %vm672_vm4 }
 0x16a   : > { %v507_v37 = vmul.f32 %v6696_v14, %v483_v61  ;;  %v667_v15 = vmul.f32 %v5889_v9, %v666_v12 }
 0x16c   : > { %v6858_v0 = vsub.f32 %v6759_v51, %v507_v37  ;;  %v664_v51 = vsel %vm663_vm1, %v5885_v38, %v660_v25 }
 0x16d   : > { %970 = vmatmul.bf16.gmra.mxu0 %v782_v48  ;;  %1019 = vmatmul.bf16.gmra.mxu1 %v782_v48  ;;  %v770_v5 = vmul.f32 %v664_v51, %v6732_v39  ;;  %v668_v39 = vmul.f32 0.5, %v667_v15 }
 0x16e   : > { %v539_v57 = vmul.f32 %v6858_v0, %v6858_v0  ;;  %1068 = vmatmul.bf16.gmra.mxu2 %v782_v48 }
 0x16f   : > { %v783_v8 = vpack.c.bf16 %v770_v5, %v769_v7  ;;  %v669_v22 = vsub.f32 1.5, %v668_v39 }
 0x170   : > { %569 = vadd.xlane.f32.xlu0 %v539_v57  ;;  %v821_v57 = vld [vmem:[#allocation7] sm:$0x7] }
 0x171   : > { %v564_v17 = vpop.xlane.xlu0 %563  ;;  %v670_v30 = vmul.f32 %v5889_v9, %v669_v22  ;;  %v6903_v34 = vperm.slane %v821_v57, 0  ;;  %v6905_v3 = vperm.slane %v821_v57, 1 }
 0x172   : > { %v584_v43 = vmul.f32 %v564_v17, %v6696_v14 }
 0x173   : > { %v674_v41 = vsel %vm6873_vm5, %v5889_v9, %v670_v30 }
 0x174   : > { %v6887_v54 = vadd.f32 1e-05, %v584_v43  ;;  %v771_v59 = vmul.f32 %v674_v41, %v6744_v45 }
 0x176   : > { %vm721_vm1 = vweird.f32 %v6887_v54 }
 0x17d   : > { %975 = vmatmul.bf16.gmra.mxu0 %v783_v8  ;;  %1024 = vmatmul.bf16.gmra.mxu1 %v783_v8 }
 0x17e   : > { %1073 = vmatmul.bf16.gmra.mxu2 %v783_v8 }
 0x1bb   : > { %v556_v13 = vpop.xlane.xlu1 %555 }
 0x1bc   : > { %v580_v44 = vmul.f32 %v556_v13, %v6696_v14 }
 0x1be   : > { %v596_v16 = vadd.f32 1e-05, %v580_v44 }
 0x1c0   : > { %5890 = vrsqrt.f32 %v596_v16  ;;  %vm681_vm7 = vweird.f32 %v596_v16 }
 0x1c3   : > { %v558_v19 = vpop.xlane.xlu1 %557 }
 0x1c4   : > { %v581_v33 = vmul.f32 %v558_v19, %v6696_v14 }
 0x1c6   : > { %v5891_v21 = vpop.eup %5890  ;;  %v6870_v24 = vadd.f32 1e-05, %v581_v33 }
 0x1c7   : > { %v676_v23 = vmul.f32 %v5891_v21, %v596_v16  ;;  %vm682_vm6 = vweird.f32 %v5891_v21 }
 0x1c8   : > { %5892 = vrsqrt.f32 %v6870_v24  ;;  %vm683_vm8 = vmor %vm681_vm7, %vm682_vm6  ;;  %vm691_vm10 = vweird.f32 %v6870_v24 }
 0x1c9   : > { %v677_v27 = vmul.f32 %v5891_v21, %v676_v23 }
 0x1cb   : > { %v678_v35 = vmul.f32 0.5, %v677_v27  ;;  %v485_v40 = vpop.xlane.xlu1 %484 }
 0x1cc   : > { %v560_v38 = vpop.xlane.xlu2 %559  ;;  %v508_v47 = vmul.f32 %v6696_v14, %v485_v40 }
 0x1cd   : > { %v679_v18 = vsub.f32 1.5, %v678_v35  ;;  %v582_v26 = vmul.f32 %v560_v38, %v6696_v14  ;;  %v6934_v35 = vperm.slane %v821_v57, 2 }
 0x1ce   : > { %v6882_v29 = vpop.eup %5892  ;;  %v6885_v46 = vsub.f32 %v6815_v11, %v508_v47 }
 0x1cf   : > { %v598_v42 = vadd.f32 1e-05, %v582_v26  ;;  %v680_v50 = vmul.f32 %v5891_v21, %v679_v18  ;;  %v686_v53 = vmul.f32 %v6882_v29, %v6870_v24  ;;  %vm692_vm9 = vweird.f32 %v6882_v29 }
 0x1d0   : > { %v540_v55 = vmul.f32 %v6885_v46, %v6885_v46  ;;  %vm6923_vm13 = vmor %vm691_vm10, %vm692_vm9 }
 0x1d1   : > { %5894 = vrsqrt.f32 %v598_v42  ;;  %v684_v56 = vsel %vm683_vm8, %v5891_v21, %v680_v50  ;;  %v687_v58 = vmul.f32 %v6882_v29, %v686_v53  ;;  %vm701_vm11 = vweird.f32 %v598_v42 }
 0x1d2   : > { %v772_v60 = vmul.f32 %v684_v56, %v6773_v28  ;;  %571 = vadd.xlane.f32.xlu1 %v540_v55  ;;  %5896 = vrsqrt.f32 %v6887_v54 }
 0x1d3   : > { %v688_v62 = vmul.f32 0.5, %v687_v58  ;;  %v566_v25 = vpop.xlane.xlu1 %565 }
 0x1d4   : > { %v562_v11 = vpop.xlane.xlu2 %561  ;;  %v784_v61 = vpack.c.bf16 %v772_v60, %v771_v59  ;;  %v585_v10 = vmul.f32 %v566_v25, %v6696_v14 }
 0x1d5   : > { %v583_v37 = vmul.f32 %v562_v11, %v6696_v14  ;;  %v689_v28 = vsub.f32 1.5, %v688_v62 }
 0x1d6   : > { %980 = vmatmul.bf16.gmra.mxu0 %v784_v61  ;;  %1029 = vmatmul.bf16.gmra.mxu1 %v784_v61  ;;  %v6927_v22 = vadd.f32 1e-05, %v585_v10 }
 0x1d7   : > { %v5895_v63 = vpop.eup %5894  ;;  %v6898_v48 = vadd.f32 1e-05, %v583_v37  ;;  %1078 = vmatmul.bf16.gmra.mxu2 %v784_v61  ;;  %v690_v13 = vmul.f32 %v6882_v29, %v689_v28 }
 0x1d8   : > { %v696_v1 = vmul.f32 %v5895_v63, %v598_v42  ;;  %v6901_v45 = vpop.eup %5896  ;;  %vm702_vm12 = vweird.f32 %v5895_v63  ;;  %vm731_vm7 = vweird.f32 %v6927_v22 }
 0x1d9   : > { %5898 = vrsqrt.f32 %v6898_v48  ;;  %v716_v4 = vmul.f32 %v6901_v45, %v6887_v54  ;;  %v694_v24 = vsel %vm6923_vm13, %v6882_v29, %v690_v13  ;;  %vm703_vm14 = vmor %vm701_vm11, %vm702_vm12  ;;  %vm711_vm15 = vweird.f32 %v6898_v48 }
 0x1da   : > { %v697_v2 = vmul.f32 %v5895_v63, %v696_v1  ;;  %v966_v51 = vpop.f32.mrf.mxu0  ;;  %v1015_v5 = vpop.f32.mrf.mxu1  ;;  %v773_v29 = vmul.f32 %v694_v24, %v6785_v49  ;;  %vm722_vm2 = vweird.f32 %v6901_v45 }
 0x1db   : > { %v967_v15 = vadd.f32 %v966_v51, %v6903_v34  ;;  %v1016_v16 = vadd.f32 %v1015_v5, %v6905_v3  ;;  %v717_v33 = vmul.f32 %v6901_v45, %v716_v4  ;;  %vm6977_vm4 = vmor %vm721_vm1, %vm722_vm2  ;;  %vm1211_vm1 = vcmask 261120  }
 0x1dc   : > { %v698_v7 = vmul.f32 0.5, %v697_v2  ;;  %v568_v8 = vpop.xlane.xlu2 %567 }
 0x1dd   : > { %v586_v9 = vmul.f32 %v568_v8, %v6696_v14  ;;  %v1104_v30 = vpack.c.bf16 %v967_v15, %v967_v15  ;;  %v1120_v31 = vpack.c.bf16 %v1016_v16, %v1016_v16  ;;  %v718_v41 = vmul.f32 0.5, %v717_v33 }
 0x1de   : > { %v699_v12 = vsub.f32 1.5, %v698_v7 }
 0x1df   : > { %v6913_v44 = vpop.eup %5898  ;;  %v6917_v39 = vadd.f32 1e-05, %v586_v9  ;;  %v1179_v55 = vunpack.c.l.b16 %v1104_v30  ;;  %v1199_v56 = vunpack.c.l.b16 %v1120_v31  ;;  %v719_v62 = vsub.f32 1.5, %v718_v41 }
 0x1e0   : > { %v706_v19 = vmul.f32 %v6913_v44, %v6898_v48  ;;  %v700_v27 = vmul.f32 %v5895_v63, %v699_v12  ;;  %vm712_vm0 = vweird.f32 %v6913_v44 }
 0x1e1   : > { %v1064_v17 = vpop.f32.mrf.mxu2  ;;  %5900 = vrsqrt.f32 %v6917_v39  ;;  %vm6966_vm3 = vmor %vm711_vm15, %vm712_vm0  ;;  %v720_v10 = vmul.f32 %v6901_v45, %v719_v62  ;;  %vm741_vm5 = vweird.f32 %v6917_v39 }
 0x1e2   : > { %v707_v23 = vmul.f32 %v6913_v44, %v706_v19  ;;  %v968_v43 = vpop.f32.mrf.mxu0  ;;  %v1017_v38 = vpop.f32.mrf.mxu1  ;;  %v704_v47 = vsel %vm703_vm14, %v5895_v63, %v700_v27  ;;  %5902 = vrsqrt.f32 %v6927_v22  ;;  %v1065_v60 = vadd.f32 %v1064_v17, %v6934_v35 }
 0x1e3   : > { %v969_v18 = vadd.f32 %v968_v43, %v6903_v34  ;;  %v1018_v26 = vadd.f32 %v1017_v38, %v6905_v3  ;;  %v774_v42 = vmul.f32 %v704_v47, %v6804_v6  ;;  %v724_v54 = vsel %vm6977_vm4, %v6901_v45, %v720_v10 }
 0x1e4   : > { %v708_v40 = vmul.f32 0.5, %v707_v23  ;;  %v1136_v51 = vpack.c.bf16 %v1065_v60, %v1065_v60 }
 0x1e5   : > { %v1105_v50 = vpack.c.bf16 %v969_v18, %v969_v18  ;;  %v1121_v53 = vpack.c.bf16 %v1018_v26, %v1018_v26  ;;  %v785_v58 = vpack.c.bf16 %v774_v42, %v773_v29 }
 0x1e6   : > { %v709_v59 = vsub.f32 1.5, %v708_v40  ;;  %v1595_v13 = vunpack.c.l.b16 %v1136_v51 }
 0x1e7   : > { %v1180_v11 = vunpack.c.l.b16 %v1105_v50  ;;  %v1200_v61 = vunpack.c.l.b16 %v1121_v53  ;;  %v6942_v37 = vpop.eup %5900  ;;  %985 = vmatmul.bf16.gmra.mxu0 %v785_v58  ;;  %1034 = vmatmul.bf16.gmra.mxu1 %v785_v58 }
 0x1e8   : > { %1083 = vmatmul.bf16.vlgmr.msra.gmra.mxu3 %v785_v58  ;;  %v6950_v1 = vpop.eup %5902  ;;  %v736_v25 = vmul.f32 %v6942_v37, %v6917_v39  ;;  %v710_v5 = vmul.f32 %v6913_v44, %v709_v59  ;;  %vm742_vm6 = vweird.f32 %v6942_v37 }
 0x1e9   : > { %v6946_v49 = vpack.c.b16 %v1180_v11, %v1179_v55  ;;  %v6948_v6 = vpack.c.b16 %v1200_v61, %v1199_v56  ;;  %v1066_v63 = vpop.f32.mrf.mxu2  ;;  %v726_v4 = vmul.f32 %v6950_v1, %v6927_v22  ;;  %vm732_vm8 = vweird.f32 %v6950_v1  ;;  %vm743_vm9 = vmor %vm741_vm5, %vm742_vm6 }
 0x1ea   : > { %v1067_v57 = vadd.f32 %v1066_v63, %v6934_v35  ;;  %v971_v28 = vpop.f32.mrf.mxu0  ;;  %v1020_v2 = vpop.f32.mrf.mxu1  ;;  %v737_v12 = vmul.f32 %v6942_v37, %v736_v25  ;;  %v714_v16 = vsel %vm6966_vm3, %v6913_v44, %v710_v5  ;;  %v776_v44 = vmul.f32 %v724_v54, %v6762_v52  ;;  %vm733_vm10 = vmor %vm731_vm7, %vm732_vm8 }
 0x1eb   : > { %1761 = vrot.lane.b32.xlu2 %v6948_v6, %s6486_s2  ;;  %1753 = vrot.lane.b32.xlu0 %v6946_v49, %s6486_s2  ;;  %v1021_v15 = vadd.f32 %v1020_v2, %v6905_v3  ;;  %v727_v19 = vmul.f32 %v6950_v1, %v726_v4  ;;  %v775_v24 = vmul.f32 %v714_v16, %v6835_v36  ;;  %v570_v54 = vpop.xlane.xlu0 %569  ;;  %vm1390_vm5 = vcmask 523264  }
 0x1ec   : > { %v1137_v8 = vpack.c.bf16 %v1067_v57, %v1067_v57  ;;  %2253 = vrot.lane.b32.xlu1 %v6948_v6, %s6487_s17  ;;  %v738_v27 = vmul.f32 0.5, %v737_v12  ;;  %v972_v36 = vadd.f32 %v971_v28, %v6903_v34 }
 0x1ed   : > { %v1122_v30 = vpack.c.bf16 %v1021_v15, %v1021_v15  ;;  %v728_v43 = vmul.f32 0.5, %v727_v19  ;;  %v786_v40 = vpack.c.bf16 %v776_v44, %v775_v24 }
 0x1ee   : > { %v1596_v48 = vunpack.c.l.b16 %v1137_v8  ;;  %v739_v18 = vsub.f32 1.5, %v738_v27  ;;  %v1106_v50 = vpack.c.bf16 %v972_v36, %v972_v36 }
 0x1ef   : > { %v1201_v26 = vunpack.c.l.b16 %v1122_v30  ;;  %v729_v41 = vsub.f32 1.5, %v728_v43 }
 0x1f0   : > { %v6987_v33 = vpack.c.b16 %v1596_v48, %v1595_v13  ;;  %v740_v53 = vmul.f32 %v6942_v37, %v739_v18  ;;  %v1181_v58 = vunpack.c.l.b16 %v1106_v50 }
 0x1f1   : > { %v1069_v21 = vpop.f32.mrf.mxu2  ;;  %v730_v22 = vmul.f32 %v6950_v1, %v729_v41 }
 0x1f2   : > { %v973_v23 = vpop.f32.mrf.mxu0  ;;  %v1022_v17 = vpop.f32.mrf.mxu1  ;;  %v1070_v59 = vadd.f32 %v1069_v21, %v6934_v35  ;;  %v744_v60 = vsel %vm743_vm9, %v6942_v37, %v740_v53 }
 0x1f3   : > { %v1023_v31 = vadd.f32 %v1022_v17, %v6905_v3  ;;  %2245 = vrot.lane.b32.xlu2 %v6946_v49, %s6487_s17  ;;  %2595 = vrot.lane.b32.xlu0 %v6987_v33, %s6487_s17  ;;  %v974_v38 = vadd.f32 %v973_v23, %v6903_v34  ;;  %v734_v63 = vsel %vm733_vm10, %v6950_v1, %v730_v22 }
 0x1f4   : > { %v778_v39 = vmul.f32 %v744_v60, %v6849_v32  ;;  %v1138_v57 = vpack.c.bf16 %v1070_v59, %v1070_v59  ;;  %v777_v28 = vmul.f32 %v734_v63, %v6828_v20  ;;  %v587_v17 = vmul.f32 %v570_v54, %v6696_v14 }
 0x1f5   : > { %v1123_v45 = vpack.c.bf16 %v1023_v31, %v1023_v31  ;;  %v1107_v29 = vpack.c.bf16 %v974_v38, %v974_v38  ;;  %v1225_v54 = vsel %vm1211_vm1, %v6948_v6, 0 }
 0x1f6   : > { %v787_v25 = vpack.c.bf16 %v778_v39, %v777_v28  ;;  %v1597_v37 = vunpack.c.l.b16 %v1138_v57  ;;  %v603_v24 = vadd.f32 1e-05, %v587_v17 }
 0x1f7   : > { %v1202_v47 = vunpack.c.l.b16 %v1123_v45  ;;  %990 = vmatmul.bf16.gmra.mxu0 %v786_v40  ;;  %1039 = vmatmul.bf16.gmra.mxu1 %v786_v40  ;;  %v1182_v55 = vunpack.c.l.b16 %v1107_v29 }
 0x1f8   : > { %1088 = vmatmul.bf16.gmra.mxu3 %v786_v40  ;;  %5904 = vrsqrt.f32 %v603_v24  ;;  %vm751_vm11 = vweird.f32 %v603_v24 }
 0x1f9   : > { %v7003_v42 = vpack.c.b16 %v1202_v47, %v1201_v26  ;;  %v1071_v52 = vpop.f32.mrf.mxu2  ;;  %v7018_v61 = vpack.c.b16 %v1182_v55, %v1181_v58 }
 0x1fa   : > { %v1072_v56 = vadd.f32 %v1071_v52, %v6934_v35  ;;  %v1025_v11 = vpop.f32.mrf.mxu1 }
 0x1fb   : > { %2745 = vrot.lane.b32.xlu2 %v6948_v6, %s6488_s23  ;;  %2255 = vrot.lane.b32.xlu0 %v7003_v42, %s6487_s17  ;;  %v1026_v5 = vadd.f32 %v1025_v11, %v6905_v3 }
 0x1fc   : > { %v1139_v62 = vpack.c.bf16 %v1072_v56, %v1072_v56 }
 0x1fd   : > { %v1124_v7 = vpack.c.bf16 %v1026_v5, %v1026_v5 }
 0x1fe   : > { %v1598_v2 = vunpack.c.l.b16 %v1139_v62  ;;  %v5905_v27 = vpop.eup %5904 }
 0x1ff   : > { %v1203_v4 = vunpack.c.l.b16 %v1124_v7  ;;  %v746_v30 = vmul.f32 %v5905_v27, %v603_v24  ;;  %vm752_vm12 = vweird.f32 %v5905_v27  ;;  %v976_v24 = vpop.f32.mrf.mxu0 }
 0x200   : > { %v7027_v51 = vpack.c.b16 %v1598_v2, %v1597_v37  ;;  %vm753_vm13 = vmor %vm751_vm11, %vm752_vm12  ;;  %vm3453_vm11 = vcmask 785408  }
 0x201   : > { %v1074_v10 = vpop.f32.mrf.mxu2  ;;  %v747_v38 = vmul.f32 %v5905_v27, %v746_v30 }
 0x202   : > { %v1027_v1 = vpop.f32.mrf.mxu1  ;;  %v1075_v13 = vadd.f32 %v1074_v10, %v6934_v35 }
 0x203   : > { %2737 = vrot.lane.b32.xlu2 %v6946_v49, %s6488_s23  ;;  %2247 = vrot.lane.b32.xlu0 %v7018_v61, %s6487_s17  ;;  %v1028_v32 = vadd.f32 %v1027_v1, %v6905_v3  ;;  %v748_v45 = vmul.f32 0.5, %v747_v38 }
 0x204   : > { %v1140_v16 = vpack.c.bf16 %v1075_v13, %v1075_v13 }
 0x205   : > { %v1125_v20 = vpack.c.bf16 %v1028_v32, %v1028_v32  ;;  %v749_v18 = vsub.f32 1.5, %v748_v45 }
 0x206   : > { %v1599_v21 = vunpack.c.l.b16 %v1140_v16 }
 0x207   : > { %995 = vmatmul.bf16.gmra.mxu0 %v787_v25  ;;  %1044 = vmatmul.bf16.gmra.mxu1 %v787_v25  ;;  %v1204_v8 = vunpack.c.l.b16 %v1125_v20  ;;  %v750_v29 = vmul.f32 %v5905_v27, %v749_v18 }
 0x208   : > { %1093 = vmatmul.bf16.gmra.mxu3 %v787_v25 }
 0x209   : > { %v7037_v9 = vpack.c.b16 %v1204_v8, %v1203_v4  ;;  %v1076_v48 = vpop.f32.mrf.mxu2  ;;  %v754_v55 = vsel %vm753_vm13, %v5905_v27, %v750_v29  ;;  %v977_v29 = vadd.f32 %v976_v24, %v6903_v34 }
 0x20a   : > { %v1077_v12 = vadd.f32 %v1076_v48, %v6934_v35  ;;  %v779_v11 = vmul.f32 %v754_v55, %v6858_v0  ;;  %v1228_v48 = vsel %vm1211_vm1, %v7003_v42, 0 }
 0x20b   : > { %2103 = vrot.lane.b32.xlu2 %v6987_v33, %s6486_s2  ;;  %2597 = vrot.lane.b32.xlu0 %v7027_v51, %s6487_s17  ;;  %v1231_v8 = vsel %vm1211_vm1, %v7037_v9, 0 }
 0x20c   : > { %v1141_v15 = vpack.c.bf16 %v1077_v12, %v1077_v12 }
 0x20e   : > { %v1600_v19 = vunpack.c.l.b16 %v1141_v15 }
 0x210   : > { %v7047_v23 = vpack.c.b16 %v1600_v19, %v1599_v21 }
 0x213   : > { %3089 = vrot.lane.b32.xlu0 %v7027_v51, %s6488_s23 }
 0x21b   : > { %1765 = vrot.lane.b32.xlu0 %v7037_v9, %s6486_s2 }
 0x223   : > { %2257 = vrot.lane.b32.xlu0 %v7037_v9, %s6487_s17 }
 0x22b   : > { %2749 = vrot.lane.b32.xlu0 %v7037_v9, %s6488_s23 }
 0x233   : > { %2107 = vrot.lane.b32.xlu0 %v7047_v23, %s6486_s2 }
 0x245   : > { %v572_v31 = vpop.xlane.xlu1 %571 }
 0x246   : > { %v588_v44 = vmul.f32 %v572_v31, %v6696_v14  ;;  %v978_v31 = vpop.f32.mrf.mxu0 }
 0x248   : > { %v604_v43 = vadd.f32 1e-05, %v588_v44 }
 0x24a   : > { %5906 = vrsqrt.f32 %v604_v43  ;;  %vm761_vm15 = vweird.f32 %v604_v43 }
 0x250   : > { %v5907_v40 = vpop.eup %5906 }
 0x251   : > { %v756_v36 = vmul.f32 %v5907_v40, %v604_v43  ;;  %vm762_vm14 = vweird.f32 %v5907_v40 }
 0x252   : > { %vm763_vm0 = vmor %vm761_vm15, %vm762_vm14 }
 0x253   : > { %v1030_v26 = vpop.f32.mrf.mxu1  ;;  %v757_v47 = vmul.f32 %v5907_v40, %v756_v36  ;;  %v981_v18 = vpop.f32.mrf.mxu0 }
 0x254   : > { %v1031_v50 = vadd.f32 %v1030_v26, %v6905_v3  ;;  %v979_v26 = vadd.f32 %v978_v31, %v6903_v34 }
 0x255   : > { %v758_v41 = vmul.f32 0.5, %v757_v47 }
 0x256   : > { %v1126_v58 = vpack.c.bf16 %v1031_v50, %v1031_v50  ;;  %v1109_v50 = vpack.c.bf16 %v979_v26, %v979_v26 }
 0x257   : > { %v759_v52 = vsub.f32 1.5, %v758_v41 }
 0x258   : > { %v1205_v28 = vunpack.c.l.b16 %v1126_v58 }
 0x259   : > { %v760_v56 = vmul.f32 %v5907_v40, %v759_v52 }
 0x25a   : > { %v1079_v53 = vpop.f32.mrf.mxu2 }
 0x25b   : > { %v1032_v22 = vpop.f32.mrf.mxu1  ;;  %v764_v60 = vsel %vm763_vm0, %v5907_v40, %v760_v56  ;;  %v1080_v39 = vadd.f32 %v1079_v53, %v6934_v35  ;;  %v1108_v56 = vpack.c.bf16 %v977_v29, %v977_v29 }
 0x25c   : > { %v1033_v59 = vadd.f32 %v1032_v22, %v6905_v3  ;;  %v780_v62 = vmul.f32 %v764_v60, %v6885_v46  ;;  %v983_v60 = vpop.f32.mrf.mxu0 }
 0x25d   : > { %v1142_v1 = vpack.c.bf16 %v1080_v39, %v1080_v39  ;;  %v982_v39 = vadd.f32 %v981_v18, %v6903_v34 }
 0x25e   : > { %v1127_v63 = vpack.c.bf16 %v1033_v59, %v1033_v59  ;;  %v788_v57 = vpack.c.bf16 %v780_v62, %v779_v11  ;;  %v1184_v59 = vunpack.c.l.b16 %v1109_v50  ;;  %v984_v62 = vadd.f32 %v983_v60, %v6903_v34 }
 0x25f   : > { %v1601_v5 = vunpack.c.l.b16 %v1142_v1  ;;  %v7125_v1 = vpop.permute.xlu0 %1753 }
 0x260   : > { %v1206_v2 = vunpack.c.l.b16 %v1127_v63  ;;  %1000 = vmatmul.bf16.gmra.mxu0 %v788_v57  ;;  %1049 = vmatmul.bf16.gmra.mxu1 %v788_v57 }
 0x261   : > { %1098 = vmatmul.bf16.gmra.mxu3 %v788_v57 }
 0x262   : > { %v7058_v25 = vpack.c.b16 %v1206_v2, %v1205_v28  ;;  %v1081_v37 = vpop.f32.mrf.mxu2  ;;  %v1111_v28 = vpack.c.bf16 %v984_v62, %v984_v62  ;;  %v1110_v2 = vpack.c.bf16 %v982_v39, %v982_v39 }
 0x263   : > { %v1082_v32 = vadd.f32 %v1081_v37, %v6934_v35 }
 0x264   : > { %v1234_v0 = vsel %vm1211_vm1, %v7058_v25, 0  ;;  %v1035_v22 = vpop.f32.mrf.mxu1  ;;  %v986_v57 = vpop.f32.mrf.mxu0  ;;  %v1186_v37 = vunpack.c.l.b16 %v1111_v28 }
 0x265   : > { %v1143_v46 = vpack.c.bf16 %v1082_v32, %v1082_v32  ;;  %1240 = vmatpush.bf16.xpose.msrb.mxu3 %v1234_v0 }
 0x267   : > { %v1602_v20 = vunpack.c.l.b16 %v1143_v46 }
 0x269   : > { %v7063_v7 = vpack.c.b16 %v1602_v20, %v1601_v5  ;;  %v7139_v20 = vpop.permute.xlu0 %2595 }
 0x26b   : > { %1627 = vmatpush.bf16.msrb.mxu0 %v7063_v7  ;;  %v1084_v4 = vpop.f32.mrf.mxu3 }
 0x26c   : > { %v1085_v10 = vadd.f32 %v1084_v4, %v6934_v35  ;;  %v1037_v63 = vpop.f32.mrf.mxu1  ;;  %v988_v5 = vpop.f32.mrf.mxu0 }
 0x26d   : > { %1241 = vmatpush.bf16.xpose.msrb.mxu3 %v1231_v8  ;;  %v1038_v8 = vadd.f32 %v1037_v63, %v6905_v3 }
 0x26e   : > { %v1144_v13 = vpack.c.bf16 %v1085_v10, %v1085_v10  ;;  %v1036_v10 = vadd.f32 %v1035_v22, %v6905_v3 }
 0x26f   : > { %1628 = vmatpush.bf16.msrb.mxu0 %v7047_v23 }
 0x270   : > { %v1680_v9 = vunpack.c.l.b16 %v1144_v13  ;;  %v1129_v13 = vpack.c.bf16 %v1038_v8, %v1038_v8 }
 0x273   : > { %1629 = vmatpush.bf16.msrb.mxu0 %v7027_v51  ;;  %v1086_v12 = vpop.f32.mrf.mxu3 }
 0x274   : > { %v1087_v15 = vadd.f32 %v1086_v12, %v6934_v35  ;;  %v1040_v32 = vpop.f32.mrf.mxu1  ;;  %v991_v12 = vpop.f32.mrf.mxu0 }
 0x275   : > { %1242 = vmatpush.bf16.xpose.msrb.mxu3 %v1228_v48  ;;  %v992_v26 = vadd.f32 %v991_v12, %v6903_v34 }
 0x276   : > { %v1145_v16 = vpack.c.bf16 %v1087_v15, %v1087_v15  ;;  %v1128_v15 = vpack.c.bf16 %v1036_v10, %v1036_v10 }
 0x277   : > { %1630 = vmatpush.bf16.msrb.mxu0 %v6987_v33 }
 0x278   : > { %v1681_v19 = vunpack.c.l.b16 %v1145_v16  ;;  %v989_v16 = vadd.f32 %v988_v5, %v6903_v34  ;;  %v1293_v24 = vunpack.c.l.b16 %v1128_v15 }
 0x27a   : > { %v7075_v21 = vpack.c.b16 %v1681_v19, %v1680_v9  ;;  %v1294_v9 = vunpack.c.l.b16 %v1129_v13 }
 0x27b   : > { %v1089_v17 = vpop.f32.mrf.mxu3 }
 0x27c   : > { %2668 = vrot.lane.b32.xlu1 %v7075_v21, %s6487_s17  ;;  %2176 = vrot.lane.b32.xlu2 %v7075_v21, %s6486_s2  ;;  %v1090_v30 = vadd.f32 %v1089_v17, %v6934_v35  ;;  %v1042_v4 = vpop.f32.mrf.mxu1  ;;  %v7153_v17 = vpop.permute.xlu0 %2255  ;;  %v7156_v31 = vpack.c.b16 %v1294_v9, %v1293_v24 }
 0x27d   : > { %1243 = vmatpush.bf16.xpose.msrb.mxu3 %v1225_v54  ;;  %v1043_v19 = vadd.f32 %v1042_v4, %v6905_v3  ;;  %v987_v54 = vadd.f32 %v986_v57, %v6903_v34 }
 0x27e   : > { %v1146_v38 = vpack.c.bf16 %v1090_v30, %v1090_v30 }
 0x280   : > { %v1682_v45 = vunpack.c.l.b16 %v1146_v38  ;;  %v993_v38 = vpop.f32.mrf.mxu0 }
 0x283   : > { %v1091_v27 = vpop.f32.mrf.mxu3 }
 0x284   : > { %5175 = vmatmul.msk.bf16.vlgmr.msrb.gmra.mxu3 %vm1211_vm1, %v6946_v49  ;;  %1763 = vrot.lane.b32.xlu1 %v7003_v42, %s6486_s2  ;;  %v1092_v6 = vadd.f32 %v1091_v27, %v6934_v35  ;;  %v1041_v27 = vadd.f32 %v1040_v32, %v6905_v3  ;;  %v1045_v30 = vpop.f32.mrf.mxu1  ;;  %v7170_v29 = vpop.permute.xlu0 %2247 }
 0x285   : > { %3087 = vrot.lane.b32.xlu2 %v6987_v33, %s6488_s23 }
 0x286   : > { %v1147_v44 = vpack.c.bf16 %v1092_v6, %v1092_v6  ;;  %v1113_v6 = vpack.c.bf16 %v989_v16, %v989_v16  ;;  %v7211_v16 = vpop.permute.xlu1 %2253 }
 0x288   : > { %v1683_v49 = vunpack.c.l.b16 %v1147_v44  ;;  %v996_v60 = vpop.f32.mrf.mxu0 }
 0x28a   : > { %v7096_v33 = vpack.c.b16 %v1683_v49, %v1682_v45  ;;  %v1130_v49 = vpack.c.bf16 %v1041_v27, %v1041_v27  ;;  %v1274_v45 = vunpack.c.l.b16 %v1113_v6  ;;  %v997_v27 = vadd.f32 %v996_v60, %v6903_v34 }
 0x28b   : > { %v1094_v43 = vpop.f32.mrf.mxu3  ;;  %v1152_v60 = vlaneseq }
 0x28c   : > { %2739 = vrot.lane.b32.xlu1 %v7018_v61, %s6488_s23  ;;  %v1095_v40 = vadd.f32 %v1094_v43, %v6934_v35  ;;  %v1112_v43 = vpack.c.bf16 %v987_v54, %v987_v54  ;;  %v7186_v39 = vpop.permute.xlu0 %2597 }
 0x28d   : > { %3160 = vrot.lane.b32.xlu2 %v7075_v21, %s6488_s23 }
 0x28e   : > { %v1148_v47 = vpack.c.bf16 %v1095_v40, %v1095_v40  ;;  %v994_v40 = vadd.f32 %v993_v38, %v6903_v34 }
 0x290   : > { %v1684_v53 = vunpack.c.l.b16 %v1148_v47  ;;  %v1295_v47 = vunpack.c.l.b16 %v1130_v49 }
 0x293   : > { %v1096_v36 = vpop.f32.mrf.mxu3 }
 0x294   : > { %5176 = vmatmul.msk.bf16.gmra.mxu3 %vm1211_vm1, %v7018_v61  ;;  %v1097_v41 = vadd.f32 %v1096_v36, %v6934_v35  ;;  %2178 = vrot.lane.b32.xlu1 %v7096_v33, %s6486_s2  ;;  %v1273_v36 = vunpack.c.l.b16 %v1112_v43  ;;  %v7200_v5 = vpop.permute.xlu0 %3089 }
 0x295   : > { %1755 = vrot.lane.b32.xlu2 %v7018_v61, %s6486_s2  ;;  %v1183_v61 = vunpack.c.l.b16 %v1108_v56 }
 0x296   : > { %v1149_v52 = vpack.c.bf16 %v1097_v41, %v1097_v41  ;;  %v7168_v41 = vpack.c.b16 %v1274_v45, %v1273_v36 }
 0x297   : > { %v1189_v11 = vpack.c.b16 %v1184_v59, %v1183_v61 }
 0x298   : > { %v1685_v55 = vunpack.c.l.b16 %v1149_v52  ;;  %v1115_v52 = vpack.c.bf16 %v994_v40, %v994_v40  ;;  %v1116_v40 = vpack.c.bf16 %v997_v27, %v997_v27 }
 0x29a   : > { %v7107_v58 = vpack.c.b16 %v1685_v55, %v1684_v53  ;;  %v1047_v53 = vpop.f32.mrf.mxu1  ;;  %v1114_v55 = vpack.c.bf16 %v992_v26, %v992_v26  ;;  %v1276_v22 = vunpack.c.l.b16 %v1115_v52 }
 0x29b   : > { %v1048_v59 = vadd.f32 %v1047_v53, %v6905_v3 }
 0x29c   : > { %2180 = vrot.lane.b32.xlu0 %v7107_v58, %s6486_s2  ;;  %3162 = vrot.lane.b32.xlu1 %v7096_v33, %s6488_s23  ;;  %v1275_v61 = vunpack.c.l.b16 %v1114_v55  ;;  %v7216_v24 = vpop.permute.xlu0 %1765 }
 0x29d   : > { %2747 = vrot.lane.b32.xlu2 %v7003_v42, %s6488_s23  ;;  %v7122_v42 = vpop.permute.xlu2 %1761  ;;  %v1133_v63 = vpack.c.bf16 %v1048_v59, %v1048_v59  ;;  %v1277_v59 = vunpack.c.l.b16 %v1116_v40 }
 0x29e   : > { %v7184_v62 = vpack.c.b16 %v1276_v22, %v1275_v61 }
 0x2a4   : > { %5177 = vmatmul.msk.bf16.gmra.mxu3 %vm1211_vm1, %v1189_v11  ;;  %3091 = vrot.lane.b32.xlu0 %v7047_v23, %s6488_s23  ;;  %v7230_v61 = vpop.permute.xlu0 %2257 }
 0x2a5   : > { %2105 = vrot.lane.b32.xlu2 %v7027_v51, %s6486_s2  ;;  %1757 = vrot.lane.b32.xlu1 %v1189_v11, %s6486_s2  ;;  %v1185_v51 = vunpack.c.l.b16 %v1110_v2  ;;  %v7132_v0 = vpop.permute.xlu2 %2245  ;;  %v1298_v2 = vunpack.c.l.b16 %v1133_v63 }
 0x2a7   : > { %v1190_v46 = vpack.c.b16 %v1186_v37, %v1185_v51  ;;  %v998_v51 = vpop.f32.mrf.mxu0 }
 0x2ac   : > { %3164 = vrot.lane.b32.xlu0 %v7107_v58, %s6488_s23 }
 0x2ad   : > { %2670 = vrot.lane.b32.xlu2 %v7096_v33, %s6487_s17  ;;  %2249 = vrot.lane.b32.xlu1 %v1189_v11, %s6487_s17  ;;  %v7143_v48 = vpop.permute.xlu2 %2745 }
 0x2b4   : > { %5178 = vmatmul.msk.bf16.gmra.mxu3 %vm1211_vm1, %v1190_v46  ;;  %2743 = vrot.lane.b32.xlu0 %v1190_v46, %s6488_s23 }
 0x2b5   : > { %2741 = vrot.lane.b32.xlu2 %v1189_v11, %s6488_s23  ;;  %2672 = vrot.lane.b32.xlu1 %v7107_v58, %s6487_s17  ;;  %v7158_v44 = vpop.permute.xlu2 %2737  ;;  %v1046_v11 = vadd.f32 %v1045_v30, %v6905_v3 }
 0x2b7   : > { %v1132_v57 = vpack.c.bf16 %v1046_v11, %v1046_v11 }
 0x2b9   : > { %v1297_v37 = vunpack.c.l.b16 %v1132_v57 }
 0x2bb   : > { %v1303_v32 = vpack.c.b16 %v1298_v2, %v1297_v37 }
 0x2bc   : > { %2601 = vrot.lane.b32.xlu0 %v7063_v7, %s6487_s17 }
 0x2bd   : > { %2599 = vrot.lane.b32.xlu2 %v7047_v23, %s6487_s17  ;;  %2251 = vrot.lane.b32.xlu1 %v1190_v46, %s6487_s17  ;;  %v1131_v23 = vpack.c.bf16 %v1043_v19, %v1043_v19  ;;  %v7180_v56 = vpop.permute.xlu2 %2103  ;;  %v999_v19 = vadd.f32 %v998_v51, %v6903_v34  ;;  %v1324_v37 = vsel %vm1211_vm1, %v1303_v32, 0  ;;  %v7239_v51 = vshrl.u32 %v1152_v60, 7 }
 0x2bf   : > { %v1296_v18 = vunpack.c.l.b16 %v1131_v23  ;;  %v1117_v23 = vpack.c.bf16 %v999_v19, %v999_v19 }
 0x2c1   : > { %v7172_v50 = vpack.c.b16 %v1296_v18, %v1295_v47  ;;  %v1278_v52 = vunpack.c.l.b16 %v1117_v23 }
 0x2c3   : > { %v7232_v63 = vpack.c.b16 %v1278_v52, %v1277_v59  ;;  %v1156_v59 = vadd.s32 24, %v7239_v51 }
 0x2c4   : > { %3093 = vrot.lane.b32.xlu0 %v7063_v7, %s6488_s23 }
 0x2c5   : > { %1767 = vrot.lane.b32.xlu2 %v7058_v25, %s6486_s2  ;;  %2814 = vrot.lane.b32.xlu1 %v7156_v31, %s6488_s23 }
 0x2cc   : > { %1822 = vrot.lane.b32.xlu0 %v7168_v41, %s6486_s2 }
 0x2cd   : > { %2259 = vrot.lane.b32.xlu2 %v7058_v25, %s6487_s17  ;;  %1832 = vrot.lane.b32.xlu1 %v7172_v50, %s6486_s2 }
 0x2d4   : > { %2324 = vrot.lane.b32.xlu0 %v7172_v50, %s6487_s17 }
 0x2d5   : > { %1759 = vrot.lane.b32.xlu2 %v1190_v46, %s6486_s2  ;;  %1824 = vrot.lane.b32.xlu1 %v7184_v62, %s6486_s2 }
 0x2d6   : > { %v7193_v28 = vpop.permute.xlu2 %2176 }
 0x2dc   : > { %2316 = vrot.lane.b32.xlu0 %v7184_v62, %s6487_s17 }
 0x2dd   : > { %2751 = vrot.lane.b32.xlu2 %v7058_v25, %s6488_s23  ;;  %v1050_v46 = vpop.f32.mrf.mxu1  ;;  %1834 = vrot.lane.b32.xlu1 %v1303_v32, %s6486_s2  ;;  %v1001_v10 = vpop.f32.mrf.mxu0 }
 0x2de   : > { %v1051_v4 = vadd.f32 %v1050_v46, %v6905_v3 }
 0x2df   : > { %v7202_v8 = vpop.permute.xlu2 %3087 }
 0x2e0   : > { %v1134_v13 = vpack.c.bf16 %v1051_v4, %v1051_v4 }
 0x2e2   : > { %v1299_v6 = vunpack.c.l.b16 %v1134_v13 }
 0x2e4   : > { %v1099_v12 = vpop.f32.mrf.mxu3  ;;  %2816 = vrot.lane.b32.xlu0 %v7172_v50, %s6488_s23 }
 0x2e5   : > { %2109 = vrot.lane.b32.xlu2 %v7063_v7, %s6486_s2  ;;  %v1052_v25 = vpop.f32.mrf.mxu1  ;;  %2326 = vrot.lane.b32.xlu1 %v1303_v32, %s6487_s17  ;;  %v1100_v7 = vadd.f32 %v1099_v12, %v6934_v35  ;;  %v1155_v12 = vadd.s32 16, %v7239_v51 }
 0x2e6   : > { %v1053_v15 = vadd.f32 %v1052_v25, %v6905_v3  ;;  %v1003_v3 = vpop.f32.mrf.mxu0 }
 0x2e7   : > { %v7213_v9 = vpop.permute.xlu2 %3160  ;;  %v1150_v49 = vpack.c.bf16 %v1100_v7, %v1100_v7  ;;  %v1004_v53 = vadd.f32 %v1003_v3, %v6903_v34  ;;  %v1318_v7 = vsel %vm1211_vm1, %v7156_v31, 0 }
 0x2e8   : > { %8991 = vst [vmem:[#allocation20_spill] sm:$0xff] %v7213_v9  ;;  %v1135_v54 = vpack.c.bf16 %v1053_v15, %v1053_v15  ;;  %v7256_v15 = vpop.permute.xlu0 %2749 }
 0x2e9   : > { %v1686_v55 = vunpack.c.l.b16 %v1150_v49  ;;  %v1119_v57 = vpack.c.bf16 %v1004_v53, %v1004_v53 }
 0x2ea   : > { %v1300_v30 = vunpack.c.l.b16 %v1135_v54 }
 0x2eb   : > { %v1280_v46 = vunpack.c.l.b16 %v1119_v57 }
 0x2ec   : > { %v1304_v43 = vpack.c.b16 %v1300_v30, %v1299_v6  ;;  %v1101_v38 = vpop.f32.mrf.mxu3 }
 0x2ed   : > { %v1102_v45 = vadd.f32 %v1101_v38, %v6934_v35  ;;  %2818 = vrot.lane.b32.xlu1 %v1303_v32, %s6488_s23  ;;  %v1002_v35 = vadd.f32 %v1001_v10, %v6903_v34  ;;  %v7245_v10 = vand.u32 127, %v1152_v60 }
 0x2ee   : > { %1836 = vrot.lane.b32.xlu0 %v1304_v43, %s6486_s2  ;;  %v1327_v18 = vsel %vm1211_vm1, %v1304_v43, 0  ;;  %v7224_v26 = vpop.permute.xlu1 %2668 }
 0x2ef   : > { %v1151_v36 = vpack.c.bf16 %v1102_v45, %v1102_v45  ;;  %v7226_v47 = vpop.permute.xlu2 %1755  ;;  %1333 = vmatpush.bf16.xpose.msra.mxu3 %v1327_v18  ;;  %v1118_v2 = vpack.c.bf16 %v1002_v35, %v1002_v35  ;;  %vm7250_vm2 = vcmp.ge.s32.totalorder %v1155_v12, %v7245_v10  ;;  %v1159_v45 = vadd.s32 48, %v7239_v51 }
 0x2f0   : > { %v7275_v27 = vpop.permute.xlu0 %2107  ;;  %vm7316_vm4 = vcmp.ge.s32.totalorder %v7239_v51, %v7245_v10  ;;  %v1154_v35 = vadd.s32 8, %v7239_v51  ;;  %vm7335_vm6 = vcmp.ge.s32.totalorder %v1156_v59, %v7245_v10 }
 0x2f1   : > { %v1687_v22 = vunpack.c.l.b16 %v1151_v36  ;;  %v1279_v25 = vunpack.c.l.b16 %v1118_v2  ;;  %vm7301_vm3 = vcmp.ge.s32.totalorder %v1159_v45, %v7245_v10 }
 0x2f2   : > { %vm7340_vm7 = vcmp.ge.s32.totalorder %v1154_v35, %v7245_v10 }
 0x2f3   : > { %v1691_v11 = vpack.c.b16 %v1687_v22, %v1686_v55  ;;  %v7254_v32 = vpack.c.b16 %v1280_v46, %v1279_v25 }
 0x2f5   : > { %2182 = vrot.lane.b32.xlu2 %v1691_v11, %s6486_s2  ;;  %1712 = vmatpush.bf16.msrb.mxu1 %v1691_v11 }
 0x2f6   : > { %2810 = vrot.lane.b32.xlu1 %v7232_v63, %s6488_s23  ;;  %2328 = vrot.lane.b32.xlu0 %v1304_v43, %s6487_s17  ;;  %v7243_v4 = vpop.permute.xlu1 %1763 }
 0x2f7   : > { %v7241_v34 = vpop.permute.xlu2 %2747  ;;  %1334 = vmatpush.bf16.xpose.msra.mxu3 %v1324_v37  ;;  %v1788_v37 = vsel %vm1211_vm1, %v7216_v24, 0 }
 0x2f9   : > { %1713 = vmatpush.bf16.msrb.mxu1 %v7107_v58  ;;  %v1321_v58 = vsel %vm1211_vm1, %v7172_v50, 0 }
 0x2fd   : > { %2674 = vrot.lane.b32.xlu2 %v1691_v11, %s6487_s17  ;;  %1714 = vmatpush.bf16.msrb.mxu1 %v7096_v33 }
 0x2fe   : > { %2812 = vrot.lane.b32.xlu1 %v7254_v32, %s6488_s23  ;;  %2820 = vrot.lane.b32.xlu0 %v1304_v43, %s6488_s23  ;;  %v7268_v54 = vpop.permute.xlu1 %2739 }
 0x2ff   : > { %v7265_v19 = vpop.permute.xlu2 %2105  ;;  %1335 = vmatpush.bf16.xpose.msra.mxu3 %v1321_v58  ;;  %v1157_v58 = vadd.s32 32, %v7239_v51 }
 0x301   : > { %1715 = vmatpush.bf16.msrb.mxu1 %v7075_v21  ;;  %vm7371_vm8 = vcmp.ge.s32.totalorder %v1157_v58, %v7245_v10 }
 0x305   : > { %3166 = vrot.lane.b32.xlu2 %v1691_v11, %s6488_s23 }
 0x306   : > { %2320 = vrot.lane.b32.xlu0 %v7254_v32, %s6487_s17  ;;  %v7279_v50 = vpop.permute.xlu1 %2178 }
 0x307   : > { %v1245_v33 = vpop.f32.mrf.mxu3  ;;  %v7277_v6 = vpop.permute.xlu2 %2670  ;;  %1336 = vmatpush.bf16.xpose.msra.mxu3 %v1318_v7 }
 0x308   : > { %v7322_v22 = vsel %vm7316_vm4, %v1245_v33, -1e+30  ;;  %v1158_v33 = vadd.s32 40, %v7239_v51 }
 0x309   : > { %v1391_v57 = vsel %vm1390_vm5, %v7322_v22, -inf }
 0x30a   : > { %vm7376_vm9 = vcmp.ge.s32.totalorder %v1158_v33, %v7245_v10 }
 0x30d   : > { %1830 = vrot.lane.b32.xlu2 %v7156_v31, %s6486_s2 }
 0x30e   : > { %5179 = vmatmul.msk.bf16.vlgmr.msra.gmra.mxu3 %vm1211_vm1, %v7168_v41  ;;  %v7287_v23 = vpop.permute.xlu0 %2180  ;;  %v7291_v43 = vpop.permute.xlu1 %3162 }
 0x30f   : > { %v1247_v21 = vpop.f32.mrf.mxu3  ;;  %v7285_v30 = vpop.permute.xlu2 %2741 }
 0x310   : > { %v7352_v24 = vsel %vm7340_vm7, %v1247_v21, -1e+30 }
 0x311   : > { %v1394_v21 = vsel %vm1390_vm5, %v7352_v24, -inf }
 0x315   : > { %2322 = vrot.lane.b32.xlu2 %v7156_v31, %s6487_s17 }
 0x316   : > { %v7297_v3 = vpop.permute.xlu0 %3091 }
 0x317   : > { %v7293_v38 = vpop.f32.mrf.mxu3  ;;  %v7295_v49 = vpop.permute.xlu2 %2599 }
 0x318   : > { %v7311_v52 = vpop.permute.xlu1 %1757 }
 0x31d   : > { %2314 = vrot.lane.b32.xlu2 %v7168_v41, %s6487_s17 }
 0x31e   : > { %5180 = vmatmul.msk.bf16.gmra.mxu3 %vm1211_vm1, %v7184_v62  ;;  %v7309_v36 = vpop.permute.xlu0 %3164 }
 0x31f   : > { %v1252_v31 = vpop.f32.mrf.mxu3  ;;  %v1768_v18 = vpop.permute.xlu2 %1767 }
 0x320   : > { %v1791_v53 = vsel %vm1211_vm1, %v1768_v18, 0  ;;  %v7344_v12 = vpop.permute.xlu1 %2249  ;;  %v7348_v25 = vsel %vm7335_vm6, %v1252_v31, -1e+30 }
 0x321   : > { %1797 = vmatpush.bf16.xpose.msrb.mxu2 %v1791_v53  ;;  %v1400_v31 = vsel %vm1390_vm5, %v7348_v25, -inf }
 0x325   : > { %2806 = vrot.lane.b32.xlu2 %v7168_v41, %s6488_s23 }
 0x326   : > { %v7330_v2 = vpop.permute.xlu0 %2743 }
 0x327   : > { %v1255_v60 = vpop.f32.mrf.mxu3  ;;  %v2260_v11 = vpop.permute.xlu2 %2259 }
 0x328   : > { %1392 = vmax.xlane.f32.xlu1 %v1391_v57  ;;  %v7380_v35 = vpop.permute.xlu1 %2672  ;;  %v7384_v57 = vsel %vm7371_vm8, %v1255_v60, -1e+30  ;;  %v1782_v60 = vsel %vm1211_vm1, %v7122_v42, 0 }
 0x329   : > { %1798 = vmatpush.bf16.xpose.msrb.mxu2 %v1788_v37 }
 0x32d   : > { %2808 = vrot.lane.b32.xlu2 %v7184_v62, %s6488_s23  ;;  %v1785_v62 = vsel %vm1211_vm1, %v7243_v4, 0 }
 0x32e   : > { %5181 = vmatmul.msk.bf16.gmra.mxu3 %vm1211_vm1, %v7232_v63  ;;  %v7364_v18 = vpop.permute.xlu0 %2601 }
 0x32f   : > { %v1257_v7 = vpop.f32.mrf.mxu3  ;;  %v7360_v45 = vpop.permute.xlu2 %1759 }
 0x330   : > { %1401 = vmax.xlane.f32.xlu1 %v1400_v31  ;;  %1395 = vmax.xlane.f32.xlu0 %v1394_v21  ;;  %v7388_v4 = vsel %vm7376_vm9, %v1257_v7, -1e+30  ;;  %v1403_v21 = vsel %vm1390_vm5, %v7384_v57, -inf  ;;  %v1160_v7 = vadd.s32 56, %v7239_v51  ;;  %v7411_v9 = vpop.permute.xlu1 %2251 }
 0x331   : > { %1799 = vmatpush.bf16.xpose.msrb.mxu2 %v1785_v62  ;;  %v1406_v33 = vsel %vm1390_vm5, %v7388_v4, -inf  ;;  %v2283_v62 = vsel %vm1211_vm1, %v2260_v11, 0 }
 0x332   : > { %vm7405_vm10 = vcmp.ge.s32.totalorder %v1160_v7, %v7245_v10  ;;  %v2280_v10 = vsel %vm1211_vm1, %v7230_v61, 0 }
 0x335   : > { %1826 = vrot.lane.b32.xlu2 %v7232_v63, %s6486_s2 }
 0x336   : > { %v7396_v31 = vpop.permute.xlu0 %3093 }
 0x337   : > { %v7392_v37 = vpop.f32.mrf.mxu3  ;;  %v2752_v58 = vpop.permute.xlu2 %2751 }
 0x338   : > { %1407 = vmax.xlane.f32.xlu1 %v1406_v33  ;;  %1404 = vmax.xlane.f32.xlu0 %v1403_v21 }
 0x339   : > { %1800 = vmatpush.bf16.xpose.msrb.mxu2 %v1782_v60  ;;  %v7430_v60 = vpop.permute.xlu1 %2814 }
 0x33d   : > { %2318 = vrot.lane.b32.xlu2 %v7232_v63, %s6487_s17 }
 0x33e   : > { %5182 = vmatmul.msk.bf16.gmra.mxu3 %vm1211_vm1, %v7254_v32  ;;  %v7415_v51 = vpop.permute.xlu0 %1822 }
 0x33f   : > { %v1262_v42 = vpop.f32.mrf.mxu3  ;;  %v2110_v33 = vpop.permute.xlu2 %2109 }
 0x340   : > { %v7419_v11 = vsel %vm7405_vm10, %v1262_v42, -1e+30  ;;  %5191 = vmatmul.msk.bf16.vlgmr.msrb.gmra.mxu2 %vm1211_vm1, %v7125_v1  ;;  %2131 = vmatpush.bf16.msra.mxu0 %v2110_v33  ;;  %v2277_v1 = vsel %vm1211_vm1, %v7153_v17, 0  ;;  %v2769_v42 = vsel %vm1211_vm1, %v7241_v34, 0 }
 0x341   : > { %2289 = vmatpush.bf16.xpose.msra.mxu2 %v2283_v62  ;;  %v1412_v63 = vsel %vm1390_vm5, %v7419_v11, -inf  ;;  %v1833_v62 = vpop.permute.xlu1 %1832 }
 0x342   : > { %1413 = vmax.xlane.f32.xlu1 %v1412_v63  ;;  %v1854_v34 = vsel %vm1211_vm1, %v1833_v62, 0 }
 0x344   : > { %2132 = vmatpush.bf16.msra.mxu0 %v7275_v27  ;;  %v2775_v27 = vsel %vm1211_vm1, %v2752_v58, 0 }
 0x345   : > { %1828 = vrot.lane.b32.xlu2 %v7254_v32, %s6486_s2  ;;  %v2274_v32 = vsel %vm1211_vm1, %v7211_v16, 0 }
 0x346   : > { %v2325_v21 = vpop.permute.xlu0 %2324 }
 0x348   : > { %2133 = vmatpush.bf16.msra.mxu0 %v7265_v19 }
 0x349   : > { %2290 = vmatpush.bf16.xpose.msra.mxu2 %v2280_v10  ;;  %v1825_v19 = vpop.permute.xlu1 %1824 }
 0x34c   : > { %2134 = vmatpush.bf16.msra.mxu0 %v7180_v56 }
 0x34e   : > { %v7436_v7 = vpop.permute.xlu0 %2316 }
 0x34f   : > { %v2183_v61 = vpop.permute.xlu2 %2182 }
 0x350   : > { %5192 = vmatmul.msk.bf16.gmra.mxu2 %vm1211_vm1, %v7226_v47  ;;  %2204 = vmatpush.bf16.msra.mxu1 %v2183_v61  ;;  %v2772_v47 = vsel %vm1211_vm1, %v7256_v15, 0 }
 0x351   : > { %2291 = vmatpush.bf16.xpose.msra.mxu2 %v2277_v1 }
 0x354   : > { %2205 = vmatpush.bf16.msra.mxu1 %v7287_v23 }
 0x356   : > { %v7446_v56 = vpop.permute.xlu0 %2816 }
 0x357   : > { %v7444_v17 = vpop.permute.xlu2 %2674 }
 0x358   : > { %2206 = vmatpush.bf16.msra.mxu1 %v7279_v50  ;;  %v1835_v50 = vpop.permute.xlu1 %1834 }
 0x359   : > { %2292 = vmatpush.bf16.xpose.msra.mxu2 %v2274_v32  ;;  %v1857_v15 = vsel %vm1211_vm1, %v1835_v50, 0 }
 0x35c   : > { %2207 = vmatpush.bf16.msra.mxu1 %v7193_v28  ;;  %v7463_v28 = vsel %vm7250_vm2, %v7293_v38, -1e+30  ;;  %v7475_v38 = vsel %vm7301_vm3, %v7392_v37, -1e+30 }
 0x35d   : > { %v1397_v63 = vsel %vm1390_vm5, %v7463_v28, -inf }
 0x35f   : > { %v7454_v16 = vpop.permute.xlu2 %3166 }
 0x360   : > { %5193 = vmatmul.msk.bf16.gmra.mxu2 %vm1211_vm1, %v7311_v52  ;;  %v1837_v58 = vpop.permute.xlu0 %1836  ;;  %v2766_v52 = vsel %vm1211_vm1, %v7143_v48, 0  ;;  %v2327_v1 = vpop.permute.xlu1 %2326  ;;  %v1409_v48 = vsel %vm1390_vm5, %v7475_v38, -inf }
 0x361   : > { %2781 = vmatpush.bf16.xpose.msrb.mxu2 %v2775_v27  ;;  %v1860_v23 = vsel %vm1211_vm1, %v1837_v58, 0  ;;  %v2349_v37 = vsel %vm1211_vm1, %v2327_v1, 0 }
 0x362   : > { %1866 = vmatpush.bf16.xpose.msrb.mxu3 %v1860_v23  ;;  %v2346_v23 = vsel %vm1211_vm1, %v2325_v21, 0 }
 0x367   : > { %v1831_v33 = vpop.permute.xlu2 %1830 }
 0x368   : > { %v2329_v61 = vpop.permute.xlu0 %2328  ;;  %v1851_v32 = vsel %vm1211_vm1, %v1831_v33, 0  ;;  %v2819_v62 = vpop.permute.xlu1 %2818 }
 0x369   : > { %2782 = vmatpush.bf16.xpose.msrb.mxu2 %v2772_v47  ;;  %v2352_v27 = vsel %vm1211_vm1, %v2329_v61, 0  ;;  %v2841_v1 = vsel %vm1211_vm1, %v2819_v62, 0 }
 0x36a   : > { %1867 = vmatpush.bf16.xpose.msrb.mxu3 %v1857_v15 }
 0x36e   : > { %1398 = vmax.xlane.f32.xlu2 %v1397_v63 }
 0x36f   : > { %v2323_v10 = vpop.permute.xlu2 %2322 }
 0x370   : > { %5194 = vmatmul.msk.bf16.gmra.mxu2 %vm1211_vm1, %v7360_v45  ;;  %v7490_v58 = vpop.permute.xlu1 %2810  ;;  %v2343_v15 = vsel %vm1211_vm1, %v2323_v10, 0 }
 0x371   : > { %2783 = vmatpush.bf16.xpose.msrb.mxu2 %v2769_v42  ;;  %v2821_v42 = vpop.permute.xlu0 %2820 }
 0x372   : > { %1868 = vmatpush.bf16.xpose.msrb.mxu3 %v1854_v34  ;;  %v2844_v21 = vsel %vm1211_vm1, %v2821_v42, 0  ;;  %v2838_v42 = vsel %vm1211_vm1, %v7446_v56, 0  ;;  %v2835_v56 = vsel %vm1211_vm1, %v7430_v60, 0 }
 0x376   : > { %1410 = vmax.xlane.f32.xlu2 %v1409_v48 }
 0x377   : > { %v7481_v45 = vpop.permute.xlu2 %2314 }
 0x378   : > { %v7503_v33 = vpop.permute.xlu1 %2812 }
 0x379   : > { %2784 = vmatpush.bf16.xpose.msrb.mxu2 %v2766_v52  ;;  %v7512_v63 = vpop.permute.xlu0 %2320 }
 0x37a   : > { %1869 = vmatpush.bf16.xpose.msrb.mxu3 %v1851_v32 }
 0x37f   : > { %v7488_v47 = vpop.permute.xlu2 %2806 }
 0x380   : > { %5207 = vmatmul.msk.bf16.vlgmr.msra.gmra.mxu2 %vm1211_vm1, %v7132_v0 }
 0x381   : > { %5195 = vmatmul.msk.bf16.vlgmr.msrb.gmra.mxu3 %vm1211_vm1, %v7415_v51 }
 0x382   : > { %2358 = vmatpush.bf16.xpose.msra.mxu3 %v2352_v27 }
 0x387   : > { %v7496_v0 = vpop.permute.xlu2 %2808 }
 0x38a   : > { %2359 = vmatpush.bf16.xpose.msra.mxu3 %v2349_v37 }
 0x38f   : > { %v1827_v48 = vpop.permute.xlu2 %1826 }
 0x390   : > { %5208 = vmatmul.msk.bf16.gmra.mxu2 %vm1211_vm1, %v7170_v29 }
 0x391   : > { %v1338_v50 = vpop.f32.mrf.mxu3  ;;  %5196 = vmatmul.msk.bf16.gmra.mxu3 %vm1211_vm1, %v1825_v19 }
 0x392   : > { %2360 = vmatpush.bf16.xpose.msra.mxu3 %v2346_v23  ;;  %v7500_v51 = vsel %vm7316_vm4, %v1338_v50, -1e+30 }
 0x393   : > { %v1415_v52 = vsel %vm1390_vm5, %v7500_v51, -inf }
 0x394   : > { %1416 = vmax.xlane.f32.xlu1 %v1415_v52 }
 0x399   : > { %v1340_v29 = vpop.f32.mrf.mxu3 }
 0x39a   : > { %2361 = vmatpush.bf16.xpose.msra.mxu3 %v2343_v15  ;;  %v7510_v19 = vsel %vm7340_vm7, %v1340_v29, -1e+30 }
 0x39b   : > { %v1393_v34 = vpop.xlane.xlu1 %1392  ;;  %v1418_v10 = vsel %vm1390_vm5, %v7510_v19, -inf }
 0x39c   : > { %1419 = vmax.xlane.f32.xlu0 %v1418_v10  ;;  %v1439_v61 = vsub.f32 %v7322_v22, %v1393_v34 }
 0x39e   : > { %v1455_v32 = vmul.f32 1.442695, %v1439_v61 }
 0x3a0   : > { %5209 = vmatmul.msk.bf16.gmra.mxu2 %vm1211_vm1, %v7344_v12  ;;  %5908 = vpow2.f32 %v1455_v32  ;;  %v7530_v12 = vpop.permute.xlu2 %2318 }
 0x3a1   : > { %v1343_v27 = vpop.f32.mrf.mxu3  ;;  %5197 = vmatmul.msk.bf16.gmra.mxu3 %vm1211_vm1, %v1827_v48 }
 0x3a2   : > { %2850 = vmatpush.bf16.xpose.msrb.mxu3 %v2844_v21  ;;  %v7523_v37 = vsel %vm7250_vm2, %v1343_v27, -1e+30 }
 0x3a3   : > { %v1396_v23 = vpop.xlane.xlu0 %1395  ;;  %v1421_v62 = vsel %vm1390_vm5, %v7523_v37, -inf }
 0x3a4   : > { %v1440_v22 = vsub.f32 %v7352_v24, %v1396_v23  ;;  %1422 = vmax.xlane.f32.xlu0 %v1421_v62 }
 0x3a6   : > { %v1457_v50 = vmul.f32 1.442695, %v1440_v22  ;;  %v5909_v52 = vpop.eup %5908 }
 0x3a7   : > { %v1551_v24 = vpack.c.bf16 %v5909_v52, %v5909_v52 }
 0x3a8   : > { %5910 = vpow2.f32 %v1457_v50  ;;  %v1829_v10 = vpop.permute.xlu2 %1828 }
 0x3a9   : > { %v1345_v15 = vpop.f32.mrf.mxu3  ;;  %v1575_v60 = vunpack.c.l.b16 %v1551_v24 }
 0x3aa   : > { %2851 = vmatpush.bf16.xpose.msrb.mxu3 %v2841_v1  ;;  %v7534_v21 = vsel %vm7335_vm6, %v1345_v15, -1e+30 }
 0x3ab   : > { %v1424_v29 = vsel %vm1390_vm5, %v7534_v21, -inf }
 0x3ac   : > { %1425 = vmax.xlane.f32.xlu1 %v1424_v29 }
 0x3ae   : > { %v7540_v34 = vpop.eup %5910 }
 0x3af   : > { %v1552_v1 = vpack.c.bf16 %v7540_v34, %v7540_v34 }
 0x3b0   : > { %5210 = vmatmul.msk.bf16.gmra.mxu2 %vm1211_vm1, %v7411_v9 }
 0x3b1   : > { %v1348_v48 = vpop.f32.mrf.mxu3  ;;  %5198 = vmatmul.msk.bf16.gmra.mxu3 %vm1211_vm1, %v1829_v10  ;;  %v1576_v32 = vunpack.c.l.b16 %v1552_v1 }
 0x3b2   : > { %2852 = vmatpush.bf16.xpose.msrb.mxu3 %v2838_v42  ;;  %v7549_v61 = vsel %vm7371_vm8, %v1348_v48, -1e+30 }
 0x3b3   : > { %v1427_v27 = vsel %vm1390_vm5, %v7549_v61, -inf  ;;  %v1583_v23 = vpack.c.b16 %v1576_v32, %v1575_v60 }
 0x3b4   : > { %1428 = vmax.xlane.f32.xlu1 %v1427_v27 }
 0x3b5   : > { %5183 = vmatmul.msk.bf16.vlgmr.msrb.gmra.mxu0 %vm1390_vm5, %v1583_v23 }
 0x3b6   : > { %2623 = vmatpush.bf16.msrb.mxu0 %v7364_v18 }
 0x3b9   : > { %v1350_v62 = vpop.f32.mrf.mxu3 }
 0x3ba   : > { %2853 = vmatpush.bf16.xpose.msrb.mxu3 %v2835_v56  ;;  %v7557_v9 = vsel %vm7376_vm9, %v1350_v62, -1e+30  ;;  %2624 = vmatpush.bf16.msrb.mxu0 %v7295_v49 }
 0x3bb   : > { %v1430_v42 = vsel %vm1390_vm5, %v7557_v9, -inf }
 0x3bc   : > { %1431 = vmax.xlane.f32.xlu0 %v1430_v42 }
 0x3be   : > { %2625 = vmatpush.bf16.msrb.mxu0 %v7186_v39 }
 0x3c0   : > { %5223 = vmatmul.msk.bf16.vlgmr.msrb.gmra.mxu2 %vm1211_vm1, %v7158_v44 }
 0x3c1   : > { %v1353_v22 = vpop.f32.mrf.mxu3  ;;  %5211 = vmatmul.msk.bf16.vlgmr.msra.gmra.mxu3 %vm1211_vm1, %v7481_v45 }
 0x3c2   : > { %v7569_v18 = vsel %vm7301_vm3, %v1353_v22, -1e+30  ;;  %2626 = vmatpush.bf16.msrb.mxu0 %v7139_v20  ;;  %v1487_v20 = vsel %vm1390_vm5, %v5909_v52, 0.0  ;;  %v1402_v52 = vpop.xlane.xlu1 %1401 }
 0x3c3   : > { %v1802_v50 = vpop.f32.mrf.mxu2  ;;  %v1433_v49 = vsel %vm1390_vm5, %v7569_v18, -inf  ;;  %v1442_v48 = vsub.f32 %v7348_v25, %v1402_v52  ;;  %v1405_v25 = vpop.xlane.xlu0 %1404 }
 0x3c4   : > { %v7576_v39 = vsel %vm7316_vm4, %v1802_v50, -1e+30  ;;  %1434 = vmax.xlane.f32.xlu0 %v1433_v49  ;;  %v1443_v49 = vsub.f32 %v7384_v57, %v1405_v25 }
 0x3c5   : > { %v1907_v44 = vsel %vm1390_vm5, %v7576_v39, -inf  ;;  %v1461_v23 = vmul.f32 1.442695, %v1442_v48 }
 0x3c6   : > { %1908 = vmax.xlane.f32.xlu2 %v1907_v44 }
 0x3c7   : > { %5912 = vpow2.f32 %v1461_v23 }
 0x3c9   : > { %v1355_v45 = vpop.f32.mrf.mxu3 }
 0x3ca   : > { %v7582_v15 = vsel %vm7405_vm10, %v1355_v45, -1e+30  ;;  %v1408_v62 = vpop.xlane.xlu1 %1407 }
 0x3cb   : > { %v1804_v29 = vpop.f32.mrf.mxu2  ;;  %v1436_v56 = vsel %vm1390_vm5, %v7582_v15, -inf  ;;  %v1444_v57 = vsub.f32 %v7388_v4, %v1408_v62 }
 0x3cc   : > { %1488 = vadd.xlane.f32.xlu0 %v1487_v20  ;;  %v7593_v24 = vsel %vm7340_vm7, %v1804_v29, -1e+30  ;;  %v1463_v20 = vmul.f32 1.442695, %v1443_v49 }
 0x3cd   : > { %v1910_v1 = vsel %vm1390_vm5, %v7593_v24, -inf  ;;  %v1465_v25 = vmul.f32 1.442695, %v1444_v57 }
 0x3ce   : > { %1437 = vmax.xlane.f32.xlu2 %v1436_v56 }
 0x3d0   : > { %5224 = vmatmul.msk.bf16.gmra.mxu2 %vm1211_vm1, %v7268_v54 }
 0x3d1   : > { %5212 = vmatmul.msk.bf16.gmra.mxu3 %vm1211_vm1, %v7436_v7 }
 0x3d3   : > { %v1807_v10 = vpop.f32.mrf.mxu2 }
 0x3d4   : > { %v7600_v60 = vsel %vm7250_vm2, %v1807_v10, -1e+30 }
 0x3d5   : > { %v1913_v27 = vsel %vm1390_vm5, %v7600_v60, -inf }
 0x3d6   : > { %1911 = vmax.xlane.f32.xlu2 %v1910_v1 }
 0x3db   : > { %v1809_v54 = vpop.f32.mrf.mxu2 }
 0x3dc   : > { %v7604_v7 = vsel %vm7335_vm6, %v1809_v54, -1e+30 }
 0x3dd   : > { %v1916_v32 = vsel %vm1390_vm5, %v7604_v7, -inf }
 0x3de   : > { %1917 = vmax.xlane.f32.xlu0 %v1916_v32  ;;  %1914 = vmax.xlane.f32.xlu2 %v1913_v27 }
 0x3e0   : > { %5225 = vmatmul.msk.bf16.gmra.mxu2 %vm1211_vm1, %v7285_v30  ;;  %v1490_v30 = vsel %vm1390_vm5, %v7540_v34, 0.0 }
 0x3e1   : > { %v1399_v42 = vpop.xlane.xlu2 %1398  ;;  %5213 = vmatmul.msk.bf16.gmra.mxu3 %vm1211_vm1, %v7530_v12  ;;  %v5913_v12 = vpop.eup %5912 }
 0x3e2   : > { %v1441_v22 = vsub.f32 %v7463_v28, %v1399_v42  ;;  %v1414_v28 = vpop.xlane.xlu1 %1413  ;;  %v1554_v52 = vpack.c.bf16 %v5913_v12, %v5913_v12  ;;  %v1496_v34 = vsel %vm1390_vm5, %v5913_v12, 0.0 }
 0x3e3   : > { %v1812_v50 = vpop.f32.mrf.mxu2  ;;  %v1446_v54 = vsub.f32 %v7419_v11, %v1414_v28 }
 0x3e4   : > { %v1459_v44 = vmul.f32 1.442695, %v1441_v22  ;;  %v7618_v45 = vsel %vm7371_vm8, %v1812_v50, -1e+30  ;;  %v1578_v4 = vunpack.c.l.b16 %v1554_v52 }
 0x3e5   : > { %v1919_v29 = vsel %vm1390_vm5, %v7618_v45, -inf  ;;  %v1469_v62 = vmul.f32 1.442695, %v1446_v54 }
 0x3e6   : > { %5914 = vpow2.f32 %v1459_v44  ;;  %1920 = vmax.xlane.f32.xlu1 %v1919_v29  ;;  %1491 = vadd.xlane.f32.xlu2 %v1490_v30 }
 0x3e7   : > { %5916 = vpow2.f32 %v1463_v20 }
 0x3e9   : > { %v1411_v56 = vpop.xlane.xlu2 %1410 }
 0x3ea   : > { %v1445_v10 = vsub.f32 %v7475_v38, %v1411_v56 }
 0x3eb   : > { %v1814_v1 = vpop.f32.mrf.mxu2 }
 0x3ec   : > { %v5915_v48 = vpop.eup %5914  ;;  %v1467_v32 = vmul.f32 1.442695, %v1445_v10  ;;  %v7636_v50 = vsel %vm7376_vm9, %v1814_v1, -1e+30 }
 0x3ed   : > { %v1493_v27 = vsel %vm1390_vm5, %v5915_v48, 0.0  ;;  %v1553_v23 = vpack.c.bf16 %v5915_v48, %v5915_v48  ;;  %v5917_v38 = vpop.eup %5916 }
 0x3ee   : > { %5918 = vpow2.f32 %v1467_v32  ;;  %1497 = vadd.xlane.f32.xlu2 %v1496_v34  ;;  %1494 = vadd.xlane.f32.xlu0 %v1493_v27  ;;  %v1499_v44 = vsel %vm1390_vm5, %v5917_v38, 0.0  ;;  %v1555_v30 = vpack.c.bf16 %v5917_v38, %v5917_v38 }
 0x3ef   : > { %v1577_v42 = vunpack.c.l.b16 %v1553_v23  ;;  %5920 = vpow2.f32 %v1465_v25 }
 0x3f0   : > { %5226 = vmatmul.msk.bf16.gmra.mxu2 %vm1211_vm1, %v7330_v2  ;;  %5922 = vpow2.f32 %v1469_v62  ;;  %v1922_v2 = vsel %vm1390_vm5, %v7636_v50, -inf  ;;  %v1579_v10 = vunpack.c.l.b16 %v1555_v30 }
 0x3f1   : > { %5214 = vmatmul.msk.bf16.gmra.mxu3 %vm1211_vm1, %v7512_v63  ;;  %v1584_v11 = vpack.c.b16 %v1578_v4, %v1577_v42 }
 0x3f3   : > { %v1817_v22 = vpop.f32.mrf.mxu2  ;;  %5184 = vmatmul.msk.bf16.gmra.mxu0 %vm1390_vm5, %v1584_v11 }
 0x3f4   : > { %v5919_v49 = vpop.eup %5918  ;;  %v7644_v20 = vsel %vm7301_vm3, %v1817_v22, -1e+30 }
 0x3f5   : > { %v1505_v29 = vsel %vm1390_vm5, %v5919_v49, 0.0  ;;  %v5921_v63 = vpop.eup %5920  ;;  %v1925_v1 = vsel %vm1390_vm5, %v7644_v20, -inf  ;;  %v1557_v25 = vpack.c.bf16 %v5919_v49, %v5919_v49 }
 0x3f6   : > { %1500 = vadd.xlane.f32.xlu2 %v1499_v44  ;;  %1506 = vadd.xlane.f32.xlu1 %v1505_v29  ;;  %v5923_v12 = vpop.eup %5922  ;;  %v1556_v56 = vpack.c.bf16 %v5921_v63, %v5921_v63  ;;  %v1502_v34 = vsel %vm1390_vm5, %v5921_v63, 0.0 }
 0x3f7   : > { %1923 = vmax.xlane.f32.xlu0 %v1922_v2  ;;  %v1508_v57 = vsel %vm1390_vm5, %v5923_v12, 0.0  ;;  %v1558_v62 = vpack.c.bf16 %v5923_v12, %v5923_v12  ;;  %v1581_v22 = vunpack.c.l.b16 %v1557_v25 }
 0x3f8   : > { %v1580_v52 = vunpack.c.l.b16 %v1556_v56 }
 0x3f9   : > { %v1582_v29 = vunpack.c.l.b16 %v1558_v62 }
 0x3fa   : > { %v1585_v48 = vpack.c.b16 %v1580_v52, %v1579_v10 }
 0x3fb   : > { %v1819_v28 = vpop.f32.mrf.mxu2  ;;  %v1586_v63 = vpack.c.b16 %v1582_v29, %v1581_v22 }
 0x3fc   : > { %v7656_v4 = vsel %vm7405_vm10, %v1819_v28, -1e+30 }
 0x3fd   : > { %v1928_v44 = vsel %vm1390_vm5, %v7656_v4, -inf }
 0x3fe   : > { %1509 = vadd.xlane.f32.xlu2 %v1508_v57 }
 0x3ff   : > { %1926 = vmax.xlane.f32.xlu0 %v1925_v1 }
 0x401   : > { %5227 = vmatmul.msk.bf16.vlgmr.msrb.gmra.mxu3 %vm1211_vm1, %v7488_v47 }
 0x403   : > { %v2294_v54 = vpop.f32.mrf.mxu2  ;;  %5185 = vmatmul.msk.bf16.gmra.mxu0 %vm1390_vm5, %v1585_v48 }
 0x404   : > { %v1871_v32 = vpop.f32.mrf.mxu3 }
 0x405   : > { %v7671_v12 = vsel %vm7316_vm4, %v1871_v32, -1e+30 }
 0x406   : > { %v1931_v1 = vsel %vm1390_vm5, %v7671_v12, -inf }
 0x407   : > { %1503 = vadd.xlane.f32.xlu0 %v1502_v34  ;;  %v1417_v27 = vpop.xlane.xlu1 %1416 }
 0x408   : > { %v1447_v23 = vsub.f32 %v7500_v51, %v1417_v27 }
 0x40a   : > { %v1471_v11 = vmul.f32 1.442695, %v1447_v23  ;;  %v7697_v23 = vsel %vm7316_vm4, %v2294_v54, -1e+30 }
 0x40b   : > { %v2296_v42 = vpop.f32.mrf.mxu2 }
 0x40c   : > { %v1873_v47 = vpop.f32.mrf.mxu3  ;;  %5924 = vpow2.f32 %v1471_v11 }
 0x40d   : > { %v7660_v38 = vsel %vm7340_vm7, %v1873_v47, -1e+30 }
 0x40e   : > { %v1934_v51 = vsel %vm1390_vm5, %v7660_v38, -inf }
 0x40f   : > { %1929 = vmax.xlane.f32.xlu0 %v1928_v44  ;;  %1935 = vmax.xlane.f32.xlu1 %v1934_v51  ;;  %v1420_v49 = vpop.xlane.xlu0 %1419  ;;  %v2399_v51 = vsel %vm1390_vm5, %v7697_v23, -inf }
 0x410   : > { %v1448_v2 = vsub.f32 %v7510_v19, %v1420_v49 }
 0x411   : > { %5228 = vmatmul.msk.bf16.gmra.mxu3 %vm1211_vm1, %v7496_v0 }
 0x412   : > { %v1473_v30 = vmul.f32 1.442695, %v1448_v2  ;;  %v7682_v0 = vpop.eup %5924 }
 0x413   : > { %v2299_v28 = vpop.f32.mrf.mxu2  ;;  %5186 = vmatmul.msk.bf16.gmra.mxu0 %vm1390_vm5, %v1586_v63  ;;  %v1559_v34 = vpack.c.bf16 %v7682_v0, %v7682_v0 }
 0x414   : > { %5926 = vpow2.f32 %v1473_v30  ;;  %v7676_v56 = vsel %vm7250_vm2, %v2299_v28, -1e+30  ;;  %v1876_v57 = vpop.f32.mrf.mxu3  ;;  %v7716_v30 = vsel %vm7340_vm7, %v2296_v42, -1e+30 }
 0x415   : > { %v7680_v19 = vsel %vm7250_vm2, %v1876_v57, -1e+30  ;;  %v2405_v52 = vsel %vm1390_vm5, %v7676_v56, -inf  ;;  %v2402_v42 = vsel %vm1390_vm5, %v7716_v30, -inf }
 0x416   : > { %v1937_v10 = vsel %vm1390_vm5, %v7680_v19, -inf }
 0x417   : > { %1932 = vmax.xlane.f32.xlu0 %v1931_v1  ;;  %2406 = vmax.xlane.f32.xlu1 %v2405_v52  ;;  %v1423_v48 = vpop.xlane.xlu0 %1422 }
 0x418   : > { %1938 = vmax.xlane.f32.xlu2 %v1937_v10  ;;  %v1449_v32 = vsub.f32 %v7523_v37, %v1423_v48  ;;  %v1660_v37 = vunpack.c.l.b16 %v1559_v34 }
 0x41a   : > { %v7693_v27 = vpop.eup %5926  ;;  %v1475_v11 = vmul.f32 1.442695, %v1449_v32 }
 0x41b   : > { %9008 = vst [vmem:[#allocation21_spill] sm:$0xff] %v7693_v27  ;;  %v1560_v25 = vpack.c.bf16 %v7693_v27, %v7693_v27  ;;  %v2301_v62 = vpop.f32.mrf.mxu2 }
 0x41c   : > { %v7703_v47 = vsel %vm7335_vm6, %v2301_v62, -1e+30  ;;  %v1878_v22 = vpop.f32.mrf.mxu3  ;;  %5928 = vpow2.f32 %v1475_v11 }
 0x41d   : > { %v1661_v44 = vunpack.c.l.b16 %v1560_v25  ;;  %v2408_v54 = vsel %vm1390_vm5, %v7703_v47, -inf  ;;  %v7743_v25 = vsel %vm7335_vm6, %v1878_v22, -1e+30 }
 0x41f   : > { %2400 = vmax.xlane.f32.xlu0 %v2399_v51  ;;  %v1426_v49 = vpop.xlane.xlu1 %1425  ;;  %v1668_v29 = vpack.c.b16 %v1661_v44, %v1660_v37 }
 0x420   : > { %v1450_v2 = vsub.f32 %v7534_v21, %v1426_v49  ;;  %2409 = vmax.xlane.f32.xlu2 %v2408_v54  ;;  %v1940_v49 = vsel %vm1390_vm5, %v7743_v25, -inf }
 0x421   : > { %5187 = vmatmul.msk.bf16.vlgmr.msrb.gmra.mxu1 %vm1390_vm5, %v1668_v29  ;;  %5229 = vmatmul.msk.bf16.gmra.mxu3 %vm1211_vm1, %v7490_v58 }
 0x422   : > { %v1477_v63 = vmul.f32 1.442695, %v1450_v2  ;;  %2696 = vmatpush.bf16.msrb.mxu1 %v7444_v17  ;;  %v7728_v1 = vpop.eup %5928 }
 0x423   : > { %v2304_v28 = vpop.f32.mrf.mxu2  ;;  %9009 = vst [vmem:[#allocation22_spill] sm:$0xff] %v7728_v1  ;;  %v1561_v32 = vpack.c.bf16 %v7728_v1, %v7728_v1 }
 0x424   : > { %5930 = vpow2.f32 %v1477_v63  ;;  %v7720_v57 = vsel %vm7371_vm8, %v2304_v28, -1e+30  ;;  %v1881_v21 = vpop.f32.mrf.mxu3 }
 0x425   : > { %v2411_v10 = vsel %vm1390_vm5, %v7720_v57, -inf  ;;  %v7726_v58 = vsel %vm7371_vm8, %v1881_v21, -1e+30  ;;  %v1662_v44 = vunpack.c.l.b16 %v1561_v32 }
 0x426   : > { %2412 = vmax.xlane.f32.xlu1 %v2411_v10  ;;  %v1943_v17 = vsel %vm1390_vm5, %v7726_v58, -inf  ;;  %2697 = vmatpush.bf16.msrb.mxu1 %v7380_v35 }
 0x427   : > { %2403 = vmax.xlane.f32.xlu0 %v2402_v42  ;;  %v1429_v52 = vpop.xlane.xlu1 %1428 }
 0x428   : > { %v1451_v48 = vsub.f32 %v7549_v61, %v1429_v52  ;;  %1944 = vmax.xlane.f32.xlu2 %v1943_v17 }
 0x42a   : > { %v7738_v34 = vpop.eup %5930  ;;  %2698 = vmatpush.bf16.msrb.mxu1 %v7277_v6  ;;  %v1479_v11 = vmul.f32 1.442695, %v1451_v48 }
 0x42b   : > { %9010 = vst [vmem:[#allocation23_spill] sm:$0xff] %v7738_v34  ;;  %v2306_v62 = vpop.f32.mrf.mxu2  ;;  %v1562_v35 = vpack.c.bf16 %v7738_v34, %v7738_v34 }
 0x42c   : > { %v7749_v61 = vsel %vm7376_vm9, %v2306_v62, -1e+30  ;;  %v1883_v37 = vpop.f32.mrf.mxu3  ;;  %5932 = vpow2.f32 %v1479_v11 }
 0x42d   : > { %v1663_v51 = vunpack.c.l.b16 %v1562_v35  ;;  %v2414_v6 = vsel %vm1390_vm5, %v7749_v61, -inf  ;;  %v7762_v63 = vsel %vm7376_vm9, %v1883_v37, -1e+30 }
 0x42e   : > { %2699 = vmatpush.bf16.msrb.mxu1 %v7224_v26 }
 0x42f   : > { %1941 = vmax.xlane.f32.xlu0 %v1940_v49  ;;  %v1432_v22 = vpop.xlane.xlu0 %1431  ;;  %v1669_v54 = vpack.c.b16 %v1663_v51, %v1662_v44 }
 0x430   : > { %2415 = vmax.xlane.f32.xlu2 %v2414_v6  ;;  %v1452_v29 = vsub.f32 %v7557_v9, %v1432_v22  ;;  %v1946_v9 = vsel %vm1390_vm5, %v7762_v63, -inf }
 0x431   : > { %5188 = vmatmul.msk.bf16.gmra.mxu1 %vm1390_vm5, %v1669_v54  ;;  %5230 = vmatmul.msk.bf16.gmra.mxu3 %vm1211_vm1, %v7503_v33 }
 0x432   : > { %v1481_v2 = vmul.f32 1.442695, %v1452_v29  ;;  %v7768_v10 = vpop.eup %5932 }
 0x433   : > { %v2309_v26 = vpop.f32.mrf.mxu2  ;;  %9011 = vst [vmem:[#allocation24_spill] sm:$0xff] %v7768_v10  ;;  %v1563_v52 = vpack.c.bf16 %v7768_v10, %v7768_v10 }
 0x434   : > { %5934 = vpow2.f32 %v1481_v2  ;;  %v7766_v28 = vsel %vm7301_vm3, %v2309_v26, -1e+30  ;;  %v1886_v21 = vpop.f32.mrf.mxu3 }
 0x435   : > { %v2417_v33 = vsel %vm1390_vm5, %v7766_v28, -inf  ;;  %v7781_v62 = vsel %vm7301_vm3, %v1886_v21, -1e+30  ;;  %v1664_v51 = vunpack.c.l.b16 %v1563_v52 }
 0x436   : > { %v1949_v6 = vsel %vm1390_vm5, %v7781_v62, -inf }
 0x437   : > { %1947 = vmax.xlane.f32.xlu0 %v1946_v9  ;;  %v1435_v17 = vpop.xlane.xlu0 %1434 }
 0x438   : > { %2418 = vmax.xlane.f32.xlu2 %v2417_v33  ;;  %v1453_v32 = vsub.f32 %v7569_v18, %v1435_v17 }
 0x439   : > { %v1909_v42 = vpop.xlane.xlu2 %1908 }
 0x43a   : > { %v7776_v48 = vpop.eup %5934  ;;  %v1483_v22 = vmul.f32 1.442695, %v1453_v32  ;;  %v1955_v2 = vsub.f32 %v7576_v39, %v1909_v42 }
 0x43b   : > { %9012 = vst [vmem:[#allocation25_spill] sm:$0xff] %v7776_v48  ;;  %v2311_v35 = vpop.f32.mrf.mxu2  ;;  %v1564_v11 = vpack.c.bf16 %v7776_v48, %v7776_v48 }
 0x43c   : > { %v1888_v37 = vpop.f32.mrf.mxu3  ;;  %5936 = vpow2.f32 %v1483_v22  ;;  %v7798_v21 = vsel %vm7405_vm10, %v2311_v35, -1e+30  ;;  %v1971_v32 = vmul.f32 1.442695, %v1955_v2 }
 0x43d   : > { %v7787_v44 = vsel %vm7405_vm10, %v1888_v37, -1e+30  ;;  %v1665_v49 = vunpack.c.l.b16 %v1564_v11  ;;  %v2420_v11 = vsel %vm1390_vm5, %v7798_v21, -inf }
 0x43e   : > { %v1952_v18 = vsel %vm1390_vm5, %v7787_v44, -inf }
 0x43f   : > { %1950 = vmax.xlane.f32.xlu0 %v1949_v6  ;;  %1953 = vmax.xlane.f32.xlu1 %v1952_v18  ;;  %v1670_v54 = vpack.c.b16 %v1665_v49, %v1664_v51  ;;  %v7810_v42 = vpop.xlane.xlu0 %1488 }
 0x440   : > { %9014 = vst [vmem:[#allocation27_spill] sm:$0xff] %v7810_v42 }
 0x441   : > { %v1438_v29 = vpop.xlane.xlu2 %1437  ;;  %5189 = vmatmul.msk.bf16.gmra.mxu1 %vm1390_vm5, %v1670_v54 }
 0x442   : > { %v1454_v26 = vsub.f32 %v7582_v15, %v1438_v29  ;;  %v7808_v15 = vpop.eup %5936 }
 0x443   : > { %v2786_v9 = vpop.f32.mrf.mxu2  ;;  %9013 = vst [vmem:[#allocation26_spill] sm:$0xff] %v7808_v15  ;;  %v1565_v6 = vpack.c.bf16 %v7808_v15, %v7808_v15 }
 0x444   : > { %v1485_v33 = vmul.f32 1.442695, %v1454_v26  ;;  %v2363_v17 = vpop.f32.mrf.mxu3  ;;  %v7815_v51 = vsel %vm7316_vm4, %v2786_v9, -1e+30 }
 0x445   : > { %v7802_v52 = vsel %vm7316_vm4, %v2363_v17, -1e+30  ;;  %v2891_v26 = vsel %vm1390_vm5, %v7815_v51, -inf  ;;  %v1666_v17 = vunpack.c.l.b16 %v1565_v6 }
 0x446   : > { %5938 = vpow2.f32 %v1485_v33  ;;  %v2423_v39 = vsel %vm1390_vm5, %v7802_v52, -inf }
 0x447   : > { %2421 = vmax.xlane.f32.xlu0 %v2420_v11  ;;  %2424 = vmax.xlane.f32.xlu1 %v2423_v39  ;;  %5940 = vpow2.f32 %v1971_v32 }
 0x449   : > { %v1912_v35 = vpop.xlane.xlu2 %1911 }
 0x44a   : > { %v1956_v37 = vsub.f32 %v7593_v24, %v1912_v35 }
 0x44b   : > { %v2788_v49 = vpop.f32.mrf.mxu2 }
 0x44c   : > { %v7819_v22 = vpop.eup %5938  ;;  %v1973_v18 = vmul.f32 1.442695, %v1956_v37  ;;  %v2365_v54 = vpop.f32.mrf.mxu3  ;;  %v7823_v29 = vsel %vm7340_vm7, %v2788_v49, -1e+30 }
 0x44d   : > { %9015 = vst [vmem:[#allocation28_spill] sm:$0xff] %v7819_v22  ;;  %v7827_v2 = vsel %vm7340_vm7, %v2365_v54, -1e+30  ;;  %v1566_v24 = vpack.c.bf16 %v7819_v22, %v7819_v22  ;;  %v2894_v9 = vsel %vm1390_vm5, %v7823_v29, -inf  ;;  %v5941_v11 = vpop.eup %5940 }
 0x44e   : > { %5942 = vpow2.f32 %v1973_v18  ;;  %v2426_v33 = vsel %vm1390_vm5, %v7827_v2, -inf  ;;  %v2067_v18 = vpack.c.bf16 %v5941_v11, %v5941_v11  ;;  %v2003_v6 = vsel %vm1390_vm5, %v5941_v11, 0.0 }
 0x44f   : > { %2892 = vmax.xlane.f32.xlu0 %v2891_v26  ;;  %2895 = vmax.xlane.f32.xlu1 %v2894_v9  ;;  %v1667_v32 = vunpack.c.l.b16 %v1566_v24 }
 0x450   : > { %2427 = vmax.xlane.f32.xlu2 %v2426_v33  ;;  %v2091_v24 = vunpack.c.l.b16 %v2067_v18 }
 0x451   : > { %v1918_v39 = vpop.xlane.xlu0 %1917  ;;  %v1915_v35 = vpop.xlane.xlu2 %1914  ;;  %v1671_v37 = vpack.c.b16 %v1667_v32, %v1666_v17 }
 0x452   : > { %v1958_v49 = vsub.f32 %v7604_v7, %v1918_v39  ;;  %v1957_v54 = vsub.f32 %v7600_v60, %v1915_v35 }
 0x453   : > { %v2791_v22 = vpop.f32.mrf.mxu2  ;;  %5190 = vmatmul.msk.bf16.gmra.mxu1 %vm1390_vm5, %v1671_v37 }
 0x454   : > { %v5943_v15 = vpop.eup %5942  ;;  %v1977_v10 = vmul.f32 1.442695, %v1958_v49  ;;  %v1975_v48 = vmul.f32 1.442695, %v1957_v54  ;;  %v2368_v26 = vpop.f32.mrf.mxu3  ;;  %v7849_v39 = vsel %vm7250_vm2, %v2791_v22, -1e+30 }
 0x455   : > { %v2068_v9 = vpack.c.bf16 %v5943_v15, %v5943_v15  ;;  %v2006_v17 = vsel %vm1390_vm5, %v5943_v15, 0.0  ;;  %v7844_v7 = vsel %vm7250_vm2, %v2368_v26, -1e+30  ;;  %v2897_v49 = vsel %vm1390_vm5, %v7849_v39, -inf }
 0x456   : > { %5944 = vpow2.f32 %v1977_v10  ;;  %v2429_v35 = vsel %vm1390_vm5, %v7844_v7, -inf }
 0x457   : > { %v2092_v33 = vunpack.c.l.b16 %v2068_v9  ;;  %2004 = vadd.xlane.f32.xlu0 %v2003_v6  ;;  %5946 = vpow2.f32 %v1975_v48 }
 0x458   : > { %2007 = vadd.xlane.f32.xlu2 %v2006_v17 }
 0x459   : > { %v2099_v60 = vpack.c.b16 %v2092_v33, %v2091_v24  ;;  %v1921_v22 = vpop.xlane.xlu1 %1920  ;;  %v7867_v24 = vpop.xlane.xlu2 %1491 }
 0x45a   : > { %v1959_v26 = vsub.f32 %v7618_v45, %v1921_v22  ;;  %9016 = vst [vmem:[#allocation29_spill] sm:$0xff] %v7867_v24 }
 0x45b   : > { %v2793_v32 = vpop.f32.mrf.mxu2  ;;  %5199 = vmatmul.msk.bf16.vlgmr.msra.gmra.mxu0 %vm1390_vm5, %v2099_v60 }
 0x45c   : > { %3115 = vmatpush.bf16.msra.mxu0 %v7396_v31  ;;  %v2370_v10 = vpop.f32.mrf.mxu3  ;;  %v5945_v11 = vpop.eup %5944 }
 0x45d   : > { %v7854_v48 = vsel %vm7335_vm6, %v2370_v10, -1e+30  ;;  %v5947_v15 = vpop.eup %5946  ;;  %v2070_v31 = vpack.c.bf16 %v5945_v11, %v5945_v11  ;;  %v2012_v45 = vsel %vm1390_vm5, %v5945_v11, 0.0 }
 0x45e   : > { %v2432_v37 = vsel %vm1390_vm5, %v7854_v48, -inf  ;;  %v2069_v54 = vpack.c.bf16 %v5947_v15, %v5947_v15 }
 0x45f   : > { %2430 = vmax.xlane.f32.xlu0 %v2429_v35  ;;  %2433 = vmax.xlane.f32.xlu1 %v2432_v37  ;;  %v2094_v60 = vunpack.c.l.b16 %v2070_v31  ;;  %v1979_v35 = vmul.f32 1.442695, %v1959_v26 }
 0x460   : > { %3116 = vmatpush.bf16.msra.mxu0 %v7297_v3  ;;  %2898 = vmax.xlane.f32.xlu2 %v2897_v49  ;;  %v2093_v17 = vunpack.c.l.b16 %v2069_v54  ;;  %v2009_v3 = vsel %vm1390_vm5, %v5947_v15, 0.0  ;;  %v7880_v49 = vsel %vm7335_vm6, %v2793_v32, -1e+30 }
 0x461   : > { %v7863_v18 = vpop.xlane.xlu0 %1494  ;;  %5948 = vpow2.f32 %v1979_v35  ;;  %v2900_v26 = vsel %vm1390_vm5, %v7880_v49, -inf }
 0x463   : > { %v2796_v9 = vpop.f32.mrf.mxu2 }
 0x464   : > { %3117 = vmatpush.bf16.msra.mxu0 %v7200_v5  ;;  %v2373_v6 = vpop.f32.mrf.mxu3  ;;  %v2100_v5 = vpack.c.b16 %v2094_v60, %v2093_v17 }
 0x465   : > { %v7871_v33 = vsel %vm7371_vm8, %v2373_v6, -1e+30  ;;  %v7898_v6 = vpop.xlane.xlu2 %1497 }
 0x466   : > { %v2435_v10 = vsel %vm1390_vm5, %v7871_v33, -inf  ;;  %9017 = vst [vmem:[#allocation30_spill] sm:$0xff] %v7898_v6 }
 0x467   : > { %2010 = vadd.xlane.f32.xlu0 %v2009_v3  ;;  %2436 = vmax.xlane.f32.xlu1 %v2435_v10  ;;  %v5949_v17 = vpop.eup %5948  ;;  %v7902_v3 = vsel %vm7371_vm8, %v2796_v9, -1e+30 }
 0x468   : > { %3118 = vmatpush.bf16.msra.mxu0 %v7202_v8  ;;  %2013 = vadd.xlane.f32.xlu2 %v2012_v45  ;;  %v2071_v45 = vpack.c.bf16 %v5949_v17, %v5949_v17 }
 0x46a   : > { %v1924_v37 = vpop.xlane.xlu0 %1923  ;;  %v2095_v9 = vunpack.c.l.b16 %v2071_v45 }
 0x46b   : > { %v2798_v22 = vpop.f32.mrf.mxu2  ;;  %v1960_v15 = vsub.f32 %v7636_v50, %v1924_v37  ;;  %5200 = vmatmul.msk.bf16.gmra.mxu0 %vm1390_vm5, %v2100_v5 }
 0x46c   : > { %v2375_v31 = vpop.f32.mrf.mxu3  ;;  %v7886_v54 = vsel %vm7376_vm9, %v2798_v22, -1e+30 }
 0x46d   : > { %v1981_v11 = vmul.f32 1.442695, %v1960_v15  ;;  %v7890_v8 = vsel %vm7376_vm9, %v2375_v31, -1e+30  ;;  %v2906_v32 = vsel %vm1390_vm5, %v7886_v54, -inf  ;;  %v2903_v31 = vsel %vm1390_vm5, %v7902_v3, -inf }
 0x46e   : > { %v2438_v50 = vsel %vm1390_vm5, %v7890_v8, -inf }
 0x46f   : > { %5950 = vpow2.f32 %v1981_v11  ;;  %2901 = vmax.xlane.f32.xlu0 %v2900_v26  ;;  %2907 = vmax.xlane.f32.xlu1 %v2906_v32 }
 0x470   : > { %2439 = vmax.xlane.f32.xlu2 %v2438_v50  ;;  %v7914_v50 = vpop.xlane.xlu2 %1500 }
 0x472   : > { %v1927_v60 = vpop.xlane.xlu0 %1926 }
 0x473   : > { %v2801_v10 = vpop.f32.mrf.mxu2  ;;  %v1961_v35 = vsub.f32 %v7644_v20, %v1927_v60  ;;  %v7916_v60 = vpop.xlane.xlu1 %1506 }
 0x474   : > { %v7907_v5 = vsel %vm7301_vm3, %v2801_v10, -1e+30  ;;  %v2378_v37 = vpop.f32.mrf.mxu3 }
 0x475   : > { %v5951_v22 = vpop.eup %5950  ;;  %v1983_v15 = vmul.f32 1.442695, %v1961_v35  ;;  %v2909_v26 = vsel %vm1390_vm5, %v7907_v5, -inf  ;;  %v7922_v1 = vsel %vm7301_vm3, %v2378_v37, -1e+30 }
 0x476   : > { %v2072_v11 = vpack.c.bf16 %v5951_v22, %v5951_v22  ;;  %v2018_v20 = vsel %vm1390_vm5, %v5951_v22, 0.0  ;;  %v2015_v22 = vsel %vm1390_vm5, %v5949_v17, 0.0 }
 0x477   : > { %5952 = vpow2.f32 %v1983_v15  ;;  %2904 = vmax.xlane.f32.xlu0 %v2903_v31  ;;  %2910 = vmax.xlane.f32.xlu1 %v2909_v26 }
 0x478   : > { %2019 = vadd.xlane.f32.xlu2 %v2018_v20  ;;  %v2096_v32 = vunpack.c.l.b16 %v2072_v11  ;;  %v2441_v11 = vsel %vm1390_vm5, %v7922_v1, -inf }
 0x47a   : > { %v7918_v10 = vpop.xlane.xlu0 %1503  ;;  %v2101_v35 = vpack.c.b16 %v2096_v32, %v2095_v9  ;;  %v7929_v32 = vpop.xlane.xlu2 %1509 }
 0x47b   : > { %9018 = vst [vmem:[#allocation31_spill] sm:$0xff] %v7918_v10  ;;  %v2803_v26 = vpop.f32.mrf.mxu2 }
 0x47c   : > { %5201 = vmatmul.msk.bf16.gmra.mxu0 %vm1390_vm5, %v2101_v35  ;;  %v2380_v15 = vpop.f32.mrf.mxu3  ;;  %9019 = vst [vmem:[#allocation32_spill] sm:$0xff] %v7929_v32  ;;  %v7939_v10 = vsel %vm7405_vm10, %v2803_v26, -1e+30 }
 0x47d   : > { %v5953_v31 = vpop.eup %5952  ;;  %v7933_v37 = vsel %vm7405_vm10, %v2380_v15, -1e+30  ;;  %v2912_v15 = vsel %vm1390_vm5, %v7939_v10, -inf }
 0x47e   : > { %v2021_v45 = vsel %vm1390_vm5, %v5953_v31, 0.0 }
 0x47f   : > { %2016 = vadd.xlane.f32.xlu0 %v2015_v22  ;;  %2022 = vadd.xlane.f32.xlu1 %v2021_v45 }
 0x480   : > { %2442 = vmax.xlane.f32.xlu2 %v2441_v11  ;;  %v2444_v11 = vsel %vm1390_vm5, %v7933_v37, -inf }
 0x482   : > { %v1930_v20 = vpop.xlane.xlu0 %1929  ;;  %v1936_v9 = vpop.xlane.xlu1 %1935 }
 0x483   : > { %v1962_v35 = vsub.f32 %v7656_v4, %v1930_v20  ;;  %v1964_v17 = vsub.f32 %v7660_v38, %v1936_v9  ;;  %v2073_v20 = vpack.c.bf16 %v5953_v31, %v5953_v31 }
 0x484   : > { %v2855_v22 = vpop.f32.mrf.mxu3 }
 0x485   : > { %v1985_v45 = vmul.f32 1.442695, %v1962_v35  ;;  %v1989_v6 = vmul.f32 1.442695, %v1964_v17  ;;  %v2097_v17 = vunpack.c.l.b16 %v2073_v20 }
 0x487   : > { %5954 = vpow2.f32 %v1985_v45  ;;  %2445 = vmax.xlane.f32.xlu0 %v2444_v11 }
 0x488   : > { %2913 = vmax.xlane.f32.xlu2 %v2912_v15  ;;  %5956 = vpow2.f32 %v1989_v6  ;;  %v7951_v15 = vpop.f32.mrf.mxu0 }
 0x489   : > { %9020 = vst [vmem:[#allocation33_spill] sm:$0xff] %v7951_v15 }
 0x48a   : > { %v1933_v34 = vpop.xlane.xlu0 %1932 }
 0x48b   : > { %v1963_v4 = vsub.f32 %v7671_v12, %v1933_v34  ;;  %v1939_v38 = vpop.xlane.xlu2 %1938  ;;  %v7955_v12 = vsel %vm7316_vm4, %v2855_v22, -1e+30 }
 0x48c   : > { %v7946_v26 = vpop.f32.mrf.mxu3 }
 0x48d   : > { %v5955_v9 = vpop.eup %5954  ;;  %v1987_v35 = vmul.f32 1.442695, %v1963_v4 }
 0x48e   : > { %v2074_v24 = vpack.c.bf16 %v5955_v9, %v5955_v9  ;;  %v2024_v42 = vsel %vm1390_vm5, %v5955_v9, 0.0  ;;  %v7949_v11 = vpop.eup %5956  ;;  %v2915_v9 = vsel %vm1390_vm5, %v7955_v12, -inf }
 0x48f   : > { %5958 = vpow2.f32 %v1987_v35  ;;  %2025 = vadd.xlane.f32.xlu0 %v2024_v42  ;;  %v2076_v31 = vpack.c.bf16 %v7949_v11, %v7949_v11 }
 0x490   : > { %v2098_v45 = vunpack.c.l.b16 %v2074_v24 }
 0x491   : > { %v2165_v55 = vunpack.c.l.b16 %v2076_v31 }
 0x492   : > { %v2401_v6 = vpop.xlane.xlu0 %2400  ;;  %v2102_v27 = vpack.c.b16 %v2098_v45, %v2097_v17  ;;  %v7965_v45 = vpop.f32.mrf.mxu0 }
 0x493   : > { %v2447_v34 = vsub.f32 %v7697_v23, %v2401_v6  ;;  %v2410_v20 = vpop.xlane.xlu2 %2409  ;;  %v1965_v6 = vsub.f32 %v7680_v19, %v1939_v38 }
 0x494   : > { %5202 = vmatmul.msk.bf16.gmra.mxu0 %vm1390_vm5, %v2102_v27  ;;  %v7961_v42 = vpop.f32.mrf.mxu3 }
 0x495   : > { %v5959_v24 = vpop.eup %5958  ;;  %v2463_v4 = vmul.f32 1.442695, %v2447_v34  ;;  %v1991_v31 = vmul.f32 1.442695, %v1965_v6 }
 0x496   : > { %v2075_v35 = vpack.c.bf16 %v5959_v24, %v5959_v24 }
 0x497   : > { %5960 = vpow2.f32 %v2463_v4  ;;  %2916 = vmax.xlane.f32.xlu0 %v2915_v9 }
 0x498   : > { %v2164_v22 = vunpack.c.l.b16 %v2075_v35  ;;  %v2407_v35 = vpop.xlane.xlu1 %2406 }
 0x499   : > { %v2449_v38 = vsub.f32 %v7676_v56, %v2407_v35 }
 0x49a   : > { %v2172_v17 = vpack.c.b16 %v2165_v55, %v2164_v22  ;;  %v2404_v23 = vpop.xlane.xlu0 %2403  ;;  %v2450_v55 = vsub.f32 %v7703_v47, %v2410_v20  ;;  %v2027_v47 = vsel %vm1390_vm5, %v5959_v24, 0.0  ;;  %v7989_v24 = vsel %vm7340_vm7, %v7946_v26, -1e+30 }
 0x49b   : > { %v2448_v27 = vsub.f32 %v7716_v30, %v2404_v23  ;;  %v1945_v9 = vpop.xlane.xlu2 %1944  ;;  %v7976_v30 = vpop.f32.mrf.mxu0  ;;  %v2467_v20 = vmul.f32 1.442695, %v2449_v38  ;;  %v2918_v41 = vsel %vm1390_vm5, %v7989_v24, -inf  ;;  %v2030_v26 = vsel %vm1390_vm5, %v7949_v11, 0.0 }
 0x49c   : > { %5203 = vmatmul.msk.bf16.vlgmr.msra.gmra.mxu1 %vm1390_vm5, %v2172_v17  ;;  %v7970_v34 = vpop.f32.mrf.mxu3  ;;  %v2469_v23 = vmul.f32 1.442695, %v2450_v55  ;;  %v1967_v55 = vsub.f32 %v7726_v58, %v1945_v9  ;;  %v8009_v11 = vsel %vm7250_vm2, %v7961_v42, -1e+30 }
 0x49d   : > { %v5961_v15 = vpop.eup %5960  ;;  %v2465_v32 = vmul.f32 1.442695, %v2448_v27  ;;  %3188 = vmatpush.bf16.msra.mxu1 %v7454_v16 }
 0x49e   : > { %v2495_v4 = vsel %vm1390_vm5, %v5961_v15, 0.0  ;;  %v2559_v16 = vpack.c.bf16 %v5961_v15, %v5961_v15  ;;  %v9021_v15 = vld [vmem:[#allocation20_spill] sm:$0xff]  ;;  %v1995_v9 = vmul.f32 1.442695, %v1967_v55 }
 0x49f   : > { %5962 = vpow2.f32 %v2465_v32  ;;  %2496 = vadd.xlane.f32.xlu1 %v2495_v4 }
 0x4a0   : > { %5964 = vpow2.f32 %v1991_v31  ;;  %v2583_v56 = vunpack.c.l.b16 %v2559_v16 }
 0x4a1   : > { %3189 = vmatpush.bf16.msra.mxu1 %v7309_v36 }
 0x4a2   : > { %v1942_v19 = vpop.xlane.xlu0 %1941 }
 0x4a3   : > { %v1966_v22 = vsub.f32 %v7743_v25, %v1942_v19  ;;  %v2416_v25 = vpop.xlane.xlu2 %2415  ;;  %v7996_v16 = vpop.f32.mrf.mxu0 }
 0x4a4   : > { %v2865_v32 = vpop.f32.mrf.mxu3 }
 0x4a5   : > { %v5963_v17 = vpop.eup %5962  ;;  %v1993_v6 = vmul.f32 1.442695, %v1966_v22  ;;  %3190 = vmatpush.bf16.msra.mxu1 %v7291_v43 }
 0x4a6   : > { %v2560_v27 = vpack.c.bf16 %v5963_v17, %v5963_v17  ;;  %v2498_v36 = vsel %vm1390_vm5, %v5963_v17, 0.0  ;;  %v7983_v31 = vpop.eup %5964 }
 0x4a7   : > { %5966 = vpow2.f32 %v1993_v6  ;;  %2028 = vadd.xlane.f32.xlu1 %v2027_v47  ;;  %2499 = vadd.xlane.f32.xlu0 %v2498_v36  ;;  %v2077_v38 = vpack.c.bf16 %v7983_v31, %v7983_v31 }
 0x4a8   : > { %v2584_v4 = vunpack.c.l.b16 %v2560_v27  ;;  %5968 = vpow2.f32 %v2469_v23  ;;  %v2413_v23 = vpop.xlane.xlu1 %2412 }
 0x4a9   : > { %3191 = vmatpush.bf16.msra.mxu1 %v9021_v15  ;;  %5970 = vpow2.f32 %v2467_v20  ;;  %v2166_v47 = vunpack.c.l.b16 %v2077_v38  ;;  %v8014_v38 = vsel %vm7371_vm8, %v2865_v32, -1e+30 }
 0x4aa   : > { %v2591_v35 = vpack.c.b16 %v2584_v4, %v2583_v56  ;;  %v1948_v43 = vpop.xlane.xlu0 %1947  ;;  %v2452_v56 = vsub.f32 %v7749_v61, %v2416_v25  ;;  %v2927_v53 = vsel %vm1390_vm5, %v8014_v38, -inf }
 0x4ab   : > { %v1968_v19 = vsub.f32 %v7762_v63, %v1948_v43  ;;  %v2451_v43 = vsub.f32 %v7720_v57, %v2413_v23  ;;  %v2419_v55 = vpop.xlane.xlu2 %2418  ;;  %v8023_v23 = vpop.f32.mrf.mxu0 }
 0x4ac   : > { %5215 = vmatmul.msk.bf16.vlgmr.msrb.gmra.mxu0 %vm1390_vm5, %v2591_v35  ;;  %v8003_v27 = vpop.f32.mrf.mxu3  ;;  %v2473_v61 = vmul.f32 1.442695, %v2452_v56  ;;  %v2453_v13 = vsub.f32 %v7766_v28, %v2419_v55 }
 0x4ad   : > { %v5967_v22 = vpop.eup %5966  ;;  %v1997_v17 = vmul.f32 1.442695, %v1968_v19 }
 0x4ae   : > { %v2078_v6 = vpack.c.bf16 %v5967_v22, %v5967_v22  ;;  %v2036_v58 = vsel %vm1390_vm5, %v5967_v22, 0.0  ;;  %v5969_v63 = vpop.eup %5968  ;;  %v2921_v22 = vsel %vm1390_vm5, %v8009_v11, -inf }
 0x4af   : > { %2919 = vmax.xlane.f32.xlu1 %v2918_v41  ;;  %2031 = vadd.xlane.f32.xlu0 %v2030_v26  ;;  %v5971_v20 = vpop.eup %5970  ;;  %5972 = vpow2.f32 %v1997_v17  ;;  %v2562_v4 = vpack.c.bf16 %v5969_v63, %v5969_v63 }
 0x4b0   : > { %2037 = vadd.xlane.f32.xlu2 %v2036_v58  ;;  %v2167_v36 = vunpack.c.l.b16 %v2078_v6  ;;  %5974 = vpow2.f32 %v1995_v9  ;;  %v2561_v19 = vpack.c.bf16 %v5971_v20, %v5971_v20  ;;  %v2501_v17 = vsel %vm1390_vm5, %v5971_v20, 0.0 }
 0x4b1   : > { %v2586_v25 = vunpack.c.l.b16 %v2562_v4  ;;  %v2471_v6 = vmul.f32 1.442695, %v2451_v43  ;;  %5976 = vpow2.f32 %v2473_v61  ;;  %v2475_v9 = vmul.f32 1.442695, %v2453_v13 }
 0x4b2   : > { %v1951_v15 = vpop.xlane.xlu0 %1950  ;;  %v2173_v35 = vpack.c.b16 %v2167_v36, %v2166_v47  ;;  %v1954_v42 = vpop.xlane.xlu1 %1953  ;;  %v2585_v32 = vunpack.c.l.b16 %v2561_v19  ;;  %v2504_v43 = vsel %vm1390_vm5, %v5969_v63, 0.0 }
 0x4b3   : > { %v1970_v28 = vsub.f32 %v7787_v44, %v1954_v42  ;;  %5978 = vpow2.f32 %v2471_v6  ;;  %v1969_v20 = vsub.f32 %v7781_v62, %v1951_v15  ;;  %v8056_v6 = vsel %vm7376_vm9, %v8003_v27, -1e+30 }
 0x4b4   : > { %5204 = vmatmul.msk.bf16.gmra.mxu1 %vm1390_vm5, %v2173_v35  ;;  %v2870_v26 = vpop.f32.mrf.mxu3  ;;  %v2592_v36 = vpack.c.b16 %v2586_v25, %v2585_v32  ;;  %5980 = vpow2.f32 %v2475_v9  ;;  %v2033_v35 = vsel %vm1390_vm5, %v7983_v31, 0.0  ;;  %v8045_v25 = vpop.f32.mrf.mxu0  ;;  %v2930_v59 = vsel %vm1390_vm5, %v8056_v6, -inf }
 0x4b5   : > { %v8021_v57 = vpop.eup %5972  ;;  %v8037_v4 = vsel %vm7301_vm3, %v2870_v26, -1e+30  ;;  %v2001_v44 = vmul.f32 1.442695, %v1970_v28  ;;  %v1999_v61 = vmul.f32 1.442695, %v1969_v20 }
 0x4b6   : > { %v8027_v41 = vpop.eup %5974  ;;  %v2080_v58 = vpack.c.bf16 %v8021_v57, %v8021_v57  ;;  %v2933_v62 = vsel %vm1390_vm5, %v8037_v4, -inf }
 0x4b7   : > { %2502 = vadd.xlane.f32.xlu1 %v2501_v17  ;;  %2922 = vmax.xlane.f32.xlu0 %v2921_v22  ;;  %v2079_v56 = vpack.c.bf16 %v8027_v41, %v8027_v41  ;;  %v5977_v19 = vpop.eup %5976  ;;  %5982 = vpow2.f32 %v2001_v44  ;;  %v8051_v17 = vsel %vm7335_vm6, %v7970_v34, -1e+30 }
 0x4b8   : > { %2928 = vmax.xlane.f32.xlu2 %v2927_v53  ;;  %v2169_v55 = vunpack.c.l.b16 %v2080_v58  ;;  %v2564_v13 = vpack.c.bf16 %v5977_v19, %v5977_v19  ;;  %5984 = vpow2.f32 %v1999_v61  ;;  %v2924_v9 = vsel %vm1390_vm5, %v8051_v17, -inf }
 0x4b9   : > { %v2168_v40 = vunpack.c.l.b16 %v2079_v56  ;;  %v5979_v15 = vpop.eup %5978 }
 0x4ba   : > { %v2422_v47 = vpop.xlane.xlu0 %2421  ;;  %v2425_v31 = vpop.xlane.xlu1 %2424  ;;  %v2588_v34 = vunpack.c.l.b16 %v2564_v13  ;;  %v2507_v13 = vsel %vm1390_vm5, %v5979_v15, 0.0 }
 0x4bb   : > { %v2454_v22 = vsub.f32 %v7798_v21, %v2422_v47  ;;  %v2174_v63 = vpack.c.b16 %v2169_v55, %v2168_v40  ;;  %v8059_v28 = vpop.eup %5980  ;;  %v2563_v21 = vpack.c.bf16 %v5979_v15, %v5979_v15  ;;  %v2455_v58 = vsub.f32 %v7802_v52, %v2425_v31 }
 0x4bc   : > { %5216 = vmatmul.msk.bf16.gmra.mxu0 %vm1390_vm5, %v2592_v36  ;;  %v2510_v31 = vsel %vm1390_vm5, %v5977_v19, 0.0 }
 0x4bd   : > { %v2477_v26 = vmul.f32 1.442695, %v2454_v22  ;;  %v8067_v27 = vpop.eup %5982  ;;  %v2587_v47 = vunpack.c.l.b16 %v2563_v21  ;;  %v2479_v52 = vmul.f32 1.442695, %v2455_v58 }
 0x4be   : > { %v8071_v36 = vpop.eup %5984  ;;  %v2082_v56 = vpack.c.bf16 %v8067_v27, %v8067_v27 }
 0x4bf   : > { %2034 = vadd.xlane.f32.xlu1 %v2033_v35  ;;  %2505 = vadd.xlane.f32.xlu0 %v2504_v43  ;;  %v2593_v35 = vpack.c.b16 %v2588_v34, %v2587_v47  ;;  %v8078_v43 = vpop.f32.mrf.mxu0  ;;  %v2081_v61 = vpack.c.bf16 %v8071_v36, %v8071_v36 }
 0x4c0   : > { %2934 = vmax.xlane.f32.xlu2 %v2933_v62  ;;  %v2171_v22 = vunpack.c.l.b16 %v2082_v56 }
 0x4c2   : > { %v2893_v42 = vpop.xlane.xlu0 %2892  ;;  %v2896_v40 = vpop.xlane.xlu1 %2895 }
 0x4c3   : > { %v2939_v53 = vsub.f32 %v7815_v51, %v2893_v42  ;;  %v2428_v32 = vpop.xlane.xlu2 %2427  ;;  %v2513_v51 = vsel %vm1390_vm5, %v8059_v28, 0.0  ;;  %v2940_v21 = vsub.f32 %v7823_v29, %v2896_v40 }
 0x4c4   : > { %5205 = vmatmul.msk.bf16.gmra.mxu1 %vm1390_vm5, %v2174_v63  ;;  %v2456_v20 = vsub.f32 %v7827_v2, %v2428_v32  ;;  %v2872_v32 = vpop.f32.mrf.mxu3 }
 0x4c5   : > { %v2955_v46 = vmul.f32 1.442695, %v2939_v53  ;;  %v2170_v53 = vunpack.c.l.b16 %v2081_v61  ;;  %v8096_v19 = vsel %vm7405_vm10, %v2872_v32, -1e+30 }
 0x4c6   : > { %v2481_v2 = vmul.f32 1.442695, %v2456_v20 }
 0x4c7   : > { %5986 = vpow2.f32 %v2955_v46  ;;  %2925 = vmax.xlane.f32.xlu1 %v2924_v9  ;;  %2931 = vmax.xlane.f32.xlu0 %v2930_v59  ;;  %v2175_v34 = vpack.c.b16 %v2171_v22, %v2170_v53  ;;  %v2565_v59 = vpack.c.bf16 %v8059_v28, %v8059_v28  ;;  %v8102_v29 = vpop.f32.mrf.mxu0 }
 0x4c8   : > { %2514 = vadd.xlane.f32.xlu2 %v2513_v51  ;;  %5988 = vpow2.f32 %v2477_v26  ;;  %v8092_v26 = vpop.f32.mrf.mxu1  ;;  %v2957_v51 = vmul.f32 1.442695, %v2940_v21 }
 0x4c9   : > { %5990 = vpow2.f32 %v2479_v52  ;;  %v2589_v28 = vunpack.c.l.b16 %v2565_v59 }
 0x4ca   : > { %v8076_v44 = vpop.xlane.xlu0 %2004  ;;  %5992 = vpow2.f32 %v2481_v2 }
 0x4cb   : > { %v8080_v55 = vpop.xlane.xlu2 %2007  ;;  %5994 = vpow2.f32 %v2957_v51 }
 0x4cc   : > { %5217 = vmatmul.msk.bf16.gmra.mxu0 %vm1390_vm5, %v2593_v35  ;;  %v2936_v35 = vsel %vm1390_vm5, %v8096_v19, -inf }
 0x4cd   : > { %v8085_v62 = vpop.eup %5986 }
 0x4ce   : > { %v2987_v42 = vsel %vm1390_vm5, %v8085_v62, 0.0  ;;  %v5989_v63 = vpop.eup %5988 }
 0x4cf   : > { %2508 = vadd.xlane.f32.xlu1 %v2507_v13  ;;  %2511 = vadd.xlane.f32.xlu0 %v2510_v31  ;;  %v2566_v58 = vpack.c.bf16 %v5989_v63, %v5989_v63  ;;  %v5991_v15 = vpop.eup %5990 }
 0x4d0   : > { %2988 = vadd.xlane.f32.xlu2 %v2987_v42  ;;  %v2519_v14 = vsel %vm1390_vm5, %v5991_v15, 0.0  ;;  %v5993_v61 = vpop.eup %5992  ;;  %v8111_v31 = vpop.f32.mrf.mxu1  ;;  %v2567_v32 = vpack.c.bf16 %v5991_v15, %v5991_v15 }
 0x4d1   : > { %v2590_v52 = vunpack.c.l.b16 %v2566_v58  ;;  %v2568_v2 = vpack.c.bf16 %v5993_v61, %v5993_v61  ;;  %v5995_v58 = vpop.eup %5994 }
 0x4d2   : > { %v2431_v46 = vpop.xlane.xlu0 %2430  ;;  %v2434_v20 = vpop.xlane.xlu1 %2433  ;;  %v2656_v59 = vunpack.c.l.b16 %v2567_v32  ;;  %v3052_v15 = vpack.c.bf16 %v5995_v58, %v5995_v58 }
 0x4d3   : > { %v2899_v9 = vpop.xlane.xlu2 %2898  ;;  %v2457_v40 = vsub.f32 %v7844_v7, %v2431_v46  ;;  %v2594_v13 = vpack.c.b16 %v2590_v52, %v2589_v28  ;;  %v2657_v46 = vunpack.c.l.b16 %v2568_v2 }
 0x4d4   : > { %v2941_v47 = vsub.f32 %v7849_v39, %v2899_v9  ;;  %5206 = vmatmul.msk.bf16.gmra.mxu1 %vm1390_vm5, %v2175_v34  ;;  %v2458_v39 = vsub.f32 %v7854_v48, %v2434_v20  ;;  %v2522_v34 = vsel %vm1390_vm5, %v5993_v61, 0.0  ;;  %v2516_v48 = vsel %vm1390_vm5, %v5989_v63, 0.0 }
 0x4d5   : > { %v2483_v42 = vmul.f32 1.442695, %v2457_v40  ;;  %v3051_v63 = vpack.c.bf16 %v8085_v62, %v8085_v62  ;;  %v3076_v40 = vunpack.c.l.b16 %v3052_v15 }
 0x4d6   : > { %v2959_v56 = vmul.f32 1.442695, %v2941_v47  ;;  %v2485_v7 = vmul.f32 1.442695, %v2458_v39  ;;  %v2664_v47 = vpack.c.b16 %v2657_v46, %v2656_v59  ;;  %v2990_v39 = vsel %vm1390_vm5, %v5995_v58, 0.0 }
 0x4d7   : > { %2937 = vmax.xlane.f32.xlu1 %v2936_v35  ;;  %2520 = vadd.xlane.f32.xlu0 %v2519_v14 }
 0x4d8   : > { %5996 = vpow2.f32 %v2959_v56  ;;  %v2136_v21 = vpop.f32.mrf.mxu0  ;;  %v8126_v14 = vpop.f32.mrf.mxu1 }
 0x4d9   : > { %5998 = vpow2.f32 %v2483_v42 }
 0x4da   : > { %v8109_v22 = vpop.xlane.xlu0 %2010  ;;  %6000 = vpow2.f32 %v2485_v7  ;;  %v2437_v28 = vpop.xlane.xlu1 %2436 }
 0x4db   : > { %v8113_v53 = vpop.xlane.xlu2 %2013  ;;  %6002 = vrcp.f32 %v8080_v55  ;;  %v2459_v58 = vsub.f32 %v7871_v33, %v2437_v28 }
 0x4dc   : > { %5218 = vmatmul.msk.bf16.gmra.mxu0 %vm1390_vm5, %v2594_v13 }
 0x4dd   : > { %v2487_v33 = vmul.f32 1.442695, %v2459_v58 }
 0x4de   : > { %v8118_v9 = vpop.eup %5996 }
 0x4df   : > { %2523 = vadd.xlane.f32.xlu0 %v2522_v34  ;;  %2517 = vadd.xlane.f32.xlu1 %v2516_v48  ;;  %v2993_v51 = vsel %vm1390_vm5, %v8118_v9, 0.0  ;;  %v5999_v35 = vpop.eup %5998 }
 0x4e0   : > { %2994 = vadd.xlane.f32.xlu2 %v2993_v51  ;;  %v8130_v2 = vpop.eup %6000  ;;  %v2138_v13 = vpop.f32.mrf.mxu0  ;;  %v2525_v62 = vsel %vm1390_vm5, %v5999_v35, 0.0  ;;  %v2569_v59 = vpack.c.bf16 %v5999_v35, %v5999_v35 }
 0x4e1   : > { %v2570_v55 = vpack.c.bf16 %v8130_v2, %v8130_v2  ;;  %v6003_v48 = vpop.eup %6002 }
 0x4e2   : > { %v2902_v52 = vpop.xlane.xlu0 %2901  ;;  %v2230_v51 = vmul.f32 %v6003_v48, %v2138_v13 }
 0x4e3   : > { %v2942_v20 = vsub.f32 %v7880_v49, %v2902_v52  ;;  %v2440_v56 = vpop.xlane.xlu2 %2439  ;;  %v3075_v49 = vunpack.c.l.b16 %v3051_v63  ;;  %v2659_v52 = vunpack.c.l.b16 %v2570_v55  ;;  %v2042_v55 = vsel %vm1390_vm5, %v8021_v57, 0.0 }
 0x4e4   : > { %5219 = vmatmul.msk.bf16.vlgmr.msrb.gmra.mxu1 %vm1390_vm5, %v2664_v47  ;;  %v2460_v42 = vsub.f32 %v7890_v8, %v2440_v56  ;;  %v8143_v56 = vpop.f32.mrf.mxu1 }
 0x4e5   : > { %v2961_v61 = vmul.f32 1.442695, %v2942_v20  ;;  %v3083_v32 = vpack.c.b16 %v3076_v40, %v3075_v49 }
 0x4e6   : > { %v2489_v15 = vmul.f32 1.442695, %v2460_v42 }
 0x4e7   : > { %6004 = vpow2.f32 %v2961_v61  ;;  %2991 = vadd.xlane.f32.xlu1 %v2990_v39  ;;  %v2908_v61 = vpop.xlane.xlu1 %2907 }
 0x4e8   : > { %6006 = vrcp.f32 %v8076_v44  ;;  %2526 = vadd.xlane.f32.xlu2 %v2525_v62  ;;  %v8145_v35 = vpop.f32.mrf.mxu0  ;;  %v2944_v49 = vsub.f32 %v7886_v54, %v2908_v61 }
 0x4ea   : > { %v2905_v7 = vpop.xlane.xlu0 %2904 }
 0x4eb   : > { %v2943_v46 = vsub.f32 %v7902_v3, %v2905_v7  ;;  %v8139_v34 = vpop.xlane.xlu2 %2019  ;;  %v2658_v3 = vunpack.c.l.b16 %v2569_v59 }
 0x4ec   : > { %5231 = vmatmul.msk.bf16.vlgmr.msra.gmra.mxu0 %vm1390_vm5, %v3083_v32  ;;  %v8159_v59 = vpop.f32.mrf.mxu1 }
 0x4ed   : > { %v6005_v44 = vpop.eup %6004  ;;  %v2963_v8 = vmul.f32 1.442695, %v2943_v46  ;;  %v2665_v13 = vpack.c.b16 %v2659_v52, %v2658_v3  ;;  %v2965_v46 = vmul.f32 1.442695, %v2944_v49 }
 0x4ee   : > { %v6007_v47 = vpop.eup %6006  ;;  %v2996_v20 = vsel %vm1390_vm5, %v6005_v44, 0.0  ;;  %v3054_v28 = vpack.c.bf16 %v6005_v44, %v6005_v44 }
 0x4ef   : > { %v2229_v63 = vmul.f32 %v6007_v47, %v2136_v21  ;;  %6008 = vpow2.f32 %v2963_v8  ;;  %2997 = vadd.xlane.f32.xlu1 %v2996_v20  ;;  %v3053_v21 = vpack.c.bf16 %v8118_v9, %v8118_v9 }
 0x4f0   : > { %6010 = vpow2.f32 %v2489_v15  ;;  %v3078_v32 = vunpack.c.l.b16 %v3054_v28  ;;  %v2143_v15 = vpop.f32.mrf.mxu0 }
 0x4f1   : > { %v5752_v40 = vpack.i.bf16 %v2230_v51, %v2229_v63  ;;  %6012 = vpow2.f32 %v2487_v33  ;;  %v3077_v54 = vunpack.c.l.b16 %v3053_v21 }
 0x4f2   : > { %v8147_v39 = vpop.xlane.xlu0 %2016  ;;  %6014 = vpow2.f32 %v2965_v46 }
 0x4f3   : > { %5753 = vrot.lane.b32.xlu0 %v5752_v40, %s6488_s23  ;;  %v2443_v62 = vpop.xlane.xlu2 %2442  ;;  %v3084_v51 = vpack.c.b16 %v3078_v32, %v3077_v54  ;;  %v2911_v40 = vpop.xlane.xlu1 %2910 }
 0x4f4   : > { %5220 = vmatmul.msk.bf16.gmra.mxu1 %vm1390_vm5, %v2665_v13  ;;  %v2461_v57 = vsub.f32 %v7922_v1, %v2443_v62  ;;  %v8169_v49 = vpop.f32.mrf.mxu1  ;;  %v2945_v21 = vsub.f32 %v7907_v5, %v2911_v40 }
 0x4f5   : > { %v6009_v42 = vpop.eup %6008 }
 0x4f6   : > { %v2999_v7 = vsel %vm1390_vm5, %v6009_v42, 0.0  ;;  %v8157_v58 = vpop.eup %6010  ;;  %v2491_v3 = vmul.f32 1.442695, %v2461_v57  ;;  %v3055_v1 = vpack.c.bf16 %v6009_v42, %v6009_v42 }
 0x4f7   : > { %2043 = vadd.xlane.f32.xlu1 %v2042_v55  ;;  %3000 = vadd.xlane.f32.xlu2 %v2999_v7  ;;  %v6013_v48 = vpop.eup %6012  ;;  %v2572_v9 = vpack.c.bf16 %v8157_v58, %v8157_v58 }
 0x4f8   : > { %v2571_v47 = vpack.c.bf16 %v6013_v48, %v6013_v48  ;;  %v2531_v33 = vsel %vm1390_vm5, %v6013_v48, 0.0  ;;  %v6015_v28 = vpop.eup %6014  ;;  %v3079_v7 = vunpack.c.l.b16 %v3055_v1 }
 0x4f9   : > { %v2661_v20 = vunpack.c.l.b16 %v2572_v9  ;;  %v3056_v62 = vpack.c.bf16 %v6015_v28, %v6015_v28  ;;  %v2146_v32 = vpop.f32.mrf.mxu0  ;;  %v3002_v46 = vsel %vm1390_vm5, %v6015_v28, 0.0 }
 0x4fa   : > { %v2446_v44 = vpop.xlane.xlu0 %2445  ;;  %v2660_v61 = vunpack.c.l.b16 %v2571_v47 }
 0x4fb   : > { %v2462_v8 = vsub.f32 %v7933_v37, %v2446_v44  ;;  %v2914_v63 = vpop.xlane.xlu2 %2913  ;;  %v3080_v54 = vunpack.c.l.b16 %v3056_v62  ;;  %v8181_v44 = vpop.xlane.xlu1 %2022 }
 0x4fc   : > { %5232 = vmatmul.msk.bf16.gmra.mxu0 %vm1390_vm5, %v3084_v51  ;;  %v2946_v13 = vsub.f32 %v7939_v10, %v2914_v63  ;;  %v2666_v37 = vpack.c.b16 %v2661_v20, %v2660_v61 }
 0x4fd   : > { %v2493_v52 = vmul.f32 1.442695, %v2462_v8  ;;  %v3085_v57 = vpack.c.b16 %v3080_v54, %v3079_v7 }
 0x4fe   : > { %v2969_v55 = vmul.f32 1.442695, %v2946_v13 }
 0x4ff   : > { %2532 = vadd.xlane.f32.xlu1 %v2531_v33  ;;  %6016 = vpow2.f32 %v2493_v52  ;;  %v8189_v52 = vpop.f32.mrf.mxu1 }
 0x500   : > { %6018 = vrcp.f32 %v8113_v53  ;;  %v2967_v53 = vmul.f32 1.442695, %v2945_v21 }
 0x501   : > { %6020 = vpow2.f32 %v2491_v3  ;;  %v2148_v33 = vpop.f32.mrf.mxu0 }
 0x502   : > { %6022 = vrcp.f32 %v8109_v22  ;;  %v8177_v48 = vpop.xlane.xlu0 %2025 }
 0x503   : > { %6024 = vpow2.f32 %v2969_v55 }
 0x504   : > { %5221 = vmatmul.msk.bf16.gmra.mxu1 %vm1390_vm5, %v2666_v37  ;;  %6026 = vpow2.f32 %v2967_v53 }
 0x505   : > { %v8175_v10 = vpop.eup %6016  ;;  %6028 = vrcp.f32 %v8139_v34 }
 0x506   : > { %v6019_v42 = vpop.eup %6018  ;;  %v2574_v51 = vpack.c.bf16 %v8175_v10, %v8175_v10  ;;  %6030 = vrcp.f32 %v8147_v39 }
 0x507   : > { %3003 = vadd.xlane.f32.xlu1 %v3002_v46  ;;  %v8179_v5 = vpop.eup %6020  ;;  %v2232_v9 = vmul.f32 %v6019_v42, %v2143_v15  ;;  %v8205_v21 = vpop.f32.mrf.mxu1 }
 0x508   : > { %v6023_v22 = vpop.eup %6022  ;;  %v2573_v47 = vpack.c.bf16 %v8179_v5, %v8179_v5  ;;  %v2663_v15 = vunpack.c.l.b16 %v2574_v51 }
 0x509   : > { %v2231_v8 = vmul.f32 %v6023_v22, %v8145_v35  ;;  %v8191_v63 = vpop.eup %6024  ;;  %v2528_v22 = vsel %vm1390_vm5, %v8130_v2, 0.0 }
 0x50a   : > { %v2662_v3 = vunpack.c.l.b16 %v2573_v47  ;;  %v8194_v61 = vpop.eup %6026  ;;  %v3058_v35 = vpack.c.bf16 %v8191_v63, %v8191_v63  ;;  %v2917_v40 = vpop.xlane.xlu0 %2916 }
 0x50b   : > { %v5757_v20 = vpack.i.bf16 %v2232_v9, %v2231_v8  ;;  %v3057_v1 = vpack.c.bf16 %v8194_v61, %v8194_v61  ;;  %v6029_v55 = vpop.eup %6028  ;;  %v2947_v53 = vsub.f32 %v7955_v12, %v2917_v40 }
 0x50c   : > { %5233 = vmatmul.msk.bf16.gmra.mxu0 %vm1390_vm5, %v3085_v57  ;;  %v2667_v13 = vpack.c.b16 %v2663_v15, %v2662_v3  ;;  %v3082_v37 = vunpack.c.l.b16 %v3058_v35  ;;  %v6031_v7 = vpop.eup %6030  ;;  %v2234_v46 = vmul.f32 %v6029_v55, %v2148_v33  ;;  %v2039_v3 = vsel %vm1390_vm5, %v8027_v41, 0.0 }
 0x50d   : > { %v3081_v34 = vunpack.c.l.b16 %v3057_v1  ;;  %v2233_v39 = vmul.f32 %v6031_v7, %v2146_v32  ;;  %v2971_v57 = vmul.f32 1.442695, %v2947_v53 }
 0x50f   : > { %5758 = vrot.lane.b32.xlu2 %v5757_v20, %s6488_s23  ;;  %v3086_v9 = vpack.c.b16 %v3082_v37, %v3081_v34  ;;  %v5762_v51 = vpack.i.bf16 %v2234_v46, %v2233_v39 }
 0x511   : > { %v2151_v62 = vpop.f32.mrf.mxu0 }
 0x512   : > { %v8199_v28 = vpop.xlane.xlu1 %2496 }
 0x514   : > { %5222 = vmatmul.msk.bf16.gmra.mxu1 %vm1390_vm5, %v2667_v13 }
 0x519   : > { %v2209_v8 = vpop.f32.mrf.mxu1  ;;  %v2153_v20 = vpop.f32.mrf.mxu0 }
 0x51a   : > { %v2029_v42 = vpop.xlane.xlu1 %2028  ;;  %v8208_v54 = vpop.xlane.xlu0 %2499 }
 0x51b   : > { %6032 = vrcp.f32 %v2029_v42 }
 0x51c   : > { %5234 = vmatmul.msk.bf16.gmra.mxu0 %vm1390_vm5, %v3086_v9  ;;  %6034 = vpow2.f32 %v2971_v57 }
 0x51d   : > { %2529 = vadd.xlane.f32.xlu0 %v2528_v22 }
 0x520   : > { %5763 = vrot.lane.b32.xlu1 %v5762_v51, %s6488_s23 }
 0x521   : > { %v6033_v47 = vpop.eup %6032  ;;  %v2211_v1 = vpop.f32.mrf.mxu1 }
 0x522   : > { %v8214_v12 = vmul.f32 %v6033_v47, %v2209_v8  ;;  %v2920_v15 = vpop.xlane.xlu1 %2919  ;;  %v2032_v33 = vpop.xlane.xlu0 %2031 }
 0x523   : > { %v2948_v32 = vsub.f32 %v7989_v24, %v2920_v15  ;;  %6036 = vrcp.f32 %v2032_v33  ;;  %v8219_v35 = vpop.eup %6034  ;;  %v2038_v40 = vpop.xlane.xlu2 %2037 }
 0x524   : > { %v3059_v24 = vpack.c.bf16 %v8219_v35, %v8219_v35 }
 0x525   : > { %v2973_v2 = vmul.f32 1.442695, %v2948_v32  ;;  %2040 = vadd.xlane.f32.xlu0 %v2039_v3 }
 0x526   : > { %v3148_v42 = vunpack.c.l.b16 %v3059_v24 }
 0x527   : > { %6038 = vpow2.f32 %v2973_v2 }
 0x528   : > { %6040 = vrcp.f32 %v8177_v48 }
 0x529   : > { %v6037_v13 = vpop.eup %6036  ;;  %v8221_v37 = vpop.f32.mrf.mxu0  ;;  %6042 = vrcp.f32 %v8181_v44 }
 0x52a   : > { %v8223_v55 = vmul.f32 %v6037_v13, %v2211_v1  ;;  %v8225_v34 = vpop.xlane.xlu1 %2502  ;;  %v2923_v7 = vpop.xlane.xlu0 %2922  ;;  %6044 = vrcp.f32 %v2038_v40  ;;  %v2534_v13 = vsel %vm1390_vm5, %v8157_v58, 0.0 }
 0x52b   : > { %v2929_v57 = vpop.xlane.xlu2 %2928  ;;  %v2949_v15 = vsub.f32 %v8009_v11, %v2923_v7 }
 0x52c   : > { %v5797_v41 = vpack.i.bf16 %v8223_v55, %v8214_v12 }
 0x52d   : > { %v8232_v46 = vpop.eup %6038  ;;  %v2975_v2 = vmul.f32 1.442695, %v2949_v15 }
 0x52e   : > { %v3060_v53 = vpack.c.bf16 %v8232_v46, %v8232_v46  ;;  %v6041_v51 = vpop.eup %6040 }
 0x52f   : > { %v2236_v47 = vmul.f32 %v6041_v51, %v2153_v20  ;;  %v6043_v33 = vpop.eup %6042 }
 0x530   : > { %v3149_v9 = vunpack.c.l.b16 %v3060_v53  ;;  %v2235_v44 = vmul.f32 %v6043_v33, %v2151_v62  ;;  %v6045_v1 = vpop.eup %6044 }
 0x531   : > { %v2214_v39 = vpop.f32.mrf.mxu1  ;;  %v8237_v22 = vpop.f32.mrf.mxu0 }
 0x532   : > { %v3156_v48 = vpack.c.b16 %v3149_v9, %v3148_v42  ;;  %v2035_v8 = vpop.xlane.xlu1 %2034  ;;  %v8240_v32 = vpop.xlane.xlu0 %2505  ;;  %v5767_v3 = vpack.i.bf16 %v2236_v47, %v2235_v44 }
 0x533   : > { %6046 = vrcp.f32 %v2035_v8  ;;  %v2935_v42 = vpop.xlane.xlu2 %2934 }
 0x534   : > { %5235 = vmatmul.msk.bf16.vlgmr.msra.gmra.mxu1 %vm1390_vm5, %v3156_v48  ;;  %6048 = vpow2.f32 %v2975_v2  ;;  %v3005_v48 = vsel %vm1390_vm5, %v8194_v61, 0.0 }
 0x538   : > { %2535 = vadd.xlane.f32.xlu2 %v2534_v13 }
 0x539   : > { %v6047_v40 = vpop.eup %6046  ;;  %v2216_v24 = vpop.f32.mrf.mxu1  ;;  %5768 = vrot.lane.b32.xlu0 %v5767_v3, %s6488_s23 }
 0x53a   : > { %v8245_v53 = vpop.f32.mrf.mxu0  ;;  %v8248_v11 = vmul.f32 %v6047_v40, %v2214_v39  ;;  %v8250_v20 = vmul.f32 %v6045_v1, %v2216_v24  ;;  %v2926_v7 = vpop.xlane.xlu1 %2925 }
 0x53b   : > { %v2950_v62 = vsub.f32 %v8051_v17, %v2926_v7  ;;  %v2932_v51 = vpop.xlane.xlu0 %2931  ;;  %v6049_v8 = vpop.eup %6048  ;;  %v2951_v17 = vsub.f32 %v8014_v38, %v2929_v57  ;;  %v3008_v57 = vsel %vm1390_vm5, %v8191_v63, 0.0  ;;  %v3011_v63 = vsel %vm1390_vm5, %v8219_v35, 0.0 }
 0x53c   : > { %v2952_v39 = vsub.f32 %v8056_v6, %v2932_v51  ;;  %v3061_v44 = vpack.c.bf16 %v6049_v8, %v6049_v8  ;;  %v8267_v61 = vpop.xlane.xlu2 %2514  ;;  %v3017_v6 = vsel %vm1390_vm5, %v6049_v8, 0.0 }
 0x53d   : > { %v2977_v9 = vmul.f32 1.442695, %v2950_v62  ;;  %v2979_v1 = vmul.f32 1.442695, %v2951_v17 }
 0x53e   : > { %v2981_v2 = vmul.f32 1.442695, %v2952_v39  ;;  %v3150_v40 = vunpack.c.l.b16 %v3061_v44 }
 0x53f   : > { %6050 = vpow2.f32 %v2977_v9 }
 0x540   : > { %3006 = vadd.xlane.f32.xlu2 %v3005_v48 }
 0x541   : > { %v8258_v47 = vpop.f32.mrf.mxu1 }
 0x542   : > { %v8260_v15 = vpop.f32.mrf.mxu0  ;;  %v2509_v33 = vpop.xlane.xlu1 %2508 }
 0x543   : > { %6052 = vrcp.f32 %v2509_v33 }
 0x544   : > { %6054 = vpow2.f32 %v2981_v2  ;;  %v8279_v39 = vpop.xlane.xlu2 %2988 }
 0x545   : > { %v8263_v3 = vpop.eup %6050  ;;  %6056 = vpow2.f32 %v2979_v1 }
 0x546   : > { %v3062_v13 = vpack.c.bf16 %v8263_v3, %v8263_v3  ;;  %6058 = vrcp.f32 %v8208_v54 }
 0x547   : > { %6060 = vrcp.f32 %v8199_v28 }
 0x548   : > { %v3151_v24 = vunpack.c.l.b16 %v3062_v13  ;;  %3018 = vadd.xlane.f32.xlu2 %v3017_v6  ;;  %v2953_v6 = vsub.f32 %v8037_v4, %v2935_v42 }
 0x549   : > { %v6053_v7 = vpop.eup %6052  ;;  %v8270_v62 = vpop.f32.mrf.mxu1 }
 0x54a   : > { %v2638_v38 = vpop.f32.mrf.mxu0  ;;  %v2938_v51 = vpop.xlane.xlu1 %2937  ;;  %3009 = vadd.xlane.f32.xlu1 %v3008_v57  ;;  %v3157_v48 = vpack.c.b16 %v3151_v24, %v3150_v40 }
 0x54b   : > { %v8274_v9 = vmul.f32 %v6053_v7, %v2638_v38  ;;  %v8277_v8 = vpop.eup %6054  ;;  %v2954_v17 = vsub.f32 %v8096_v19, %v2938_v51  ;;  %v2983_v7 = vmul.f32 1.442695, %v2953_v6 }
 0x54c   : > { %5236 = vmatmul.msk.bf16.gmra.mxu1 %vm1390_vm5, %v3157_v48  ;;  %v6057_v33 = vpop.eup %6056  ;;  %v3064_v13 = vpack.c.bf16 %v8277_v8, %v8277_v8 }
 0x54d   : > { %v3063_v40 = vpack.c.bf16 %v6057_v33, %v6057_v33  ;;  %v2985_v19 = vmul.f32 1.442695, %v2954_v17  ;;  %v6059_v51 = vpop.eup %6058 }
 0x54e   : > { %v3153_v24 = vunpack.c.l.b16 %v3064_v13  ;;  %v2722_v54 = vmul.f32 %v6059_v51, %v8237_v22  ;;  %v6061_v42 = vpop.eup %6060 }
 0x54f   : > { %v3152_v38 = vunpack.c.l.b16 %v3063_v40  ;;  %6062 = vpow2.f32 %v2985_v19  ;;  %v2721_v28 = vmul.f32 %v6061_v42, %v8221_v37 }
 0x550   : > { %6064 = vpow2.f32 %v2983_v7 }
 0x551   : > { %v8282_v44 = vpop.f32.mrf.mxu1  ;;  %v3158_v4 = vpack.c.b16 %v3153_v24, %v3152_v38  ;;  %v5772_v17 = vpack.i.bf16 %v2722_v54, %v2721_v28  ;;  %v3014_v24 = vsel %vm1390_vm5, %v8232_v46, 0.0  ;;  %6066 = vrcp.f32 %v8240_v32  ;;  %v2512_v28 = vpop.xlane.xlu0 %2511 }
 0x552   : > { %v8284_v2 = vpop.f32.mrf.mxu0  ;;  %v2518_v1 = vpop.xlane.xlu1 %2517  ;;  %3012 = vadd.xlane.f32.xlu1 %v3011_v63  ;;  %v3023_v63 = vsel %vm1390_vm5, %v6057_v33, 0.0  ;;  %6068 = vrcp.f32 %v8225_v34 }
 0x553   : > { %v8293_v57 = vpop.xlane.xlu2 %2994 }
 0x555   : > { %v8301_v13 = vpop.eup %6062 }
 0x556   : > { %v8304_v6 = vpop.eup %6064  ;;  %v3066_v22 = vpack.c.bf16 %v8301_v13, %v8301_v13 }
 0x557   : > { %v3065_v37 = vpack.c.bf16 %v8304_v6, %v8304_v6  ;;  %v6067_v42 = vpop.eup %6066 }
 0x558   : > { %v3155_v38 = vunpack.c.l.b16 %v3066_v22  ;;  %v2724_v34 = vmul.f32 %v6067_v42, %v8260_v15  ;;  %v6069_v32 = vpop.eup %6068 }
 0x559   : > { %v8295_v35 = vpop.f32.mrf.mxu1  ;;  %v3154_v51 = vunpack.c.l.b16 %v3065_v37 }
 0x55a   : > { %v2643_v48 = vpop.f32.mrf.mxu0  ;;  %v2992_v58 = vpop.xlane.xlu1 %2991  ;;  %3024 = vadd.xlane.f32.xlu1 %v3023_v63 }
 0x55b   : > { %v2527_v33 = vpop.xlane.xlu2 %2526  ;;  %v3159_v46 = vpack.c.b16 %v3155_v38, %v3154_v51 }
 0x55c   : > { %5237 = vmatmul.msk.bf16.gmra.mxu1 %vm1390_vm5, %v3158_v4  ;;  %v3020_v4 = vsel %vm1390_vm5, %v8263_v3, 0.0  ;;  %6070 = vrcp.f32 %v2527_v33 }
 0x55d   : > { %6072 = vrcp.f32 %v7863_v18 }
 0x55e   : > { %6074 = vrcp.f32 %v2518_v1 }
 0x55f   : > { %6076 = vrcp.f32 %v8267_v61 }
 0x560   : > { %5773 = vrot.lane.b32.xlu2 %v5772_v17, %s6487_s17  ;;  %6078 = vrcp.f32 %v2992_v58 }
 0x561   : > { %v8306_v40 = vpop.f32.mrf.mxu1  ;;  %6080 = vrcp.f32 %v8279_v39 }
 0x562   : > { %v2645_v19 = vpop.f32.mrf.mxu0  ;;  %v8314_v7 = vpop.xlane.xlu1 %2997 }
 0x563   : > { %3015 = vadd.xlane.f32.xlu0 %v3014_v24  ;;  %v2723_v24 = vmul.f32 %v6069_v32, %v8245_v53  ;;  %v6071_v3 = vpop.eup %6070 }
 0x564   : > { %v6073_v38 = vpop.eup %6072 }
 0x565   : > { %v5777_v37 = vpack.i.bf16 %v2724_v34, %v2723_v24  ;;  %v1739_v15 = vmul.f32 %v6073_v38, %v7976_v30  ;;  %v6075_v53 = vpop.eup %6074  ;;  %v8341_v34 = vpop.xlane.xlu0 %2520 }
 0x566   : > { %v2728_v61 = vmul.f32 %v6075_v53, %v2645_v19  ;;  %v6077_v42 = vpop.eup %6076 }
 0x567   : > { %v2727_v24 = vmul.f32 %v6077_v42, %v2643_v48  ;;  %v6079_v19 = vpop.eup %6078  ;;  %v3026_v42 = vsel %vm1390_vm5, %v8277_v8, 0.0 }
 0x568   : > { %v6081_v38 = vpop.eup %6080 }
 0x569   : > { %v8318_v63 = vpop.f32.mrf.mxu1  ;;  %v5787_v30 = vpack.i.bf16 %v2728_v61, %v2727_v24  ;;  %v2537_v61 = vsel %vm1390_vm5, %v8179_v5, 0.0  ;;  %v2540_v24 = vsel %vm1390_vm5, %v8175_v10, 0.0 }
 0x56a   : > { %v8320_v54 = vpop.xlane.xlu2 %3000  ;;  %v3120_v17 = vpop.f32.mrf.mxu0 }
 0x56b   : > { %3021 = vadd.xlane.f32.xlu0 %v3020_v4  ;;  %v2044_v22 = vpop.xlane.xlu1 %2043  ;;  %v1511_v4 = vsel %vm1390_vm5, %v7682_v0, 0.0 }
 0x56c   : > { %5238 = vmatmul.msk.bf16.gmra.mxu1 %vm1390_vm5, %v3159_v46 }
 0x56d   : > { %v8349_v58 = vpop.xlane.xlu0 %2523 }
 0x571   : > { %v2706_v33 = vpop.f32.mrf.mxu1 }
 0x572   : > { %v8329_v51 = vmul.f32 %v6071_v3, %v2706_v33  ;;  %v8331_v18 = vpop.permute.xlu2 %5758  ;;  %v3122_v32 = vpop.f32.mrf.mxu0 }
 0x573   : > { %v5760_v1 = vunpack.i.l.bf16 %v8331_v18  ;;  %1512 = vadd.xlane.f32.xlu0 %v1511_v4  ;;  %5778 = vrot.lane.b32.xlu1 %v5777_v37, %s6487_s17  ;;  %v2533_v0 = vpop.xlane.xlu1 %2532  ;;  %v2048_v37 = vsel %vm1390_vm5, %v8067_v27, 0.0  ;;  %v3214_v33 = vmul.f32 %v6079_v19, %v3122_v32  ;;  %v3213_v4 = vmul.f32 %v6081_v38, %v3120_v17 }
 0x574   : > { %6082 = vrcp.f32 %v2533_v0 }
 0x575   : > { %v8339_v46 = vsel %vm1211_vm1, %v1739_v15, %v5760_v1  ;;  %v5792_v39 = vpack.i.bf16 %v3214_v33, %v3213_v4  ;;  %v8356_v27 = vpop.permute.xlu0 %5753  ;;  %6084 = vrcp.f32 %v7914_v50 }
 0x576   : > { %6086 = vrcp.f32 %v8314_v7 }
 0x577   : > { %6088 = vrcp.f32 %v2512_v28 }
 0x578   : > { %6090 = vrcp.f32 %v8293_v57 }
 0x579   : > { %v8344_v3 = vpop.f32.mrf.mxu1  ;;  %6092 = vrcp.f32 %v2044_v22 }
 0x57a   : > { %v3125_v48 = vpop.f32.mrf.mxu0  ;;  %v6083_v15 = vpop.eup %6082 }
 0x57b   : > { %2049 = vadd.xlane.f32.xlu0 %v2048_v37  ;;  %5788 = vrot.lane.b32.xlu1 %v5787_v30, %s6487_s17  ;;  %v3004_v17 = vpop.xlane.xlu1 %3003  ;;  %v6085_v5 = vpop.eup %6084 }
 0x57c   : > { %v1741_v37 = vmul.f32 %v6085_v5, %v8023_v23  ;;  %v6087_v50 = vpop.eup %6086 }
 0x57d   : > { %v6089_v38 = vpop.eup %6088 }
 0x57e   : > { %v6091_v7 = vpop.eup %6090 }
 0x57f   : > { %v3215_v23 = vmul.f32 %v6091_v7, %v3125_v48  ;;  %v6093_v28 = vpop.eup %6092  ;;  %v5566_v7 = vld [vmem:[#allocation8 + $0x38] sm:$0xff] }
 0x580   : > { %3546 = vmatpush.bf16.msra.mxu2 %v5566_v7 }
 0x581   : > { %v2711_v1 = vpop.f32.mrf.mxu1 }
 0x582   : > { %v8351_v53 = vmul.f32 %v6083_v15, %v2711_v1  ;;  %v3127_v32 = vpop.f32.mrf.mxu0  ;;  %v2726_v15 = vmul.f32 %v6089_v38, %v8284_v2 }
 0x583   : > { %2538 = vadd.xlane.f32.xlu0 %v2537_v61  ;;  %5793 = vrot.lane.b32.xlu1 %v5792_v39, %s6486_s2  ;;  %v3216_v4 = vmul.f32 %v6087_v50, %v3127_v32 }
 0x584   : > { %v5782_v61 = vpack.i.bf16 %v2726_v15, %v8274_v9  ;;  %v9022_v9 = vld [vmem:[#allocation32_spill] sm:$0xff]  ;;  %v3029_v15 = vsel %vm1390_vm5, %v8304_v6, 0.0  ;;  %v2045_v6 = vsel %vm1390_vm5, %v8071_v36, 0.0 }
 0x585   : > { %v5802_v39 = vpack.i.bf16 %v3216_v4, %v3215_v23 }
 0x589   : > { %3027 = vadd.xlane.f32.xlu2 %v3026_v42  ;;  %v8379_v42 = vmul.f32 %v6093_v28, %v8270_v62  ;;  %v8402_v23 = vpop.f32.mrf.mxu1  ;;  %v5564_v28 = vld [vmem:[#allocation8 + $0x28] sm:$0xff] }
 0x58a   : > { %v3130_v19 = vpop.f32.mrf.mxu0 }
 0x58b   : > { %2541 = vadd.xlane.f32.xlu0 %v2540_v24 }
 0x590   : > { %v8363_v0 = vpop.xlane.xlu0 %2529 }
 0x592   : > { %v8366_v30 = vpop.permute.xlu1 %5763  ;;  %v3132_v57 = vpop.f32.mrf.mxu0 }
 0x593   : > { %v5765_v8 = vunpack.i.l.bf16 %v8366_v30 }
 0x595   : > { %v8372_v10 = vsel %vm1211_vm1, %v1741_v37, %v5765_v8 }
 0x598   : > { %v2041_v33 = vpop.xlane.xlu0 %2040 }
 0x599   : > { %6094 = vrcp.f32 %v2041_v33 }
 0x59a   : > { %6096 = vrcp.f32 %v3004_v17 }
 0x59b   : > { %6098 = vrcp.f32 %v8320_v54 }
 0x59c   : > { %6100 = vrcp.f32 %v7916_v60 }
 0x59d   : > { %6102 = vrcp.f32 %v9022_v9  ;;  %v5561_v9 = vld [vmem:[#allocation8 + $0x10] sm:$0xff] }
 0x59e   : > { %6104 = vrcp.f32 %v8349_v58 }
 0x59f   : > { %v6095_v1 = vpop.eup %6094  ;;  %5803 = vrot.lane.b32.xlu0 %v5802_v39, %s6486_s2  ;;  %6106 = vrcp.f32 %v8341_v34 }
 0x5a0   : > { %v6097_v22 = vpop.eup %6096  ;;  %v8382_v32 = vmul.f32 %v6095_v1, %v8258_v47  ;;  %v9023_v47 = vld [vmem:[#allocation21_spill] sm:$0xff]  ;;  %v5563_v1 = vld [vmem:[#allocation8 + $0x20] sm:$0xff] }
 0x5a1   : > { %v3218_v17 = vmul.f32 %v6097_v22, %v3132_v57  ;;  %5783 = vrot.lane.b32.xlu2 %v5782_v61, %s6487_s17  ;;  %v6099_v2 = vpop.eup %6098  ;;  %v1514_v8 = vsel %vm1390_vm5, %v9023_v47, 0.0 }
 0x5a2   : > { %v5842_v54 = vpack.i.bf16 %v8379_v42, %v8382_v32  ;;  %v3217_v48 = vmul.f32 %v6099_v2, %v3130_v19  ;;  %v6101_v62 = vpop.eup %6100 }
 0x5a3   : > { %v6103_v5 = vpop.eup %6102  ;;  %v1743_v50 = vmul.f32 %v6101_v62, %v8078_v43  ;;  %v5565_v43 = vld [vmem:[#allocation8 + $0x30] sm:$0xff] }
 0x5a4   : > { %v5807_v24 = vpack.i.bf16 %v3218_v17, %v3217_v48  ;;  %v1744_v33 = vmul.f32 %v6103_v5, %v8102_v29  ;;  %3547 = vmatpush.bf16.msra.mxu2 %v5565_v43  ;;  %v8405_v29 = vpop.f32.mrf.mxu1  ;;  %v6105_v39 = vpop.eup %6104  ;;  %v5562_v48 = vld [vmem:[#allocation8 + $0x18] sm:$0xff]  ;;  %v5559_v5 = vld [vmem:[#allocation8] sm:$0xff] }
 0x5a5   : > { %v2730_v57 = vmul.f32 %v6105_v39, %v8318_v63  ;;  %v6107_v61 = vpop.eup %6106  ;;  %v3032_v63 = vsel %vm1390_vm5, %v8301_v13, 0.0 }
 0x5a6   : > { %v2729_v17 = vmul.f32 %v6107_v61, %v8306_v40  ;;  %v5560_v40 = vld [vmem:[#allocation8 + $0x8] sm:$0xff] }
 0x5a7   : > { %5808 = vrot.lane.b32.xlu0 %v5807_v24, %s6486_s2 }
 0x5a8   : > { %3548 = vmatpush.bf16.msra.mxu2 %v5564_v28  ;;  %v5812_v58 = vpack.i.bf16 %v2730_v57, %v2729_v17  ;;  %v9024_v17 = vld [vmem:[#allocation27_spill] sm:$0xff] }
 0x5ab   : > { %v5769_v37 = vpop.permute.xlu0 %5768  ;;  %v8415_v34 = vpop.xlane.xlu2 %2535 }
 0x5ac   : > { %v5771_v38 = vunpack.i.h.bf16 %v5769_v37  ;;  %v5770_v4 = vunpack.i.l.bf16 %v5769_v37  ;;  %3549 = vmatpush.bf16.msra.mxu2 %v5563_v1  ;;  %v8412_v2 = vpop.f32.mrf.mxu1  ;;  %v3135_v37 = vpop.f32.mrf.mxu0 }
 0x5ad   : > { %1515 = vadd.xlane.f32.xlu1 %v1514_v8 }
 0x5ae   : > { %v8395_v60 = vsel %vm1211_vm1, %v1744_v33, %v5771_v38  ;;  %v8398_v19 = vsel %vm1211_vm1, %v1743_v50, %v5770_v4 }
 0x5b0   : > { %3550 = vmatpush.bf16.msra.mxu2 %v5562_v48 }
 0x5b3   : > { %v3007_v47 = vpop.xlane.xlu2 %3006 }
 0x5b4   : > { %3551 = vmatpush.bf16.msra.mxu2 %v5561_v9  ;;  %v3193_v24 = vpop.f32.mrf.mxu1  ;;  %v3137_v28 = vpop.f32.mrf.mxu0 }
 0x5b5   : > { %3030 = vadd.xlane.f32.xlu1 %v3029_v15 }
 0x5b8   : > { %3552 = vmatpush.bf16.msra.mxu2 %v5560_v40 }
 0x5bc   : > { %3553 = vmatpush.bf16.msra.mxu2 %v5559_v5  ;;  %v3195_v33 = vpop.f32.mrf.mxu1 }
 0x5bd   : > { %v3010_v22 = vpop.xlane.xlu1 %3009 }
 0x5c5   : > { %v3013_v36 = vpop.xlane.xlu1 %3012 }
 0x5ca   : > { %2046 = vadd.xlane.f32.xlu2 %v2045_v6 }
 0x5cd   : > { %v8419_v50 = vpop.xlane.xlu1 %3024 }
 0x5ce   : > { %5813 = vrot.lane.b32.xlu1 %v5812_v58, %s6487_s17  ;;  %v9025_v58 = vld [vmem:[#allocation29_spill] sm:$0xff] }
 0x5d1   : > { %3033 = vadd.xlane.f32.xlu0 %v3032_v63  ;;  %v9026_v63 = vpack.i.bf16 %v8250_v20, %v8248_v11  ;;  %v5755_v11 = vunpack.i.l.bf16 %v8356_v27 }
 0x5d6   : > { %v3016_v62 = vpop.xlane.xlu0 %3015 }
 0x5d7   : > { %6108 = vrcp.f32 %v3016_v62 }
 0x5d8   : > { %6110 = vrcp.f32 %v3013_v36 }
 0x5d9   : > { %6112 = vrcp.f32 %v3010_v22  ;;  %v3019_v22 = vpop.xlane.xlu2 %3018 }
 0x5da   : > { %6114 = vrcp.f32 %v3007_v47  ;;  %v5756_v47 = vunpack.i.h.bf16 %v8356_v27 }
 0x5db   : > { %6116 = vrcp.f32 %v8363_v0 }
 0x5dc   : > { %6118 = vrcp.f32 %v9024_v17 }
 0x5dd   : > { %v6109_v8 = vpop.eup %6108  ;;  %6120 = vrcp.f32 %v9025_v58 }
 0x5de   : > { %v6111_v13 = vpop.eup %6110  ;;  %v3222_v38 = vmul.f32 %v6109_v8, %v3195_v33  ;;  %v3022_v15 = vpop.xlane.xlu0 %3021  ;;  %v9027_v33 = vld [vmem:[#allocation33_spill] sm:$0xff] }
 0x5df   : > { %v6113_v4 = vpop.eup %6112  ;;  %v3221_v7 = vmul.f32 %v6111_v13, %v3193_v24  ;;  %6122 = vrcp.f32 %v3022_v15 }
 0x5e0   : > { %v6115_v43 = vpop.eup %6114  ;;  %v3220_v57 = vmul.f32 %v6113_v4, %v3137_v28  ;;  %6124 = vrcp.f32 %v3019_v22 }
 0x5e1   : > { %v5822_v39 = vpack.i.bf16 %v3222_v38, %v3221_v7  ;;  %v3219_v61 = vmul.f32 %v6115_v43, %v3135_v37  ;;  %v6117_v55 = vpop.eup %6116  ;;  %v5774_v40 = vpop.permute.xlu2 %5773  ;;  %6126 = vrcp.f32 %v8415_v34 }
 0x5e2   : > { %5798 = vrot.lane.b32.xlu2 %v5797_v41, %s6488_s23  ;;  %v3198_v41 = vpop.f32.mrf.mxu1  ;;  %v2732_v36 = vmul.f32 %v6117_v55, %v8344_v3  ;;  %v6119_v24 = vpop.eup %6118  ;;  %v5776_v20 = vunpack.i.h.bf16 %v5774_v40  ;;  %v5775_v8 = vunpack.i.l.bf16 %v5774_v40 }
 0x5e3   : > { %v5817_v6 = vpack.i.bf16 %v3220_v57, %v3219_v61  ;;  %v6121_v37 = vpop.eup %6120  ;;  %v1737_v38 = vmul.f32 %v6119_v24, %v9027_v33  ;;  %v9028_v61 = vld [vmem:[#allocation23_spill] sm:$0xff] }
 0x5e4   : > { %v5832_v3 = vpack.i.bf16 %v2732_v36, %v8329_v51 }
 0x5e5   : > { %v8425_v1 = vpop.permute.xlu1 %5778  ;;  %5823 = vrot.lane.b32.xlu0 %v5822_v39, %s6486_s2  ;;  %v6123_v13 = vpop.eup %6122  ;;  %v3421_v27 = vsel %vm1211_vm1, %v1737_v38, %v5755_v11  ;;  %v9031_v38 = vld [vmem:[#allocation22_spill] sm:$0xff] }
 0x5e6   : > { %v8432_v12 = vpop.xlane.xlu0 %1512  ;;  %v3437_v51 = vsel %vm1390_vm5, %v3421_v27, %v5775_v8  ;;  %v6125_v22 = vpop.eup %6124  ;;  %v5780_v11 = vunpack.i.l.bf16 %v8425_v1  ;;  %v5766_v27 = vunpack.i.h.bf16 %v8366_v30 }
 0x5e7   : > { %v3223_v58 = vmul.f32 %v6125_v22, %v3198_v41  ;;  %v5781_v41 = vunpack.i.h.bf16 %v8425_v1 }
 0x5e8   : > { %v3439_v1 = vsel %vm1390_vm5, %v8339_v46, %v5780_v11 }
 0x5ea   : > { %5818 = vrot.lane.b32.xlu2 %v5817_v6, %s6486_s2  ;;  %v3200_v15 = vpop.f32.mrf.mxu1 }
 0x5eb   : > { %v3224_v57 = vmul.f32 %v6123_v13, %v3200_v15 }
 0x5ed   : > { %v5789_v48 = vpop.permute.xlu1 %5788  ;;  %5828 = vrot.lane.b32.xlu0 %v9026_v63, %s6488_s23 }
 0x5ee   : > { %v5791_v0 = vunpack.i.h.bf16 %v5789_v48  ;;  %v5790_v9 = vunpack.i.l.bf16 %v5789_v48  ;;  %v8452_v4 = vpop.xlane.xlu0 %2049  ;;  %v5837_v48 = vpack.i.bf16 %v3224_v57, %v3223_v58 }
 0x5f0   : > { %v8441_v62 = vsel %vm1390_vm5, %v8398_v19, %v5790_v9  ;;  %v8445_v5 = vsel %vm1390_vm5, %v8395_v60, %v5791_v0  ;;  %v1738_v19 = vmul.f32 %v6121_v37, %v7965_v45  ;;  %v1520_v45 = vsel %vm1390_vm5, %v9028_v61, 0.0  ;;  %v6127_v0 = vpop.eup %6126  ;;  %v9029_v9 = vld [vmem:[#allocation30_spill] sm:$0xff] }
 0x5f1   : > { %6128 = vrcp.f32 %v9029_v9  ;;  %v2734_v40 = vmul.f32 %v6127_v0, %v8402_v23  ;;  %v5761_v37 = vunpack.i.h.bf16 %v8331_v18  ;;  %v1517_v18 = vsel %vm1390_vm5, %v9031_v38, 0.0  ;;  %v9034_v9 = vld [vmem:[#allocation26_spill] sm:$0xff] }
 0x5f2   : > { %v3422_v7 = vsel %vm1211_vm1, %v1738_v19, %v5756_v47  ;;  %v3203_v0 = vpop.f32.mrf.mxu1 }
 0x5f3   : > { %v3438_v39 = vsel %vm1390_vm5, %v3422_v7, %v5776_v20  ;;  %v5847_v20 = vpack.i.bf16 %v2734_v40, %v8351_v53  ;;  %v1529_v40 = vsel %vm1390_vm5, %v9034_v9, 0.0  ;;  %v8528_v9 = vld [vmem:[%s8950_s4] ss:$0 sm:$0xff] }
 0x5f5   : > { %v5794_v60 = vpop.permute.xlu1 %5793  ;;  %5833 = vrot.lane.b32.xlu0 %v5832_v3, %s6487_s17  ;;  %v9030_v3 = vld [vmem:[#allocation31_spill] sm:$0xff] }
 0x5f6   : > { %v5796_v43 = vunpack.i.h.bf16 %v5794_v60  ;;  %v5795_v28 = vunpack.i.l.bf16 %v5794_v60  ;;  %v2539_v63 = vpop.xlane.xlu0 %2538  ;;  %6130 = vrcp.f32 %v9030_v3  ;;  %v9035_v3 = vld [vmem:[#allocation28_spill] sm:$0xff] }
 0x5f7   : > { %v6129_v47 = vpop.eup %6128 }
 0x5f8   : > { %v3454_v6 = vsel %vm3453_vm11, %v3437_v51, %v5795_v28  ;;  %v3455_v17 = vsel %vm3453_vm11, %v3438_v39, %v5796_v43  ;;  %1521 = vadd.xlane.f32.xlu1 %v1520_v45  ;;  %v1740_v8 = vmul.f32 %v6129_v47, %v7996_v16  ;;  %v9032_v45 = vld [vmem:[#allocation25_spill] sm:$0xff] }
 0x5f9   : > { %v3470_v55 = vpack.c.bf16 %v3455_v17, %v3454_v6  ;;  %v1526_v22 = vsel %vm1390_vm5, %v9032_v45, 0.0 }
 0x5fa   : > { %v3424_v13 = vsel %vm1211_vm1, %v1740_v8, %v5761_v37  ;;  %v3205_v37 = vpop.f32.mrf.mxu1 }
 0x5fb   : > { %3554 = vmatmul.bf16.vlgmr.msra.gmra.mxu2 %v3470_v55  ;;  %v3440_v19 = vsel %vm1390_vm5, %v3424_v13, %v5781_v41 }
 0x5fc   : > { %v3028_v24 = vpop.xlane.xlu2 %3027  ;;  %v6131_v15 = vpop.eup %6130 }
 0x5fd   : > { %5838 = vrot.lane.b32.xlu0 %v5837_v48, %s6486_s2  ;;  %v1742_v51 = vmul.f32 %v6131_v15, %v8045_v25  ;;  %v9033_v25 = vld [vmem:[#allocation24_spill] sm:$0xff]  ;;  %6132 = vrcp.f32 %v3028_v24 }
 0x5fe   : > { %v2542_v36 = vpop.xlane.xlu0 %2541  ;;  %v1523_v48 = vsel %vm1390_vm5, %v9033_v25, 0.0  ;;  %6134 = vrcp.f32 %v8419_v50 }
 0x5ff   : > { %v3426_v57 = vsel %vm1211_vm1, %v1742_v51, %v5766_v27  ;;  %6136 = vrcp.f32 %v2542_v36 }
 0x600   : > { %6138 = vrcp.f32 %v2539_v63 }
 0x601   : > { %6140 = vrcp.f32 %v8452_v4 }
 0x602   : > { %v3208_v36 = vpop.f32.mrf.mxu1 }
 0x604   : > { %v5784_v53 = vpop.permute.xlu2 %5783 }
 0x605   : > { %v5786_v43 = vunpack.i.h.bf16 %v5784_v53  ;;  %v5785_v28 = vunpack.i.l.bf16 %v5784_v53 }
 0x607   : > { %v3442_v6 = vsel %vm1390_vm5, %v3426_v57, %v5786_v43  ;;  %v3441_v17 = vsel %vm1390_vm5, %v8372_v10, %v5785_v28  ;;  %v6133_v10 = vpop.eup %6132 }
 0x608   : > { %v3226_v47 = vmul.f32 %v6133_v10, %v3205_v37  ;;  %v6135_v41 = vpop.eup %6134 }
 0x609   : > { %v6137_v8 = vpop.eup %6136 }
 0x60a   : > { %v6139_v50 = vpop.eup %6138  ;;  %v2736_v42 = vmul.f32 %v6137_v8, %v8412_v2  ;;  %v3210_v53 = vpop.f32.mrf.mxu1 }
 0x611   : > { %5848 = vrot.lane.b32.xlu1 %v5847_v20, %s6487_s17  ;;  %v5804_v34 = vpop.permute.xlu0 %5803  ;;  %v3225_v20 = vmul.f32 %v6135_v41, %v3203_v0 }
 0x612   : > { %v5806_v33 = vunpack.i.h.bf16 %v5804_v34  ;;  %v5805_v23 = vunpack.i.l.bf16 %v5804_v34  ;;  %v1532_v34 = vsel %vm1390_vm5, %v9035_v3, 0.0 }
 0x613   : > { %1518 = vadd.xlane.f32.xlu2 %v1517_v18  ;;  %v5852_v24 = vpack.i.bf16 %v3226_v47, %v3225_v20  ;;  %v6196_v47 = vld [vmem:[%s6670_s1] sm:$0xff] }
 0x614   : > { %v3456_v16 = vsel %vm3453_vm11, %v3439_v1, %v5805_v23  ;;  %v3457_v60 = vsel %vm3453_vm11, %v3440_v19, %v5806_v33  ;;  %v6141_v33 = vpop.eup %6140 }
 0x615   : > { %v3471_v7 = vpack.c.bf16 %v3457_v60, %v3456_v16  ;;  %v2244_v18 = vmul.f32 %v6141_v33, %v8295_v35 }
 0x617   : > { %3559 = vmatmul.bf16.gmra.mxu2 %v3471_v7 }
 0x619   : > { %v5809_v39 = vpop.permute.xlu0 %5808 }
 0x61a   : > { %v5811_v61 = vunpack.i.h.bf16 %v5809_v39  ;;  %v5810_v46 = vunpack.i.l.bf16 %v5809_v39 }
 0x61b   : > { %1527 = vadd.xlane.f32.xlu2 %v1526_v22 }
 0x61c   : > { %v3458_v30 = vsel %vm3453_vm11, %v3441_v17, %v5810_v46  ;;  %v3459_v58 = vsel %vm3453_vm11, %v3442_v6, %v5811_v61 }
 0x61d   : > { %v3472_v55 = vpack.c.bf16 %v3459_v58, %v3458_v30 }
 0x620   : > { %v1516_v11 = vpop.xlane.xlu1 %1515 }
 0x627   : > { %1524 = vadd.xlane.f32.xlu0 %v1523_v48  ;;  %3564 = vmatmul.bf16.gmra.mxu2 %v3472_v55 }
 0x628   : > { %v3031_v63 = vpop.xlane.xlu1 %3030 }
 0x62f   : > { %1530 = vadd.xlane.f32.xlu0 %v1529_v40 }
 0x633   : > { %5843 = vrot.lane.b32.xlu2 %v5842_v54, %s6488_s23  ;;  %v2735_v54 = vmul.f32 %v6139_v50, %v8405_v29  ;;  %v6197_v50 = vld [vmem:[%s6670_s1 + $0x8] sm:$0xff] }
 0x635   : > { %v5862_v13 = vpack.i.bf16 %v2736_v42, %v2735_v54 }
 0x63b   : > { %1533 = vadd.xlane.f32.xlu1 %v1532_v34  ;;  %5853 = vrot.lane.b32.xlu2 %v5852_v24, %s6486_s2 }
 0x63d   : > { %v2047_v32 = vpop.xlane.xlu2 %2046 }
 0x63e   : > { %6142 = vrcp.f32 %v2047_v32 }
 0x63f   : > { %6144 = vrcp.f32 %v3031_v63 }
 0x640   : > { %v5814_v22 = vpop.permute.xlu1 %5813 }
 0x641   : > { %v5816_v30 = vunpack.i.h.bf16 %v5814_v22  ;;  %v5815_v58 = vunpack.i.l.bf16 %v5814_v22 }
 0x643   : > { %5863 = vrot.lane.b32.xlu0 %v5862_v13, %s6487_s17 }
 0x644   : > { %v6143_v23 = vpop.eup %6142  ;;  %v3034_v38 = vpop.xlane.xlu0 %3033 }
 0x645   : > { %v2243_v19 = vmul.f32 %v6143_v23, %v8282_v44  ;;  %6146 = vrcp.f32 %v3034_v38  ;;  %v5799_v4 = vpop.permute.xlu2 %5798  ;;  %v6145_v1 = vpop.eup %6144 }
 0x646   : > { %v3227_v16 = vmul.f32 %v6145_v1, %v3208_v36  ;;  %6148 = vrcp.f32 %v8432_v12  ;;  %v5801_v57 = vunpack.i.h.bf16 %v5799_v4  ;;  %v5800_v61 = vunpack.i.l.bf16 %v5799_v4 }
 0x647   : > { %v5857_v2 = vpack.i.bf16 %v2244_v18, %v2243_v19  ;;  %6150 = vrcp.f32 %v1516_v11 }
 0x649   : > { %5858 = vrot.lane.b32.xlu2 %v5857_v2, %s6488_s23 }
 0x64b   : > { %v6147_v29 = vpop.eup %6146 }
 0x64c   : > { %v3228_v60 = vmul.f32 %v6147_v29, %v3210_v53  ;;  %v6149_v51 = vpop.eup %6148 }
 0x64d   : > { %v5819_v7 = vpop.permute.xlu2 %5818  ;;  %v6151_v39 = vpop.eup %6150  ;;  %v1745_v12 = vmul.f32 %v6149_v51, %v8092_v26 }
 0x64e   : > { %v5821_v27 = vunpack.i.h.bf16 %v5819_v7  ;;  %v5820_v15 = vunpack.i.l.bf16 %v5819_v7  ;;  %v5867_v43 = vpack.i.bf16 %v3228_v60, %v3227_v16  ;;  %v1746_v45 = vmul.f32 %v6151_v39, %v8111_v31 }
 0x650   : > { %v3460_v44 = vsel %vm3453_vm11, %v8441_v62, %v5820_v15  ;;  %v3461_v35 = vsel %vm3453_vm11, %v8445_v5, %v5821_v27  ;;  %v3430_v6 = vsel %vm1211_vm1, %v1746_v45, %v5801_v57  ;;  %v3429_v62 = vsel %vm1211_vm1, %v1745_v12, %v5800_v61 }
 0x651   : > { %5868 = vrot.lane.b32.xlu2 %v5867_v43, %s6486_s2  ;;  %v3473_v28 = vpack.c.bf16 %v3461_v35, %v3460_v44  ;;  %v3445_v55 = vsel %vm1390_vm5, %v3429_v62, %v5815_v58  ;;  %v3446_v25 = vsel %vm1390_vm5, %v3430_v6, %v5816_v30  ;;  %v6198_v43 = vld [vmem:[%s6670_s1 + $0x10] sm:$0xff]  ;;  %v6199_v30 = vld [vmem:[%s6670_s1 + $0x18] sm:$0xff]  ;;  %s4937_s2 = sshll.u32 %s4934_s5, 4  ;;  %s4938_s2 = int_to_ptr.hbm [resolvable:$true] %s4937_s2 }
 0x652   : > { %s6406_s17 = sshra.s32 %s4938_s2, 4  ;;  %s6407_s17 = int_to_ptr.hbm [resolvable:$true] %s6406_s17 }
 0x653   : > { %3569 = vmatmul.bf16.gmra.mxu2 %v3473_v28  ;;  %s6408_s23 = scalar_lea.hbm %s6407_s17, 128  ;;  %p6413_p13 = scmp.lt.s32.totalorder %s6407_s17, %s8955_s9 }
 0x654   : > { %p6409_p1 = scmp.ne.s32.totalorder %s6407_s17, %s6408_s23  ;;  %p6414_p7 = scmp.lt.s32.totalorder %s6412_s20, %s6408_s23 }
 0x656   : > { %p6410_p3 = pnand %p6409_p1, %p6631_p0  ;;  %p6415_p8 = por %p6414_p7, %p6413_p13 }
 0x657   : > { %v5824_v46 = vpop.permute.xlu0 %5823 }
 0x658   : > { %v5826_v17 = vunpack.i.h.bf16 %v5824_v46  ;;  %v5825_v5 = vunpack.i.l.bf16 %v5824_v46  ;;  %p6411_p5 = pneg %p6410_p3 }
 0x65a   : > { %v3462_v48 = vsel %vm3453_vm11, %v3445_v55, %v5825_v5  ;;  %v3463_v26 = vsel %vm3453_vm11, %v3446_v25, %v5826_v17  ;;  %p6416_p9 = pnand %p6415_p8, %p6411_p5 }
 0x65b   : > { %v3474_v0 = vpack.c.bf16 %v3463_v26, %v3462_v48 }
 0x65f   : > { %v5829_v31 = vpop.permute.xlu0 %5828 }
 0x660   : > { %v5831_v32 = vunpack.i.h.bf16 %v5829_v31  ;;  %v5830_v33 = vunpack.i.l.bf16 %v5829_v31 }
 0x663   : > { %3574 = vmatmul.bf16.gmra.mxu2 %v3474_v0 }
 0x667   : > { %v5834_v11 = vpop.permute.xlu0 %5833 }
 0x668   : > { %v5836_v36 = vunpack.i.h.bf16 %v5834_v11  ;;  %v5835_v18 = vunpack.i.l.bf16 %v5834_v11 }
 0x66b   : > { %v1522_v40 = vpop.xlane.xlu1 %1521 }
 0x66c   : > { %6152 = vrcp.f32 %v1522_v40 }
 0x66f   : > { %v5839_v13 = vpop.permute.xlu0 %5838 }
 0x670   : > { %v5840_v4 = vunpack.i.l.bf16 %v5839_v13 }
 0x672   : > { %v6153_v20 = vpop.eup %6152 }
 0x673   : > { %v1748_v34 = vmul.f32 %v6153_v20, %v8143_v56  ;;  %v5841_v56 = vunpack.i.h.bf16 %v5839_v13 }
 0x675   : > { %v3432_v54 = vsel %vm1211_vm1, %v1748_v34, %v5831_v32 }
 0x676   : > { %v3448_v19 = vsel %vm1390_vm5, %v3432_v54, %v5836_v36  ;;  %v6201_v54 = vld [vmem:[%s6670_s1 + $0x28] sm:$0xff] }
 0x677   : > { %v3465_v53 = vsel %vm3453_vm11, %v3448_v19, %v5841_v56 }
 0x67e   : > { %v3555_v10 = vpop.f32.mrf.mxu2 }
 0x67f   : > { %v3556_v37 = vadd.f32 %v8528_v9, %v3555_v10 }
 0x681   : > { %v8532_v41 = vadd.f32 %v6196_v47, %v3556_v37  ;;  %v6200_v37 = vld [vmem:[%s6670_s1 + $0x20] sm:$0xff] }
 0x683   : > { %3611 = vadd.xlane.f32.xlu2 %v8532_v41  ;;  %v5849_v39 = vpop.permute.xlu1 %5848 }
 0x684   : > { %v5851_v6 = vunpack.i.h.bf16 %v5849_v39  ;;  %v5850_v62 = vunpack.i.l.bf16 %v5849_v39 }
 0x686   : > { %v1519_v24 = vpop.xlane.xlu2 %1518  ;;  %v3557_v8 = vpop.f32.mrf.mxu2 }
 0x687   : > { %6154 = vrcp.f32 %v1519_v24  ;;  %v3558_v3 = vadd.f32 %v8528_v9, %v3557_v8 }
 0x689   : > { %v8538_v42 = vadd.f32 %v6197_v50, %v3558_v3 }
 0x68b   : > { %3613 = vadd.xlane.f32.xlu0 %v8538_v42 }
 0x68d   : > { %v6155_v63 = vpop.eup %6154 }
 0x68e   : > { %v1747_v23 = vmul.f32 %v6155_v63, %v8126_v14  ;;  %v1528_v38 = vpop.xlane.xlu2 %1527 }
 0x68f   : > { %6156 = vrcp.f32 %v1528_v38 }
 0x690   : > { %v3431_v2 = vsel %vm1211_vm1, %v1747_v23, %v5830_v33 }
 0x691   : > { %v3447_v1 = vsel %vm1390_vm5, %v3431_v2, %v5835_v18 }
 0x692   : > { %v3464_v29 = vsel %vm3453_vm11, %v3447_v1, %v5840_v4 }
 0x693   : > { %v3475_v16 = vpack.c.bf16 %v3465_v53, %v3464_v29 }
 0x695   : > { %3579 = vmatmul.bf16.gmra.mxu2 %v3475_v16  ;;  %v6157_v27 = vpop.eup %6156 }
 0x696   : > { %v5844_v60 = vpop.permute.xlu2 %5843  ;;  %v1750_v35 = vmul.f32 %v6157_v27, %v8169_v49  ;;  %v9036_v27 = vld [vmem:[#allocation19_spill] sm:$0xff] }
 0x697   : > { %v5846_v28 = vunpack.i.h.bf16 %v5844_v60  ;;  %v5845_v46 = vunpack.i.l.bf16 %v5844_v60  ;;  %v6202_v60 = vld [vmem:[%s6670_s1 + $0x30] sm:$0xff] }
 0x699   : > { %v3434_v61 = vsel %vm1211_vm1, %v1750_v35, %v5846_v28 }
 0x69a   : > { %v1525_v14 = vpop.xlane.xlu0 %1524  ;;  %v3560_v7 = vpop.f32.mrf.mxu2  ;;  %v3450_v25 = vsel %vm1390_vm5, %v3434_v61, %v5851_v6 }
 0x69b   : > { %6158 = vrcp.f32 %v1525_v14  ;;  %v3561_v15 = vadd.f32 %v8528_v9, %v3560_v7 }
 0x69d   : > { %v8550_v44 = vadd.f32 %v6198_v43, %v3561_v15 }
 0x69e   : > { %v5854_v51 = vpop.permute.xlu2 %5853 }
 0x69f   : > { %3615 = vadd.xlane.f32.xlu1 %v8550_v44  ;;  %v5856_v45 = vunpack.i.h.bf16 %v5854_v51  ;;  %v5855_v5 = vunpack.i.l.bf16 %v5854_v51 }
 0x6a1   : > { %v6159_v57 = vpop.eup %6158 }
 0x6a2   : > { %v1749_v12 = vmul.f32 %v6159_v57, %v8159_v59  ;;  %v3562_v22 = vpop.f32.mrf.mxu2  ;;  %v3467_v59 = vsel %vm3453_vm11, %v3450_v25, %v5856_v45  ;;  %v1531_v26 = vpop.xlane.xlu0 %1530 }
 0x6a3   : > { %v3563_v17 = vadd.f32 %v8528_v9, %v3562_v22  ;;  %6160 = vrcp.f32 %v1531_v26 }
 0x6a4   : > { %v3433_v49 = vsel %vm1211_vm1, %v1749_v12, %v5845_v46  ;;  %v6203_v46 = vld [vmem:[%s6670_s1 + $0x38] sm:$0xff] }
 0x6a5   : > { %v8559_v58 = vadd.f32 %v6199_v30, %v3563_v17  ;;  %v3449_v55 = vsel %vm1390_vm5, %v3433_v49, %v5850_v62  ;;  %v6204_v62 = vld [vmem:[%s6670_s1 + $0x40] sm:$0xff] }
 0x6a6   : > { %v3466_v48 = vsel %vm3453_vm11, %v3449_v55, %v5855_v5  ;;  %v5859_v31 = vpop.permute.xlu2 %5858 }
 0x6a7   : > { %3617 = vadd.xlane.f32.xlu1 %v8559_v58  ;;  %v3476_v0 = vpack.c.bf16 %v3467_v59, %v3466_v48  ;;  %v5860_v32 = vunpack.i.l.bf16 %v5859_v31  ;;  %v5861_v13 = vunpack.i.h.bf16 %v5859_v31 }
 0x6a9   : > { %3584 = vmatmul.bf16.gmra.mxu2 %v3476_v0  ;;  %v6161_v20 = vpop.eup %6160 }
 0x6aa   : > { %v3565_v40 = vpop.f32.mrf.mxu2  ;;  %v1751_v8 = vmul.f32 %v6161_v20, %v8189_v52 }
 0x6ab   : > { %v3566_v10 = vadd.f32 %v8528_v9, %v3565_v40  ;;  %v6205_v40 = vld [vmem:[%s6670_s1 + $0x48] sm:$0xff] }
 0x6ac   : > { %v3435_v18 = vsel %vm1211_vm1, %v1751_v8, %v5860_v32 }
 0x6ad   : > { %v8568_v47 = vadd.f32 %v6200_v37, %v3566_v10 }
 0x6ae   : > { %v1534_v11 = vpop.xlane.xlu1 %1533  ;;  %v5869_v34 = vpop.permute.xlu2 %5868 }
 0x6af   : > { %6162 = vrcp.f32 %v1534_v11  ;;  %3619 = vadd.xlane.f32.xlu1 %v8568_v47  ;;  %v5870_v19 = vunpack.i.l.bf16 %v5869_v34  ;;  %v5871_v52 = vunpack.i.h.bf16 %v5869_v34 }
 0x6b2   : > { %v3567_v24 = vpop.f32.mrf.mxu2 }
 0x6b3   : > { %v3568_v3 = vadd.f32 %v8528_v9, %v3567_v24 }
 0x6b5   : > { %v6163_v50 = vpop.eup %6162  ;;  %v8574_v63 = vadd.f32 %v6201_v54, %v3568_v3  ;;  %v5864_v36 = vpop.permute.xlu0 %5863  ;;  %v6206_v3 = vld [vmem:[%s6670_s1 + $0x50] sm:$0xff] }
 0x6b6   : > { %v1752_v33 = vmul.f32 %v6163_v50, %v8205_v21  ;;  %v5866_v23 = vunpack.i.h.bf16 %v5864_v36  ;;  %v5865_v38 = vunpack.i.l.bf16 %v5864_v36 }
 0x6b7   : > { %3621 = vadd.xlane.f32.xlu2 %v8574_v63 }
 0x6b8   : > { %v3436_v56 = vsel %vm1211_vm1, %v1752_v33, %v5861_v13  ;;  %v3451_v4 = vsel %vm1390_vm5, %v3435_v18, %v5865_v38 }
 0x6b9   : > { %v3452_v2 = vsel %vm1390_vm5, %v3436_v56, %v5866_v23  ;;  %v3468_v1 = vsel %vm3453_vm11, %v3451_v4, %v5870_v19  ;;  %v6207_v23 = vld [vmem:[%s6670_s1 + $0x58] sm:$0xff]  ;;  %v6208_v56 = vld [vmem:[%s6670_s1 + $0x60] sm:$0xff] }
 0x6ba   : > { %v3469_v29 = vsel %vm3453_vm11, %v3452_v2, %v5871_v52 }
 0x6bb   : > { %v3477_v21 = vpack.c.bf16 %v3469_v29, %v3468_v1 }
 0x6bd   : > { %3589 = vmatmul.bf16.gmra.mxu2 %v3477_v21 }
 0x6d6   : > { %v3570_v53 = vpop.f32.mrf.mxu2 }
 0x6d7   : > { %v3571_v16 = vadd.f32 %v8528_v9, %v3570_v53  ;;  %v5385_v53 = vld [vmem:[#allocation10 + $0xe0] sm:$0xf] }
 0x6d9   : > { %v8586_v14 = vadd.f32 %v6202_v60, %v3571_v16  ;;  %v5597_v16 = vld [vmem:[#allocation10 + $0xec] sm:$0xf0]  ;;  %v5595_v60 = vld [vmem:[#allocation10 + $0xe4] sm:$0xf] }
 0x6db   : > { %3623 = vadd.xlane.f32.xlu0 %v8586_v14 }
 0x6de   : > { %v3572_v35 = vpop.f32.mrf.mxu2 }
 0x6df   : > { %v3573_v39 = vadd.f32 %v8528_v9, %v3572_v35  ;;  %v5387_v35 = vld [vmem:[#allocation10 + $0xf0] sm:$0xf0] }
 0x6e1   : > { %v8601_v12 = vadd.f32 %v6203_v46, %v3573_v39  ;;  %v5390_v39 = vor.u32 %v5595_v60, %v5387_v35  ;;  %v5596_v46 = vld [vmem:[#allocation10 + $0xec] sm:$0xf]  ;;  %v5583_v60 = vld [vmem:[#allocation10 + $0x84] sm:$0xf]  ;;  %v5345_v35 = vld [vmem:[#allocation10 + $0x88] sm:$0xf] }
 0x6e3   : > { %4190 = vmatpush.bf16.msrb.mxu0 %v5390_v39 }
 0x6e6   : > { %v3575_v22 = vpop.f32.mrf.mxu2 }
 0x6e7   : > { %v3576_v6 = vadd.f32 %v8528_v9, %v3575_v22 }
 0x6e9   : > { %v8608_v17 = vadd.f32 %v6204_v62, %v3576_v6  ;;  %v5369_v62 = vld [vmem:[#allocation10 + $0xc0] sm:$0xf] }
 0x6ee   : > { %v3577_v55 = vpop.f32.mrf.mxu2 }
 0x6ef   : > { %v3578_v59 = vadd.f32 %v8528_v9, %v3577_v55 }
 0x6f1   : > { %v8623_v10 = vadd.f32 %v6205_v40, %v3578_v59  ;;  %v5594_v59 = vld [vmem:[#allocation10 + $0xd4] sm:$0xf0]  ;;  %v5592_v40 = vld [vmem:[#allocation10 + $0xcc] sm:$0xf] }
 0x6f6   : > { %v3612_v7 = vpop.xlane.xlu2 %3611 }
 0x6f7   : > { %v3643_v15 = vmul.f32 %v3612_v7, %v9036_v27 }
 0x6f9   : > { %v8591_v43 = vsub.f32 %v8532_v41, %v3643_v15  ;;  %v5386_v15 = vor.u32 %v5597_v16, %v5385_v53  ;;  %v5337_v53 = vld [vmem:[#allocation10 + $0x80] sm:$0xf]  ;;  %v5585_v16 = vld [vmem:[#allocation10 + $0x8c] sm:$0xf0] }
 0x6fb   : > { %v3675_v28 = vmul.f32 %v8591_v43, %v8591_v43  ;;  %4141 = vmatpush.bf16.msra.mxu3 %v5386_v15  ;;  %v5339_v15 = vld [vmem:[#allocation10 + $0x90] sm:$0xf0] }
 0x6fd   : > { %3691 = vadd.xlane.f32.xlu1 %v3675_v28  ;;  %v5393_v28 = vld [vmem:[#allocation10 + $0xe8] sm:$0xf] }
 0x6fe   : > { %v3614_v51 = vpop.xlane.xlu0 %3613 }
 0x6ff   : > { %v3644_v57 = vmul.f32 %v3614_v51, %v9036_v27  ;;  %v5598_v51 = vld [vmem:[#allocation10 + $0xf4] sm:$0xf0] }
 0x701   : > { %v8598_v61 = vsub.f32 %v8538_v42, %v3644_v57  ;;  %v5394_v57 = vor.u32 %v5598_v51, %v5393_v28  ;;  %v5586_v28 = vld [vmem:[#allocation10 + $0x94] sm:$0xf0]  ;;  %v5342_v51 = vor.u32 %v5583_v60, %v5339_v15  ;;  %v5297_v60 = vld [vmem:[#allocation10 + $0x28] sm:$0xf] }
 0x702   : > { %v5346_v39 = vor.u32 %v5586_v28, %v5345_v35  ;;  %v5572_v28 = vld [vmem:[#allocation10 + $0x2c] sm:$0xf] }
 0x703   : > { %v3676_v45 = vmul.f32 %v8598_v61, %v8598_v61  ;;  %4239 = vmatpush.bf16.msrb.mxu1 %v5394_v57  ;;  %v5584_v57 = vld [vmem:[#allocation10 + $0x8c] sm:$0xf] }
 0x705   : > { %3693 = vadd.xlane.f32.xlu2 %v3676_v45  ;;  %3625 = vadd.xlane.f32.xlu1 %v8601_v12  ;;  %v5395_v45 = vld [vmem:[#allocation10 + $0xf8] sm:$0xf0] }
 0x706   : > { %v5398_v22 = vor.u32 %v5596_v46, %v5395_v45  ;;  %v5347_v46 = vld [vmem:[#allocation10 + $0x98] sm:$0xf0] }
 0x707   : > { %v5350_v45 = vor.u32 %v5584_v57, %v5347_v46  ;;  %v5273_v57 = vld [vmem:[#allocation10] sm:$0xf]  ;;  %v5569_v46 = vld [vmem:[#allocation10 + $0xc] sm:$0xf0] }
 0x708   : > { %4288 = vmatpush.bf16.msrb.mxu2 %v5398_v22  ;;  %v6210_v22 = vld [vmem:[%s6670_s1 + $0x70] sm:$0xff] }
 0x70d   : > { %3627 = vadd.xlane.f32.xlu1 %v8608_v17 }
 0x712   : > { %v3616_v5 = vpop.xlane.xlu1 %3615 }
 0x713   : > { %v3645_v49 = vmul.f32 %v3616_v5, %v9036_v27  ;;  %v5593_v5 = vld [vmem:[#allocation10 + $0xcc] sm:$0xf0] }
 0x714   : > { %v5370_v55 = vor.u32 %v5593_v5, %v5369_v62  ;;  %v5321_v62 = vld [vmem:[#allocation10 + $0x60] sm:$0xf]  ;;  %v5581_v5 = vld [vmem:[#allocation10 + $0x6c] sm:$0xf0] }
 0x715   : > { %v8613_v30 = vsub.f32 %v8550_v44, %v3645_v49  ;;  %v5591_v49 = vld [vmem:[#allocation10 + $0xc4] sm:$0xf] }
 0x716   : > { %4142 = vmatpush.bf16.msra.mxu3 %v5370_v55  ;;  %v5322_v55 = vor.u32 %v5581_v5, %v5321_v62  ;;  %v5274_v62 = vor.u32 %v5569_v46, %v5273_v57  ;;  %v5275_v5 = vld [vmem:[#allocation10 + $0x10] sm:$0xf0] }
 0x717   : > { %v3677_v25 = vmul.f32 %v8613_v30, %v8613_v30 }
 0x718   : > { %v3580_v31 = vpop.f32.mrf.mxu2 }
 0x719   : > { %3695 = vadd.xlane.f32.xlu2 %v3677_v25  ;;  %v3581_v20 = vadd.f32 %v8528_v9, %v3580_v31  ;;  %v5371_v25 = vld [vmem:[#allocation10 + $0xd0] sm:$0xf0] }
 0x71a   : > { %v3618_v48 = vpop.xlane.xlu1 %3617 }
 0x71b   : > { %v3646_v26 = vmul.f32 %v3618_v48, %v9036_v27  ;;  %v8634_v34 = vadd.f32 %v6206_v3, %v3581_v20  ;;  %v5377_v48 = vld [vmem:[#allocation10 + $0xc8] sm:$0xf]  ;;  %v5353_v3 = vld [vmem:[#allocation10 + $0xa0] sm:$0xf] }
 0x71c   : > { %v5378_v31 = vor.u32 %v5594_v59, %v5377_v48  ;;  %v6209_v20 = vld [vmem:[%s6670_s1 + $0x68] sm:$0xff]  ;;  %v5582_v59 = vld [vmem:[#allocation10 + $0x74] sm:$0xf0] }
 0x71d   : > { %v8620_v0 = vsub.f32 %v8559_v58, %v3646_v26  ;;  %v5374_v26 = vor.u32 %v5591_v49, %v5371_v25  ;;  %v5579_v49 = vld [vmem:[#allocation10 + $0x64] sm:$0xf]  ;;  %v5323_v25 = vld [vmem:[#allocation10 + $0x70] sm:$0xf0]  ;;  %v5329_v48 = vld [vmem:[#allocation10 + $0x68] sm:$0xf] }
 0x71e   : > { %4240 = vmatpush.bf16.msrb.mxu1 %v5378_v31  ;;  %v5330_v31 = vor.u32 %v5582_v59, %v5329_v48 }
 0x71f   : > { %v3678_v37 = vmul.f32 %v8620_v0, %v8620_v0  ;;  %4191 = vmatpush.bf16.msrb.mxu0 %v5374_v26  ;;  %v5326_v26 = vor.u32 %v5579_v49, %v5323_v25  ;;  %v5281_v49 = vld [vmem:[#allocation10 + $0x8] sm:$0xf] }
 0x720   : > { %v3582_v32 = vpop.f32.mrf.mxu2 }
 0x721   : > { %3697 = vadd.xlane.f32.xlu0 %v3678_v37  ;;  %3629 = vadd.xlane.f32.xlu2 %v8623_v10  ;;  %v3583_v36 = vadd.f32 %v8528_v9, %v3582_v32  ;;  %v5379_v37 = vld [vmem:[#allocation10 + $0xd8] sm:$0xf0]  ;;  %v5587_v32 = vld [vmem:[#allocation10 + $0xa4] sm:$0xf] }
 0x722   : > { %v3620_v11 = vpop.xlane.xlu1 %3619 }
 0x723   : > { %v3647_v24 = vmul.f32 %v3620_v11, %v9036_v27  ;;  %v8645_v38 = vadd.f32 %v6207_v23, %v3583_v36  ;;  %v5382_v11 = vor.u32 %v5592_v40, %v5379_v37  ;;  %v5361_v23 = vld [vmem:[#allocation10 + $0xa8] sm:$0xf]  ;;  %v5580_v40 = vld [vmem:[#allocation10 + $0x6c] sm:$0xf]  ;;  %v5331_v37 = vld [vmem:[#allocation10 + $0x78] sm:$0xf0] }
 0x725   : > { %v8631_v8 = vsub.f32 %v8568_v47, %v3647_v24  ;;  %4289 = vmatpush.bf16.msrb.mxu2 %v5382_v11  ;;  %v5334_v11 = vor.u32 %v5580_v40, %v5331_v37 }
 0x727   : > { %v3679_v50 = vmul.f32 %v8631_v8, %v8631_v8 }
 0x729   : > { %3699 = vadd.xlane.f32.xlu0 %v3679_v50  ;;  %3631 = vadd.xlane.f32.xlu2 %v8634_v34  ;;  %v5589_v50 = vld [vmem:[#allocation10 + $0xac] sm:$0xf0] }
 0x72a   : > { %v3622_v54 = vpop.xlane.xlu2 %3621  ;;  %v5354_v36 = vor.u32 %v5589_v50, %v5353_v3  ;;  %v5577_v3 = vld [vmem:[#allocation10 + $0x4c] sm:$0xf0]  ;;  %v5575_v50 = vld [vmem:[#allocation10 + $0x44] sm:$0xf] }
 0x72b   : > { %v3648_v13 = vmul.f32 %v3622_v54, %v9036_v27 }
 0x72c   : > { %v3585_v19 = vpop.f32.mrf.mxu2  ;;  %4143 = vmatpush.bf16.msra.mxu3 %v5354_v36  ;;  %v5313_v36 = vld [vmem:[#allocation10 + $0x48] sm:$0xf] }
 0x72d   : > { %v8642_v33 = vsub.f32 %v8574_v63, %v3648_v13  ;;  %v3586_v52 = vadd.f32 %v8528_v9, %v3585_v19  ;;  %v5355_v13 = vld [vmem:[#allocation10 + $0xb0] sm:$0xf0] }
 0x72e   : > { %v5358_v19 = vor.u32 %v5587_v32, %v5355_v13  ;;  %v5578_v13 = vld [vmem:[#allocation10 + $0x54] sm:$0xf0] }
 0x72f   : > { %v3680_v18 = vmul.f32 %v8642_v33, %v8642_v33  ;;  %v8652_v4 = vadd.f32 %v6208_v56, %v3586_v52  ;;  %v5588_v56 = vld [vmem:[#allocation10 + $0xac] sm:$0xf] }
 0x730   : > { %4192 = vmatpush.bf16.msrb.mxu0 %v5358_v19  ;;  %v5576_v19 = vld [vmem:[#allocation10 + $0x4c] sm:$0xf] }
 0x731   : > { %3633 = vadd.xlane.f32.xlu0 %v8645_v38  ;;  %3701 = vadd.xlane.f32.xlu1 %v3680_v18  ;;  %v5590_v18 = vld [vmem:[#allocation10 + $0xb4] sm:$0xf0] }
 0x732   : > { %v5362_v52 = vor.u32 %v5590_v18, %v5361_v23  ;;  %v5314_v18 = vor.u32 %v5578_v13, %v5313_v36 }
 0x734   : > { %v3587_v7 = vpop.f32.mrf.mxu2  ;;  %4241 = vmatpush.bf16.msrb.mxu1 %v5362_v52  ;;  %4193 = vmatpush.bf16.msrb.mxu0 %v5342_v51  ;;  %v5315_v52 = vld [vmem:[#allocation10 + $0x58] sm:$0xf0] }
 0x735   : > { %v3588_v6 = vadd.f32 %v8528_v9, %v3587_v7  ;;  %v5338_v7 = vor.u32 %v5585_v16, %v5337_v53  ;;  %v5291_v16 = vld [vmem:[#allocation10 + $0x30] sm:$0xf0]  ;;  %v5299_v51 = vld [vmem:[#allocation10 + $0x38] sm:$0xf0] }
 0x737   : > { %v8663_v24 = vadd.f32 %v6209_v20, %v3588_v6  ;;  %4144 = vmatpush.bf16.msra.mxu3 %v5338_v7  ;;  %v5305_v20 = vld [vmem:[#allocation10 + $0x40] sm:$0xf]  ;;  %v5574_v7 = vld [vmem:[#allocation10 + $0x34] sm:$0xf0] }
 0x738   : > { %4242 = vmatpush.bf16.msrb.mxu1 %v5346_v39  ;;  %4194 = vmatpush.bf16.msrb.mxu0 %v5326_v26  ;;  %v5306_v32 = vor.u32 %v5577_v3, %v5305_v20  ;;  %v5298_v35 = vor.u32 %v5574_v7, %v5297_v60  ;;  %v5302_v39 = vor.u32 %v5572_v28, %v5299_v51  ;;  %v5568_v26 = vld [vmem:[#allocation10 + $0xc] sm:$0xf] }
 0x739   : > { %3635 = vadd.xlane.f32.xlu0 %v8652_v4 }
 0x73b   : > { %4145 = vmatpush.bf16.msra.mxu3 %v5322_v55  ;;  %v5570_v55 = vld [vmem:[#allocation10 + $0x14] sm:$0xf0] }
 0x73c   : > { %4243 = vmatpush.bf16.msrb.mxu1 %v5330_v31  ;;  %v5282_v59 = vor.u32 %v5570_v55, %v5281_v49  ;;  %v5283_v31 = vld [vmem:[#allocation10 + $0x18] sm:$0xf0] }
 0x73d   : > { %v5286_v40 = vor.u32 %v5568_v26, %v5283_v31 }
 0x73f   : > { %4146 = vmatpush.bf16.msra.mxu3 %v5306_v32 }
 0x740   : > { %v3590_v54 = vpop.f32.mrf.mxu2  ;;  %4244 = vmatpush.bf16.msrb.mxu1 %v5314_v18 }
 0x744   : > { %4245 = vmatpush.bf16.msrb.mxu1 %v5298_v35 }
 0x748   : > { %4246 = vmatpush.bf16.msrb.mxu1 %v5282_v59  ;;  %v3592_v60 = vpop.f32.mrf.mxu2 }
 0x749   : > { %v3593_v28 = vadd.f32 %v8528_v9, %v3592_v60 }
 0x74e   : > { %v3624_v2 = vpop.xlane.xlu0 %3623 }
 0x74f   : > { %v3649_v1 = vmul.f32 %v3624_v2, %v9036_v27  ;;  %v5363_v2 = vld [vmem:[#allocation10 + $0xb8] sm:$0xf0] }
 0x751   : > { %v8657_v29 = vsub.f32 %v8586_v14, %v3649_v1  ;;  %v5366_v1 = vor.u32 %v5588_v56, %v5363_v2  ;;  %v5318_v56 = vor.u32 %v5576_v19, %v5315_v52  ;;  %v5289_v2 = vld [vmem:[#allocation10 + $0x20] sm:$0xf] }
 0x753   : > { %v3681_v21 = vmul.f32 %v8657_v29, %v8657_v29  ;;  %4290 = vmatpush.bf16.msrb.mxu2 %v5366_v1  ;;  %v5573_v1 = vld [vmem:[#allocation10 + $0x2c] sm:$0xf0] }
 0x754   : > { %v5290_v53 = vor.u32 %v5573_v1, %v5289_v2 }
 0x755   : > { %3703 = vadd.xlane.f32.xlu1 %v3681_v21  ;;  %v3591_v21 = vadd.f32 %v8528_v9, %v3590_v54  ;;  %v5307_v54 = vld [vmem:[#allocation10 + $0x50] sm:$0xf0] }
 0x756   : > { %v5310_v23 = vor.u32 %v5575_v50, %v5307_v54  ;;  %4147 = vmatpush.bf16.msra.mxu3 %v5290_v53 }
 0x757   : > { %v8668_v6 = vadd.f32 %v6210_v22, %v3591_v21  ;;  %4291 = vmatpush.bf16.msrb.mxu2 %v5350_v45  ;;  %v5571_v21 = vld [vmem:[#allocation10 + $0x24] sm:$0xf] }
 0x758   : > { %4195 = vmatpush.bf16.msrb.mxu0 %v5310_v23  ;;  %v5294_v15 = vor.u32 %v5571_v21, %v5291_v16  ;;  %v5567_v45 = vld [vmem:[#allocation10 + $0x4] sm:$0xf] }
 0x759   : > { %v5278_v48 = vor.u32 %v5567_v45, %v5275_v5  ;;  %v6211_v45 = vld [vmem:[%s6670_s1 + $0x78] sm:$0xff]  ;;  %s4935_s1 = sshll.u32 %s8865_s22, 4  ;;  %s4936_s1 = int_to_ptr.vmem [resolvable:$true] %s4935_s1 }
 0x75a   : > { %4148 = vmatpush.bf16.msra.mxu3 %v5274_v62 }
 0x75b   : > { %4292 = vmatpush.bf16.msrb.mxu2 %v5334_v11 }
 0x75c   : > { %4196 = vmatpush.bf16.msrb.mxu0 %v5294_v15 }
 0x75d   : > { %3637 = vadd.xlane.f32.xlu1 %v8663_v24 }
 0x75f   : > { %4293 = vmatpush.bf16.msrb.mxu2 %v5318_v56 }
 0x760   : > { %4197 = vmatpush.bf16.msrb.mxu0 %v5278_v48 }
 0x763   : > { %4294 = vmatpush.bf16.msrb.mxu2 %v5302_v39 }
 0x765   : > { %3639 = vadd.xlane.f32.xlu1 %v8668_v6 }
 0x767   : > { %4295 = vmatpush.bf16.msrb.mxu2 %v5286_v40 }
 0x770   : > { %v3692_v22 = vpop.xlane.xlu1 %3691 }
 0x771   : > { %v3723_v25 = vmul.f32 %v3692_v22, %v9036_v27  ;;  %v8687_v22 = vadd.f32 %v6211_v45, %v3593_v28 }
 0x773   : > { %v3739_v37 = vadd.f32 1e-05, %v3723_v25 }
 0x775   : > { %6164 = vrsqrt.f32 %v3739_v37  ;;  %vm3761_vm13 = vweird.f32 %v3739_v37 }
 0x778   : > { %v3626_v11 = vpop.xlane.xlu1 %3625  ;;  %v3694_v20 = vpop.xlane.xlu2 %3693 }
 0x779   : > { %v3650_v3 = vmul.f32 %v3626_v11, %v9036_v27  ;;  %v3724_v50 = vmul.f32 %v3694_v20, %v9036_v27 }
 0x77b   : > { %v6165_v32 = vpop.eup %6164  ;;  %v8675_v54 = vsub.f32 %v8601_v12, %v3650_v3  ;;  %v3740_v36 = vadd.f32 1e-05, %v3724_v50 }
 0x77c   : > { %v3756_v13 = vmul.f32 %v6165_v32, %v3739_v37  ;;  %vm3762_vm12 = vweird.f32 %v6165_v32 }
 0x77d   : > { %6166 = vrsqrt.f32 %v3740_v36  ;;  %v3682_v23 = vmul.f32 %v8675_v54, %v8675_v54  ;;  %vm3763_vm15 = vmor %vm3761_vm13, %vm3762_vm12  ;;  %vm3771_vm0 = vweird.f32 %v3740_v36 }
 0x77e   : > { %v3757_v18 = vmul.f32 %v6165_v32, %v3756_v13 }
 0x77f   : > { %3705 = vadd.xlane.f32.xlu2 %v3682_v23 }
 0x780   : > { %v3758_v19 = vmul.f32 0.5, %v3757_v18  ;;  %v3628_v52 = vpop.xlane.xlu1 %3627 }
 0x781   : > { %v3651_v56 = vmul.f32 %v3628_v52, %v9036_v27 }
 0x782   : > { %v3759_v21 = vsub.f32 1.5, %v3758_v19 }
 0x783   : > { %v6167_v2 = vpop.eup %6166  ;;  %v8681_v1 = vsub.f32 %v8608_v17, %v3651_v56 }
 0x784   : > { %v3766_v53 = vmul.f32 %v6167_v2, %v3740_v36  ;;  %v3760_v15 = vmul.f32 %v6165_v32, %v3759_v21  ;;  %vm3772_vm14 = vweird.f32 %v6167_v2 }
 0x785   : > { %v3683_v16 = vmul.f32 %v8681_v1, %v8681_v1  ;;  %vm3773_vm1 = vmor %vm3771_vm0, %vm3772_vm14 }
 0x786   : > { %v3767_v7 = vmul.f32 %v6167_v2, %v3766_v53  ;;  %v3764_v39 = vsel %vm3763_vm15, %v6165_v32, %v3760_v15 }
 0x787   : > { %3707 = vadd.xlane.f32.xlu2 %v3683_v16  ;;  %v3915_v49 = vmul.f32 %v3764_v39, %v8591_v43 }
 0x788   : > { %v3768_v35 = vmul.f32 0.5, %v3767_v7 }
 0x78a   : > { %v3769_v51 = vsub.f32 1.5, %v3768_v35 }
 0x78c   : > { %v3770_v57 = vmul.f32 %v6167_v2, %v3769_v51  ;;  %v3696_v46 = vpop.xlane.xlu2 %3695 }
 0x78d   : > { %v3725_v62 = vmul.f32 %v3696_v46, %v9036_v27 }
 0x78e   : > { %v3774_v5 = vsel %vm3773_vm1, %v6167_v2, %v3770_v57 }
 0x78f   : > { %v3916_v55 = vmul.f32 %v3774_v5, %v8598_v61  ;;  %v3741_v9 = vadd.f32 1e-05, %v3725_v62  ;;  %3641 = vadd.xlane.f32.xlu2 %v8687_v22 }
 0x791   : > { %v3931_v25 = vpack.c.bf16 %v3916_v55, %v3915_v49  ;;  %6168 = vrsqrt.f32 %v3741_v9  ;;  %vm3781_vm3 = vweird.f32 %v3741_v9 }
 0x793   : > { %4149 = vmatmul.bf16.vlgmr.msra.gmra.mxu3 %v3931_v25  ;;  %4198 = vmatmul.bf16.vlgmr.msrb.gmra.mxu0 %v3931_v25 }
 0x794   : > { %4247 = vmatmul.bf16.vlgmr.msrb.gmra.mxu1 %v3931_v25  ;;  %4296 = vmatmul.bf16.vlgmr.msrb.gmra.mxu2 %v3931_v25  ;;  %v3698_v48 = vpop.xlane.xlu0 %3697  ;;  %v3630_v59 = vpop.xlane.xlu2 %3629 }
 0x795   : > { %v3726_v26 = vmul.f32 %v3698_v48, %v9036_v27  ;;  %v3652_v31 = vmul.f32 %v3630_v59, %v9036_v27 }
 0x797   : > { %v6169_v40 = vpop.eup %6168  ;;  %v3742_v37 = vadd.f32 1e-05, %v3726_v26  ;;  %v8696_v43 = vsub.f32 %v8623_v10, %v3652_v31 }
 0x798   : > { %v3776_v61 = vmul.f32 %v6169_v40, %v3741_v9  ;;  %vm3782_vm2 = vweird.f32 %v6169_v40 }
 0x799   : > { %6170 = vrsqrt.f32 %v3742_v37  ;;  %v3684_v11 = vmul.f32 %v8696_v43, %v8696_v43  ;;  %vm3783_vm5 = vmor %vm3781_vm3, %vm3782_vm2  ;;  %vm3791_vm6 = vweird.f32 %v3742_v37 }
 0x79a   : > { %v3777_v20 = vmul.f32 %v6169_v40, %v3776_v61 }
 0x79b   : > { %3709 = vadd.xlane.f32.xlu0 %v3684_v11 }
 0x79c   : > { %v3778_v3 = vmul.f32 0.5, %v3777_v20  ;;  %v3700_v50 = vpop.xlane.xlu0 %3699  ;;  %v3632_v32 = vpop.xlane.xlu2 %3631 }
 0x79d   : > { %v3727_v36 = vmul.f32 %v3700_v50, %v9036_v27  ;;  %v3653_v13 = vmul.f32 %v3632_v32, %v9036_v27 }
 0x79e   : > { %v3779_v52 = vsub.f32 1.5, %v3778_v3 }
 0x79f   : > { %v6171_v23 = vpop.eup %6170  ;;  %v3743_v18 = vadd.f32 1e-05, %v3727_v36  ;;  %v8703_v19 = vsub.f32 %v8634_v34, %v3653_v13 }
 0x7a0   : > { %v3786_v56 = vmul.f32 %v6171_v23, %v3742_v37  ;;  %v3780_v53 = vmul.f32 %v6169_v40, %v3779_v52  ;;  %vm3792_vm4 = vweird.f32 %v6171_v23 }
 0x7a1   : > { %6172 = vrsqrt.f32 %v3743_v18  ;;  %v3685_v2 = vmul.f32 %v8703_v19, %v8703_v19  ;;  %vm3793_vm7 = vmor %vm3791_vm6, %vm3792_vm4  ;;  %vm3801_vm9 = vweird.f32 %v3743_v18 }
 0x7a2   : > { %v3787_v21 = vmul.f32 %v6171_v23, %v3786_v56  ;;  %v3784_v46 = vsel %vm3783_vm5, %v6169_v40, %v3780_v53 }
 0x7a3   : > { %3711 = vadd.xlane.f32.xlu0 %v3685_v2  ;;  %v3917_v9 = vmul.f32 %v3784_v46, %v8613_v30 }
 0x7a4   : > { %v3788_v16 = vmul.f32 0.5, %v3787_v21  ;;  %v3634_v60 = vpop.xlane.xlu0 %3633  ;;  %v3702_v7 = vpop.xlane.xlu1 %3701 }
 0x7a5   : > { %v3654_v15 = vmul.f32 %v3634_v60, %v9036_v27  ;;  %v3728_v35 = vmul.f32 %v3702_v7, %v9036_v27 }
 0x7a6   : > { %v3789_v28 = vsub.f32 1.5, %v3788_v16 }
 0x7a7   : > { %v6173_v51 = vpop.eup %6172  ;;  %v8710_v39 = vsub.f32 %v8645_v38, %v3654_v15  ;;  %v3744_v57 = vadd.f32 1e-05, %v3728_v35 }
 0x7a8   : > { %v3790_v45 = vmul.f32 %v6171_v23, %v3789_v28  ;;  %v3796_v62 = vmul.f32 %v6173_v51, %v3743_v18  ;;  %vm3802_vm8 = vweird.f32 %v6173_v51 }
 0x7a9   : > { %6174 = vrsqrt.f32 %v3744_v57  ;;  %v3686_v5 = vmul.f32 %v8710_v39, %v8710_v39  ;;  %vm3803_vm11 = vmor %vm3801_vm9, %vm3802_vm8  ;;  %vm3811_vm12 = vweird.f32 %v3744_v57 }
 0x7aa   : > { %v3794_v49 = vsel %vm3793_vm7, %v6171_v23, %v3790_v45  ;;  %v3797_v55 = vmul.f32 %v6173_v51, %v3796_v62 }
 0x7ab   : > { %3713 = vadd.xlane.f32.xlu1 %v3686_v5  ;;  %v3918_v25 = vmul.f32 %v3794_v49, %v8620_v0 }
 0x7ac   : > { %v3798_v48 = vmul.f32 0.5, %v3797_v55  ;;  %v3636_v59 = vpop.xlane.xlu0 %3635 }
 0x7ad   : > { %v3655_v26 = vmul.f32 %v3636_v59, %v9036_v27  ;;  %v3932_v31 = vpack.c.bf16 %v3918_v25, %v3917_v9 }
 0x7ae   : > { %v3799_v61 = vsub.f32 1.5, %v3798_v48 }
 0x7af   : > { %v6175_v40 = vpop.eup %6174  ;;  %v8718_v37 = vsub.f32 %v8652_v4, %v3655_v26  ;;  %4154 = vmatmul.bf16.gmra.mxu3 %v3932_v31  ;;  %4203 = vmatmul.bf16.gmra.mxu0 %v3932_v31 }
 0x7b0   : > { %v3806_v11 = vmul.f32 %v6175_v40, %v3744_v57  ;;  %4252 = vmatmul.bf16.gmra.mxu1 %v3932_v31  ;;  %4301 = vmatmul.bf16.gmra.mxu2 %v3932_v31  ;;  %v3800_v0 = vmul.f32 %v6173_v51, %v3799_v61  ;;  %vm3812_vm10 = vweird.f32 %v6175_v40 }
 0x7b1   : > { %v3687_v30 = vmul.f32 %v8718_v37, %v8718_v37  ;;  %vm3813_vm13 = vmor %vm3811_vm12, %vm3812_vm10 }
 0x7b2   : > { %v3807_v20 = vmul.f32 %v6175_v40, %v3806_v11  ;;  %v3804_v32 = vsel %vm3803_vm11, %v6173_v51, %v3800_v0 }
 0x7b3   : > { %3715 = vadd.xlane.f32.xlu2 %v3687_v30  ;;  %v3919_v23 = vmul.f32 %v3804_v32, %v8631_v8 }
 0x7b4   : > { %v3808_v3 = vmul.f32 0.5, %v3807_v20 }
 0x7b6   : > { %v3809_v50 = vsub.f32 1.5, %v3808_v3 }
 0x7b8   : > { %v3810_v36 = vmul.f32 %v6175_v40, %v3809_v50 }
 0x7ba   : > { %v3814_v13 = vsel %vm3813_vm13, %v6175_v40, %v3810_v36 }
 0x7bb   : > { %v3920_v52 = vmul.f32 %v3814_v13, %v8642_v33 }
 0x7bd   : > { %v3933_v56 = vpack.c.bf16 %v3920_v52, %v3919_v23 }
 0x7bf   : > { %4159 = vmatmul.bf16.gmra.mxu3 %v3933_v56  ;;  %4208 = vmatmul.bf16.gmra.mxu0 %v3933_v56 }
 0x7c0   : > { %4257 = vmatmul.bf16.gmra.mxu1 %v3933_v56  ;;  %4306 = vmatmul.bf16.gmra.mxu2 %v3933_v56 }
 0x7c8   : > { %v3704_v2 = vpop.xlane.xlu1 %3703 }
 0x7c9   : > { %v3729_v15 = vmul.f32 %v3704_v2, %v9036_v27 }
 0x7cb   : > { %v3745_v35 = vadd.f32 1e-05, %v3729_v15 }
 0x7cd   : > { %6176 = vrsqrt.f32 %v3745_v35  ;;  %vm3821_vm15 = vweird.f32 %v3745_v35 }
 0x7d0   : > { %v3638_v21 = vpop.xlane.xlu1 %3637 }
 0x7d1   : > { %v3656_v18 = vmul.f32 %v3638_v21, %v9036_v27 }
 0x7d3   : > { %v8726_v53 = vsub.f32 %v8663_v24, %v3656_v18  ;;  %v6177_v28 = vpop.eup %6176 }
 0x7d4   : > { %v3816_v51 = vmul.f32 %v6177_v28, %v3745_v35  ;;  %vm3822_vm14 = vweird.f32 %v6177_v28 }
 0x7d5   : > { %v3688_v16 = vmul.f32 %v8726_v53, %v8726_v53  ;;  %vm3823_vm1 = vmor %vm3821_vm15, %vm3822_vm14 }
 0x7d6   : > { %v3817_v62 = vmul.f32 %v6177_v28, %v3816_v51 }
 0x7d7   : > { %3717 = vadd.xlane.f32.xlu0 %v3688_v16 }
 0x7d8   : > { %v3640_v60 = vpop.xlane.xlu1 %3639  ;;  %v3818_v5 = vmul.f32 0.5, %v3817_v62 }
 0x7d9   : > { %v3657_v8 = vmul.f32 %v3640_v60, %v9036_v27 }
 0x7da   : > { %v3819_v25 = vsub.f32 1.5, %v3818_v5 }
 0x7db   : > { %v8732_v33 = vsub.f32 %v8668_v6, %v3657_v8 }
 0x7dc   : > { %v3820_v31 = vmul.f32 %v6177_v28, %v3819_v25 }
 0x7dd   : > { %v3689_v7 = vmul.f32 %v8732_v33, %v8732_v33 }
 0x7de   : > { %v3824_v0 = vsel %vm3823_vm1, %v6177_v28, %v3820_v31 }
 0x7df   : > { %3719 = vadd.xlane.f32.xlu1 %v3689_v7  ;;  %v3921_v36 = vmul.f32 %v3824_v0, %v8657_v29 }
 0x7f2   : > { %v3706_v57 = vpop.xlane.xlu2 %3705 }
 0x7f3   : > { %v3730_v46 = vmul.f32 %v3706_v57, %v9036_v27 }
 0x7f5   : > { %v3746_v45 = vadd.f32 1e-05, %v3730_v46 }
 0x7f7   : > { %6178 = vrsqrt.f32 %v3746_v45  ;;  %vm3831_vm2 = vweird.f32 %v3746_v45 }
 0x7fa   : > { %v3708_v49 = vpop.xlane.xlu2 %3707 }
 0x7fb   : > { %v3731_v9 = vmul.f32 %v3708_v49, %v9036_v27 }
 0x7fd   : > { %v6179_v55 = vpop.eup %6178  ;;  %v3747_v26 = vadd.f32 1e-05, %v3731_v9 }
 0x7fe   : > { %v3826_v48 = vmul.f32 %v6179_v55, %v3746_v45  ;;  %vm3832_vm0 = vweird.f32 %v6179_v55 }
 0x7ff   : > { %6180 = vrsqrt.f32 %v3747_v26  ;;  %vm3833_vm3 = vmor %vm3831_vm2, %vm3832_vm0  ;;  %vm3841_vm5 = vweird.f32 %v3747_v26 }
 0x800   : > { %v3827_v59 = vmul.f32 %v6179_v55, %v3826_v48 }
 0x802   : > { %v3828_v40 = vmul.f32 0.5, %v3827_v59  ;;  %v3642_v61 = vpop.xlane.xlu2 %3641 }
 0x803   : > { %v3658_v11 = vmul.f32 %v3642_v61, %v9036_v27 }
 0x804   : > { %v3829_v30 = vsub.f32 1.5, %v3828_v40 }
 0x805   : > { %v8741_v20 = vsub.f32 %v8687_v22, %v3658_v11  ;;  %v6181_v23 = vpop.eup %6180 }
 0x806   : > { %v3830_v3 = vmul.f32 %v6179_v55, %v3829_v30  ;;  %v3836_v56 = vmul.f32 %v6181_v23, %v3747_v26  ;;  %vm3842_vm4 = vweird.f32 %v6181_v23 }
 0x807   : > { %v3690_v50 = vmul.f32 %v8741_v20, %v8741_v20  ;;  %vm3843_vm7 = vmor %vm3841_vm5, %vm3842_vm4 }
 0x808   : > { %v3834_v32 = vsel %vm3833_vm3, %v6179_v55, %v3830_v3  ;;  %v3837_v16 = vmul.f32 %v6181_v23, %v3836_v56 }
 0x809   : > { %3721 = vadd.xlane.f32.xlu2 %v3690_v50  ;;  %v3922_v13 = vmul.f32 %v3834_v32, %v8675_v54 }
 0x80a   : > { %v3838_v60 = vmul.f32 0.5, %v3837_v16 }
 0x80b   : > { %v3934_v52 = vpack.c.bf16 %v3922_v13, %v3921_v36 }
 0x80c   : > { %v3839_v54 = vsub.f32 1.5, %v3838_v60  ;;  %v5606_v60 = vld [vmem:[#allocation11 + $0x38] sm:$0xff] }
 0x80d   : > { %4164 = vmatmul.bf16.gmra.mxu3 %v3934_v52  ;;  %4213 = vmatmul.bf16.gmra.mxu0 %v3934_v52 }
 0x80e   : > { %4262 = vmatmul.bf16.gmra.mxu1 %v3934_v52  ;;  %4311 = vmatmul.bf16.gmra.mxu2 %v3934_v52  ;;  %v3710_v2 = vpop.xlane.xlu0 %3709  ;;  %v3840_v51 = vmul.f32 %v6181_v23, %v3839_v54 }
 0x80f   : > { %v3732_v21 = vmul.f32 %v3710_v2, %v9036_v27  ;;  %4693 = vmatpush.bf16.msrb.mxu3 %v5606_v60  ;;  %v5601_v60 = vld [vmem:[#allocation11 + $0x10] sm:$0xff] }
 0x810   : > { %v3844_v55 = vsel %vm3843_vm7, %v6181_v23, %v3840_v51  ;;  %v5621_v51 = vld [vmem:[#allocation11 + $0xb0] sm:$0xff] }
 0x811   : > { %v3748_v18 = vadd.f32 1e-05, %v3732_v21  ;;  %v3923_v31 = vmul.f32 %v3844_v55, %v8681_v1 }
 0x813   : > { %6182 = vrsqrt.f32 %v3748_v18  ;;  %vm3851_vm8 = vweird.f32 %v3748_v18 }
 0x816   : > { %v3712_v8 = vpop.xlane.xlu0 %3711 }
 0x817   : > { %v3733_v7 = vmul.f32 %v3712_v8, %v9036_v27  ;;  %v5630_v8 = vld [vmem:[#allocation11 + $0xf8] sm:$0xff] }
 0x818   : > { %4840 = vmatpush.bf16.msra.mxu2 %v5630_v8  ;;  %v5609_v8 = vld [vmem:[#allocation11 + $0x50] sm:$0xff] }
 0x819   : > { %v6183_v29 = vpop.eup %6182  ;;  %v3749_v15 = vadd.f32 1e-05, %v3733_v7  ;;  %v5614_v7 = vld [vmem:[#allocation11 + $0x78] sm:$0xff] }
 0x81a   : > { %v3846_v35 = vmul.f32 %v6183_v29, %v3748_v18  ;;  %vm3852_vm6 = vweird.f32 %v6183_v29  ;;  %4742 = vmatpush.bf16.msra.mxu0 %v5614_v7  ;;  %v5617_v7 = vld [vmem:[#allocation11 + $0x90] sm:$0xff] }
 0x81b   : > { %6184 = vrsqrt.f32 %v3749_v15  ;;  %vm3853_vm9 = vmor %vm3851_vm8, %vm3852_vm6  ;;  %vm3861_vm11 = vweird.f32 %v3749_v15 }
 0x81c   : > { %v3847_v28 = vmul.f32 %v6183_v29, %v3846_v35 }
 0x81e   : > { %v3848_v57 = vmul.f32 0.5, %v3847_v28  ;;  %v3714_v46 = vpop.xlane.xlu1 %3713  ;;  %v5613_v28 = vld [vmem:[#allocation11 + $0x70] sm:$0xff] }
 0x81f   : > { %v3734_v45 = vmul.f32 %v3714_v46, %v9036_v27  ;;  %4743 = vmatpush.bf16.msra.mxu0 %v5613_v28  ;;  %v5624_v28 = vld [vmem:[#allocation11 + $0xc8] sm:$0xff] }
 0x820   : > { %v3849_v62 = vsub.f32 1.5, %v3848_v57 }
 0x821   : > { %v6185_v5 = vpop.eup %6184  ;;  %v3750_v49 = vadd.f32 1e-05, %v3734_v45  ;;  %v5604_v45 = vld [vmem:[#allocation11 + $0x28] sm:$0xff] }
 0x822   : > { %v3850_v9 = vmul.f32 %v6183_v29, %v3849_v62  ;;  %v3856_v25 = vmul.f32 %v6185_v5, %v3749_v15  ;;  %vm3862_vm10 = vweird.f32 %v6185_v5  ;;  %v5628_v62 = vld [vmem:[#allocation11 + $0xe8] sm:$0xff] }
 0x823   : > { %6186 = vrsqrt.f32 %v3750_v49  ;;  %vm3863_vm13 = vmor %vm3861_vm11, %vm3862_vm10  ;;  %vm3871_vm14 = vweird.f32 %v3750_v49 }
 0x824   : > { %v3854_v48 = vsel %vm3853_vm9, %v6183_v29, %v3850_v9  ;;  %v3857_v59 = vmul.f32 %v6185_v5, %v3856_v25  ;;  %v5622_v29 = vld [vmem:[#allocation11 + $0xb8] sm:$0xff] }
 0x825   : > { %v3924_v40 = vmul.f32 %v3854_v48, %v8696_v43  ;;  %4791 = vmatpush.bf16.msra.mxu1 %v5622_v29 }
 0x826   : > { %v3858_v61 = vmul.f32 0.5, %v3857_v59  ;;  %v3716_v56 = vpop.xlane.xlu2 %3715 }
 0x827   : > { %v3935_v11 = vpack.c.bf16 %v3924_v40, %v3923_v31  ;;  %v3735_v21 = vmul.f32 %v3716_v56, %v9036_v27  ;;  %v5618_v56 = vld [vmem:[#allocation11 + $0x98] sm:$0xff] }
 0x828   : > { %v3859_v30 = vsub.f32 1.5, %v3858_v61 }
 0x829   : > { %v6187_v26 = vpop.eup %6186  ;;  %4169 = vmatmul.bf16.gmra.mxu3 %v3935_v11  ;;  %4218 = vmatmul.bf16.gmra.mxu0 %v3935_v11  ;;  %v3751_v18 = vadd.f32 1e-05, %v3735_v21 }
 0x82a   : > { %v3866_v0 = vmul.f32 %v6187_v26, %v3750_v49  ;;  %4267 = vmatmul.bf16.gmra.mxu1 %v3935_v11  ;;  %4316 = vmatmul.bf16.gmra.mxu2 %v3935_v11  ;;  %v3860_v50 = vmul.f32 %v6185_v5, %v3859_v30  ;;  %vm3872_vm12 = vweird.f32 %v6187_v26 }
 0x82b   : > { %vm3873_vm15 = vmor %vm3871_vm14, %vm3872_vm12  ;;  %6188 = vrsqrt.f32 %v3751_v18  ;;  %4792 = vmatpush.bf16.msra.mxu1 %v5621_v51  ;;  %vm3881_vm1 = vweird.f32 %v3751_v18  ;;  %v8767_v51 = vpop.f32.mrf.mxu0 }
 0x82c   : > { %v3867_v3 = vmul.f32 %v6187_v26, %v3866_v0  ;;  %v3864_v1 = vsel %vm3863_vm13, %v6185_v5, %v3860_v50  ;;  %v5612_v5 = vld [vmem:[#allocation11 + $0x68] sm:$0xff] }
 0x82d   : > { %v3925_v23 = vmul.f32 %v3864_v1, %v8703_v19  ;;  %v5605_v19 = vld [vmem:[#allocation11 + $0x30] sm:$0xff]  ;;  %4744 = vmatpush.bf16.msra.mxu0 %v5612_v5  ;;  %v5620_v1 = vld [vmem:[#allocation11 + $0xa8] sm:$0xff]  ;;  %v5607_v5 = vld [vmem:[#allocation11 + $0x40] sm:$0xff] }
 0x82e   : > { %v3868_v32 = vmul.f32 0.5, %v3867_v3  ;;  %4694 = vmatpush.bf16.msrb.mxu3 %v5605_v19  ;;  %v5608_v19 = vld [vmem:[#allocation11 + $0x48] sm:$0xff] }
 0x82f   : > { %4793 = vmatpush.bf16.msra.mxu1 %v5620_v1 }
 0x830   : > { %v3869_v36 = vsub.f32 1.5, %v3868_v32 }
 0x831   : > { %v6189_v16 = vpop.eup %6188 }
 0x832   : > { %v3870_v13 = vmul.f32 %v6187_v26, %v3869_v36  ;;  %v3876_v15 = vmul.f32 %v6189_v16, %v3751_v18  ;;  %4695 = vmatpush.bf16.msrb.mxu3 %v5604_v45  ;;  %vm3882_vm0 = vweird.f32 %v6189_v16  ;;  %v4248_v45 = vpop.f32.mrf.mxu1 }
 0x833   : > { %vm3883_vm3 = vmor %vm3881_vm1, %vm3882_vm0 }
 0x834   : > { %v3874_v43 = vsel %vm3873_vm15, %v6187_v26, %v3870_v13  ;;  %v3877_v46 = vmul.f32 %v6189_v16, %v3876_v15  ;;  %v5603_v13 = vld [vmem:[#allocation11 + $0x20] sm:$0xff]  ;;  %v5625_v15 = vld [vmem:[#allocation11 + $0xd0] sm:$0xff] }
 0x835   : > { %v3926_v52 = vmul.f32 %v3874_v43, %v8710_v39  ;;  %v5629_v39 = vld [vmem:[#allocation11 + $0xf0] sm:$0xff]  ;;  %v5627_v43 = vld [vmem:[#allocation11 + $0xe0] sm:$0xff] }
 0x836   : > { %4841 = vmatpush.bf16.msra.mxu2 %v5629_v39  ;;  %v3878_v49 = vmul.f32 0.5, %v3877_v46  ;;  %4696 = vmatpush.bf16.msrb.mxu3 %v5603_v13 }
 0x837   : > { %v3936_v2 = vpack.c.bf16 %v3926_v52, %v3925_v23  ;;  %v5611_v23 = vld [vmem:[#allocation11 + $0x60] sm:$0xff]  ;;  %v5610_v52 = vld [vmem:[#allocation11 + $0x58] sm:$0xff] }
 0x838   : > { %v3879_v9 = vsub.f32 1.5, %v3878_v49  ;;  %4745 = vmatpush.bf16.msra.mxu0 %v5611_v23  ;;  %v5615_v49 = vld [vmem:[#allocation11 + $0x80] sm:$0xff] }
 0x839   : > { %4174 = vmatmul.bf16.gmra.mxu3 %v3936_v2  ;;  %4223 = vmatmul.bf16.gmra.mxu0 %v3936_v2 }
 0x83a   : > { %4272 = vmatmul.bf16.gmra.mxu1 %v3936_v2  ;;  %4321 = vmatmul.bf16.gmra.mxu2 %v3936_v2  ;;  %v3880_v59 = vmul.f32 %v6189_v16, %v3879_v9  ;;  %v5626_v2 = vld [vmem:[#allocation11 + $0xd8] sm:$0xff] }
 0x83b   : > { %4842 = vmatpush.bf16.msra.mxu2 %v5628_v62  ;;  %v4297_v62 = vpop.f32.mrf.mxu2 }
 0x83c   : > { %v3884_v61 = vsel %vm3883_vm3, %v6189_v16, %v3880_v59  ;;  %4746 = vmatpush.bf16.msra.mxu0 %v5610_v52 }
 0x83d   : > { %v3927_v30 = vmul.f32 %v3884_v61, %v8718_v37  ;;  %v5619_v37 = vld [vmem:[#allocation11 + $0xa0] sm:$0xff] }
 0x83e   : > { %4794 = vmatpush.bf16.msra.mxu1 %v5619_v37 }
 0x83f   : > { %4843 = vmatpush.bf16.msra.mxu2 %v5627_v43 }
 0x840   : > { %4747 = vmatpush.bf16.msra.mxu0 %v5609_v8 }
 0x842   : > { %4795 = vmatpush.bf16.msra.mxu1 %v5618_v56 }
 0x843   : > { %4844 = vmatpush.bf16.msra.mxu2 %v5626_v2 }
 0x844   : > { %4748 = vmatpush.bf16.msra.mxu0 %v5608_v19 }
 0x846   : > { %4796 = vmatpush.bf16.msra.mxu1 %v5617_v7 }
 0x847   : > { %4845 = vmatpush.bf16.msra.mxu2 %v5625_v15 }
 0x848   : > { %4749 = vmatpush.bf16.msra.mxu0 %v5607_v5 }
 0x84a   : > { %v3718_v54 = vpop.xlane.xlu0 %3717 }
 0x84b   : > { %v3736_v35 = vmul.f32 %v3718_v54, %v9036_v27  ;;  %v5600_v54 = vld [vmem:[#allocation11 + $0x8] sm:$0xff]  ;;  %4846 = vmatpush.bf16.msra.mxu2 %v5624_v28 }
 0x84d   : > { %v3752_v57 = vadd.f32 1e-05, %v3736_v35  ;;  %v5616_v35 = vld [vmem:[#allocation11 + $0x88] sm:$0xff] }
 0x84e   : > { %4797 = vmatpush.bf16.msra.mxu1 %v5616_v35 }
 0x84f   : > { %6190 = vrsqrt.f32 %v3752_v57  ;;  %vm3891_vm4 = vweird.f32 %v3752_v57 }
 0x852   : > { %v3720_v50 = vpop.xlane.xlu1 %3719  ;;  %4798 = vmatpush.bf16.msra.mxu1 %v5615_v49 }
 0x853   : > { %v3737_v32 = vmul.f32 %v3720_v50, %v9036_v27 }
 0x855   : > { %v6191_v55 = vpop.eup %6190  ;;  %v8759_v36 = vadd.f32 1e-05, %v3737_v32 }
 0x856   : > { %v3886_v25 = vmul.f32 %v6191_v55, %v3752_v57  ;;  %vm3892_vm2 = vweird.f32 %v6191_v55  ;;  %v8769_v57 = vpop.f32.mrf.mxu3 }
 0x857   : > { %vm3893_vm5 = vmor %vm3891_vm4, %vm3892_vm2  ;;  %6192 = vrsqrt.f32 %v8759_v36  ;;  %vm3901_vm7 = vweird.f32 %v8759_v36 }
 0x858   : > { %v3887_v48 = vmul.f32 %v6191_v55, %v3886_v25 }
 0x85a   : > { %v3888_v31 = vmul.f32 0.5, %v3887_v48 }
 0x85c   : > { %v3889_v40 = vsub.f32 1.5, %v3888_v31  ;;  %v4201_v31 = vpop.f32.mrf.mxu0 }
 0x85d   : > { %v8762_v21 = vpop.eup %6192 }
 0x85e   : > { %v3890_v11 = vmul.f32 %v6191_v55, %v3889_v40  ;;  %v3896_v18 = vmul.f32 %v8762_v21, %v8759_v36  ;;  %v4152_v40 = vpop.f32.mrf.mxu3  ;;  %vm3902_vm6 = vweird.f32 %v8762_v21  ;;  %v3971_v36 = vld [vmem:[%s8952_s6] sm:$0xf] }
 0x85f   : > { %vm3903_vm9 = vmor %vm3901_vm7, %vm3902_vm6  ;;  %v8781_v2 = vperm.slane %v3971_v36, 1 }
 0x860   : > { %v3894_v26 = vsel %vm3893_vm5, %v6191_v55, %v3890_v11  ;;  %v3897_v46 = vmul.f32 %v8762_v21, %v3896_v18  ;;  %v5623_v55 = vld [vmem:[#allocation11 + $0xc0] sm:$0xff]  ;;  %v4250_v11 = vpop.f32.mrf.mxu1  ;;  %v8785_v18 = vperm.slane %v3971_v36, 2 }
 0x861   : > { %v3928_v0 = vmul.f32 %v3894_v26, %v8726_v53  ;;  %v5602_v53 = vld [vmem:[#allocation11 + $0x18] sm:$0xff]  ;;  %4847 = vmatpush.bf16.msra.mxu2 %v5623_v55  ;;  %v4299_v26 = vpop.f32.mrf.mxu2  ;;  %v4200_v19 = vadd.f32 %v8767_v51, %v8781_v2 }
 0x862   : > { %4697 = vmatpush.bf16.msrb.mxu3 %v5602_v53  ;;  %v3898_v9 = vmul.f32 0.5, %v3897_v46  ;;  %v4251_v15 = vadd.f32 %v4250_v11, %v8785_v18  ;;  %v4249_v35 = vadd.f32 %v4248_v45, %v8785_v18 }
 0x863   : > { %v3937_v3 = vpack.c.bf16 %v3928_v0, %v3927_v30  ;;  %v4338_v55 = vmax.f32 %v4200_v19, 0.0 }
 0x864   : > { %v3899_v48 = vsub.f32 1.5, %v3898_v9  ;;  %v4204_v1 = vpop.f32.mrf.mxu0  ;;  %v4343_v5 = vmax.f32 %v4251_v15, 0.0 }
 0x865   : > { %4179 = vmatmul.bf16.gmra.mxu3 %v3937_v3  ;;  %4228 = vmatmul.bf16.gmra.mxu0 %v3937_v3 }
 0x866   : > { %4277 = vmatmul.bf16.gmra.mxu1 %v3937_v3  ;;  %4326 = vmatmul.bf16.gmra.mxu2 %v3937_v3  ;;  %v3900_v30 = vmul.f32 %v8762_v21, %v3899_v48  ;;  %v4155_v13 = vpop.f32.mrf.mxu3 }
 0x867   : > { %4698 = vmatpush.bf16.msrb.mxu3 %v5601_v60 }
 0x868   : > { %v3904_v50 = vsel %vm3903_vm9, %v8762_v21, %v3900_v30  ;;  %v4253_v23 = vpop.f32.mrf.mxu1  ;;  %v8783_v21 = vperm.slane %v3971_v36, 0 }
 0x869   : > { %v4302_v37 = vpop.f32.mrf.mxu2  ;;  %v3929_v53 = vmul.f32 %v3904_v50, %v8732_v33 }
 0x86a   : > { %v4153_v8 = vadd.f32 %v4152_v40, %v8783_v21  ;;  %v4156_v50 = vadd.f32 %v4155_v13, %v8783_v21 }
 0x86b   : > { %4699 = vmatpush.bf16.msrb.mxu3 %v5600_v54 }
 0x86c   : > { %v4206_v33 = vpop.f32.mrf.mxu0 }
 0x86d   : > { %v4207_v45 = vadd.f32 %v4206_v33, %v8781_v2 }
 0x86e   : > { %v4157_v60 = vpop.f32.mrf.mxu3 }
 0x870   : > { %v4255_v7 = vpop.f32.mrf.mxu1 }
 0x871   : > { %v4256_v30 = vadd.f32 %v4255_v7, %v8785_v18  ;;  %v4345_v7 = vmax.f32 %v4156_v50, 0.0 }
 0x874   : > { %v4209_v51 = vpop.f32.mrf.mxu0 }
 0x876   : > { %v4160_v11 = vpop.f32.mrf.mxu3 }
 0x87c   : > { %v3722_v16 = vpop.xlane.xlu2 %3721 }
 0x87d   : > { %v3738_v29 = vmul.f32 %v3722_v16, %v9036_v27  ;;  %v5599_v27 = vld [vmem:[#allocation11] sm:$0xff]  ;;  %v8787_v16 = vperm.slane %v3971_v36, 3 }
 0x87e   : > { %4700 = vmatpush.bf16.msrb.mxu3 %v5599_v27  ;;  %v4341_v27 = vmax.f32 %v4153_v8, 0.0  ;;  %v4351_v8 = vmax.f32 %v4256_v30, 0.0 }
 0x87f   : > { %v3754_v39 = vadd.f32 1e-05, %v3738_v29  ;;  %v4304_v29 = vpop.f32.mrf.mxu2  ;;  %v4300_v54 = vadd.f32 %v4299_v26, %v8787_v16  ;;  %v4298_v28 = vadd.f32 %v4297_v62, %v8787_v16  ;;  %v4258_v26 = vpop.f32.mrf.mxu1  ;;  %v4158_v62 = vadd.f32 %v4157_v60, %v8783_v21 }
 0x881   : > { %6194 = vrsqrt.f32 %v3754_v39  ;;  %vm3911_vm10 = vweird.f32 %v3754_v39  ;;  %v4344_v49 = vmax.f32 %v4300_v54, 0.0  ;;  %v4340_v48 = vmax.f32 %v4298_v28, 0.0 }
 0x882   : > { %v4349_v36 = vmax.f32 %v4158_v62, 0.0 }
 0x884   : > { %v4405_v19 = vpack.c.bf16 %v4349_v36, %v4345_v7 }
 0x887   : > { %v6195_v25 = vpop.eup %6194 }
 0x888   : > { %v3906_v59 = vmul.f32 %v6195_v25, %v3754_v39  ;;  %vm3912_vm8 = vweird.f32 %v6195_v25  ;;  %v4151_v39 = vadd.f32 %v8769_v57, %v8783_v21  ;;  %v4307_v57 = vpop.f32.mrf.mxu2 }
 0x889   : > { %vm3913_vm11 = vmor %vm3911_vm10, %vm3912_vm8 }
 0x88a   : > { %v3907_v61 = vmul.f32 %v6195_v25, %v3906_v59  ;;  %v4337_v9 = vmax.f32 %v4151_v39, 0.0 }
 0x88c   : > { %v3908_v0 = vmul.f32 0.5, %v3907_v61  ;;  %v4404_v61 = vpack.c.bf16 %v4344_v49, %v4340_v48  ;;  %v4308_v48 = vadd.f32 %v4307_v57, %v8787_v16 }
 0x88e   : > { %v3909_v3 = vsub.f32 1.5, %v3908_v0  ;;  %v4305_v0 = vadd.f32 %v4304_v29, %v8787_v16 }
 0x890   : > { %v3910_v32 = vmul.f32 %v6195_v25, %v3909_v3  ;;  %v4205_v3 = vadd.f32 %v4204_v1, %v8781_v2  ;;  %v4309_v33 = vpop.f32.mrf.mxu2  ;;  %v4352_v60 = vmax.f32 %v4305_v0, 0.0 }
 0x891   : > { %v4310_v49 = vadd.f32 %v4309_v33, %v8787_v16 }
 0x892   : > { %v3914_v43 = vsel %vm3913_vm11, %v6195_v25, %v3910_v32  ;;  %v4339_v25 = vmax.f32 %v4249_v35, 0.0  ;;  %v4254_v32 = vadd.f32 %v4253_v23, %v8785_v18  ;;  %v4346_v15 = vmax.f32 %v4205_v3, 0.0 }
 0x893   : > { %v3930_v52 = vmul.f32 %v3914_v43, %v8741_v20  ;;  %v4202_v20 = vadd.f32 %v4201_v31, %v8781_v2  ;;  %v4401_v31 = vpack.c.bf16 %v4341_v27, %v4337_v9  ;;  %v4303_v43 = vadd.f32 %v4302_v37, %v8787_v16 }
 0x894   : > { %v4403_v40 = vpack.c.bf16 %v4343_v5, %v4339_v25  ;;  %v4347_v54 = vmax.f32 %v4254_v32, 0.0  ;;  %v4161_v9 = vadd.f32 %v4160_v11, %v8783_v21  ;;  %v4259_v25 = vadd.f32 %v4258_v26, %v8785_v18 }
 0x895   : > { %v3938_v56 = vpack.c.bf16 %v3930_v52, %v3929_v53  ;;  %v4342_v46 = vmax.f32 %v4202_v20, 0.0  ;;  %v4211_v53 = vpop.f32.mrf.mxu0  ;;  %v4162_v52 = vpop.f32.mrf.mxu3  ;;  %v4348_v29 = vmax.f32 %v4303_v43, 0.0  ;;  %v4356_v43 = vmax.f32 %v4308_v48, 0.0 }
 0x896   : > { %v4260_v20 = vpop.f32.mrf.mxu1  ;;  %v4407_v39 = vpack.c.bf16 %v4351_v8, %v4347_v54  ;;  %v4163_v27 = vadd.f32 %v4162_v52, %v8783_v21  ;;  %v4353_v0 = vmax.f32 %v4161_v9, 0.0  ;;  %v4355_v32 = vmax.f32 %v4259_v25, 0.0 }
 0x897   : > { %4184 = vmatmul.bf16.gmra.mxu3 %v3938_v56  ;;  %4233 = vmatmul.bf16.gmra.mxu0 %v3938_v56  ;;  %v4402_v59 = vpack.c.bf16 %v4342_v46, %v4338_v55  ;;  %v4408_v13 = vpack.c.bf16 %v4352_v60, %v4348_v29  ;;  %v4212_v46 = vadd.f32 %v4211_v53, %v8781_v2 }
 0x898   : > { %4282 = vmatmul.bf16.gmra.mxu1 %v3938_v56  ;;  %4331 = vmatmul.bf16.gmra.mxu2 %v3938_v56  ;;  %v4350_v56 = vmax.f32 %v4207_v45, 0.0  ;;  %v4312_v28 = vpop.f32.mrf.mxu2  ;;  %v4261_v5 = vadd.f32 %v4260_v20, %v8785_v18  ;;  %v4210_v55 = vadd.f32 %v4209_v51, %v8781_v2 }
 0x899   : > { %v4313_v29 = vadd.f32 %v4312_v28, %v8787_v16 }
 0x89a   : > { %v4406_v1 = vpack.c.bf16 %v4350_v56, %v4346_v15  ;;  %v4354_v30 = vmax.f32 %v4210_v55, 0.0 }
 0x89d   : > { %v4214_v23 = vpop.f32.mrf.mxu0  ;;  %v4165_v37 = vpop.f32.mrf.mxu3 }
 0x89e   : > { %v4263_v35 = vpop.f32.mrf.mxu1  ;;  %v4215_v15 = vadd.f32 %v4214_v23, %v8781_v2  ;;  %v4166_v7 = vadd.f32 %v4165_v37, %v8783_v21 }
 0x89f   : > { %v4264_v54 = vadd.f32 %v4263_v35, %v8785_v18 }
 0x8a0   : > { %v4314_v50 = vpop.f32.mrf.mxu2 }
 0x8a1   : > { %v4315_v60 = vadd.f32 %v4314_v50, %v8787_v16 }
 0x8a5   : > { %v4216_v45 = vpop.f32.mrf.mxu0  ;;  %v4167_v62 = vpop.f32.mrf.mxu3 }
 0x8a6   : > { %v4265_v3 = vpop.f32.mrf.mxu1  ;;  %v4217_v20 = vadd.f32 %v4216_v45, %v8781_v2  ;;  %v4168_v33 = vadd.f32 %v4167_v62, %v8783_v21 }
 0x8a7   : > { %4701 = vmatmul.bf16.vlgmr.msrb.gmra.mxu3 %v4401_v31  ;;  %4750 = vmatmul.bf16.vlgmr.msra.gmra.mxu0 %v4402_v59  ;;  %v4358_v59 = vmax.f32 %v4212_v46, 0.0  ;;  %v4357_v31 = vmax.f32 %v4163_v27, 0.0  ;;  %v4266_v8 = vadd.f32 %v4265_v3, %v8785_v18  ;;  %v4362_v46 = vmax.f32 %v4215_v15, 0.0 }
 0x8a8   : > { %4799 = vmatmul.bf16.vlgmr.msra.gmra.mxu1 %v4403_v40  ;;  %4848 = vmatmul.bf16.vlgmr.msra.gmra.mxu2 %v4404_v61  ;;  %v4359_v40 = vmax.f32 %v4261_v5, 0.0  ;;  %v4360_v61 = vmax.f32 %v4310_v49, 0.0  ;;  %v4361_v27 = vmax.f32 %v4166_v7, 0.0  ;;  %v4363_v5 = vmax.f32 %v4264_v54, 0.0 }
 0x8a9   : > { %v4409_v53 = vpack.c.bf16 %v4357_v31, %v4353_v0  ;;  %v4410_v51 = vpack.c.bf16 %v4358_v59, %v4354_v30  ;;  %v4364_v49 = vmax.f32 %v4313_v29, 0.0 }
 0x8aa   : > { %v4411_v52 = vpack.c.bf16 %v4359_v40, %v4355_v32  ;;  %v4412_v11 = vpack.c.bf16 %v4360_v61, %v4356_v43 }
 0x8ad   : > { %v4219_v26 = vpop.f32.mrf.mxu0  ;;  %v4170_v57 = vpop.f32.mrf.mxu3 }
 0x8ae   : > { %v4268_v56 = vpop.f32.mrf.mxu1  ;;  %v4317_v36 = vpop.f32.mrf.mxu2  ;;  %v4220_v30 = vadd.f32 %v4219_v26, %v8781_v2  ;;  %v4171_v0 = vadd.f32 %v4170_v57, %v8783_v21 }
 0x8af   : > { %v4269_v32 = vadd.f32 %v4268_v56, %v8785_v18  ;;  %v4318_v43 = vadd.f32 %v4317_v36, %v8787_v16 }
 0x8b5   : > { %v4221_v55 = vpop.f32.mrf.mxu0  ;;  %v4172_v9 = vpop.f32.mrf.mxu3 }
 0x8b6   : > { %v4270_v25 = vpop.f32.mrf.mxu1  ;;  %v4319_v48 = vpop.f32.mrf.mxu2  ;;  %v4222_v35 = vadd.f32 %v4221_v55, %v8781_v2  ;;  %v4173_v28 = vadd.f32 %v4172_v9, %v8783_v21 }
 0x8b7   : > { %4706 = vmatmul.bf16.gmra.mxu3 %v4405_v19  ;;  %4755 = vmatmul.bf16.gmra.mxu0 %v4406_v1  ;;  %v4366_v19 = vmax.f32 %v4217_v20, 0.0  ;;  %v4365_v1 = vmax.f32 %v4168_v33, 0.0  ;;  %v4271_v40 = vadd.f32 %v4270_v25, %v8785_v18  ;;  %v4320_v61 = vadd.f32 %v4319_v48, %v8787_v16 }
 0x8b8   : > { %4804 = vmatmul.bf16.gmra.mxu1 %v4407_v39  ;;  %4853 = vmatmul.bf16.gmra.mxu2 %v4408_v13  ;;  %v4367_v39 = vmax.f32 %v4266_v8, 0.0  ;;  %v4368_v13 = vmax.f32 %v4315_v60, 0.0  ;;  %v4370_v20 = vmax.f32 %v4220_v30, 0.0  ;;  %v4369_v33 = vmax.f32 %v4171_v0, 0.0 }
 0x8b9   : > { %v4413_v59 = vpack.c.bf16 %v4365_v1, %v4361_v27  ;;  %v4414_v23 = vpack.c.bf16 %v4366_v19, %v4362_v46  ;;  %v4371_v8 = vmax.f32 %v4269_v32, 0.0  ;;  %v4372_v60 = vmax.f32 %v4318_v43, 0.0 }
 0x8ba   : > { %v4415_v31 = vpack.c.bf16 %v4367_v39, %v4363_v5  ;;  %v4416_v37 = vpack.c.bf16 %v4368_v13, %v4364_v49 }
 0x8bd   : > { %v4224_v45 = vpop.f32.mrf.mxu0  ;;  %v4175_v62 = vpop.f32.mrf.mxu3 }
 0x8be   : > { %v4273_v3 = vpop.f32.mrf.mxu1  ;;  %v4322_v50 = vpop.f32.mrf.mxu2  ;;  %v4225_v46 = vadd.f32 %v4224_v45, %v8781_v2  ;;  %v4176_v27 = vadd.f32 %v4175_v62, %v8783_v21 }
 0x8bf   : > { %v4274_v5 = vadd.f32 %v4273_v3, %v8785_v18  ;;  %v4323_v49 = vadd.f32 %v4322_v50, %v8787_v16 }
 0x8c5   : > { %v4226_v57 = vpop.f32.mrf.mxu0  ;;  %v4177_v29 = vpop.f32.mrf.mxu3 }
 0x8c6   : > { %v4275_v56 = vpop.f32.mrf.mxu1  ;;  %v4324_v36 = vpop.f32.mrf.mxu2  ;;  %v4227_v19 = vadd.f32 %v4226_v57, %v8781_v2  ;;  %v4178_v1 = vadd.f32 %v4177_v29, %v8783_v21 }
 0x8c7   : > { %4711 = vmatmul.bf16.gmra.mxu3 %v4409_v53  ;;  %4760 = vmatmul.bf16.gmra.mxu0 %v4410_v51  ;;  %v4374_v53 = vmax.f32 %v4222_v35, 0.0  ;;  %v4373_v51 = vmax.f32 %v4173_v28, 0.0  ;;  %v4276_v39 = vadd.f32 %v4275_v56, %v8785_v18  ;;  %v4325_v13 = vadd.f32 %v4324_v36, %v8787_v16 }
 0x8c8   : > { %4809 = vmatmul.bf16.gmra.mxu1 %v4411_v52  ;;  %4858 = vmatmul.bf16.gmra.mxu2 %v4412_v11  ;;  %v4375_v52 = vmax.f32 %v4271_v40, 0.0  ;;  %v4376_v11 = vmax.f32 %v4320_v61, 0.0  ;;  %v4382_v25 = vmax.f32 %v4227_v19, 0.0  ;;  %v4381_v48 = vmax.f32 %v4178_v1, 0.0 }
 0x8c9   : > { %v4418_v15 = vpack.c.bf16 %v4374_v53, %v4370_v20  ;;  %v4417_v7 = vpack.c.bf16 %v4373_v51, %v4369_v33  ;;  %v4378_v35 = vmax.f32 %v4225_v46, 0.0  ;;  %v4377_v28 = vmax.f32 %v4176_v27, 0.0 }
 0x8ca   : > { %v4419_v54 = vpack.c.bf16 %v4375_v52, %v4371_v8  ;;  %v4420_v26 = vpack.c.bf16 %v4376_v11, %v4372_v60  ;;  %v4379_v40 = vmax.f32 %v4274_v5, 0.0  ;;  %v4380_v61 = vmax.f32 %v4323_v49, 0.0 }
 0x8cb   : > { %v4422_v30 = vpack.c.bf16 %v4382_v25, %v4378_v35  ;;  %v4421_v45 = vpack.c.bf16 %v4381_v48, %v4377_v28 }
 0x8d7   : > { %4716 = vmatmul.bf16.gmra.mxu3 %v4413_v59  ;;  %4765 = vmatmul.bf16.gmra.mxu0 %v4414_v23 }
 0x8d8   : > { %4814 = vmatmul.bf16.gmra.mxu1 %v4415_v31  ;;  %4863 = vmatmul.bf16.gmra.mxu2 %v4416_v37  ;;  %v4383_v31 = vmax.f32 %v4276_v39, 0.0  ;;  %v4384_v37 = vmax.f32 %v4325_v13, 0.0 }
 0x8da   : > { %v4423_v0 = vpack.c.bf16 %v4383_v31, %v4379_v40  ;;  %v4424_v62 = vpack.c.bf16 %v4384_v37, %v4380_v61 }
 0x8e2   : > { %v4229_v55 = vpop.f32.mrf.mxu0 }
 0x8e3   : > { %v4278_v59 = vpop.f32.mrf.mxu1  ;;  %v4230_v20 = vadd.f32 %v4229_v55, %v8781_v2 }
 0x8e4   : > { %v4279_v8 = vadd.f32 %v4278_v59, %v8785_v18 }
 0x8e5   : > { %v4386_v57 = vmax.f32 %v4230_v20, 0.0 }
 0x8e6   : > { %v4387_v56 = vmax.f32 %v4279_v8, 0.0 }
 0x8e7   : > { %4721 = vmatmul.bf16.gmra.mxu3 %v4417_v7  ;;  %4770 = vmatmul.bf16.gmra.mxu0 %v4418_v15 }
 0x8e8   : > { %4819 = vmatmul.bf16.gmra.mxu1 %v4419_v54  ;;  %4868 = vmatmul.bf16.gmra.mxu2 %v4420_v26  ;;  %v4180_v9 = vpop.f32.mrf.mxu3 }
 0x8e9   : > { %v4327_v23 = vpop.f32.mrf.mxu2  ;;  %v4181_v33 = vadd.f32 %v4180_v9, %v8783_v21 }
 0x8ea   : > { %v4231_v3 = vpop.f32.mrf.mxu0  ;;  %v4328_v60 = vadd.f32 %v4327_v23, %v8787_v16 }
 0x8eb   : > { %v4280_v32 = vpop.f32.mrf.mxu1  ;;  %v4232_v53 = vadd.f32 %v4231_v3, %v8781_v2  ;;  %v4385_v29 = vmax.f32 %v4181_v33, 0.0 }
 0x8ec   : > { %v4281_v52 = vadd.f32 %v4280_v32, %v8785_v18  ;;  %v4388_v36 = vmax.f32 %v4328_v60, 0.0 }
 0x8ed   : > { %v4390_v15 = vmax.f32 %v4232_v53, 0.0 }
 0x8ee   : > { %v4391_v54 = vmax.f32 %v4281_v52, 0.0 }
 0x8ef   : > { %v4426_v19 = vpack.c.bf16 %v4390_v15, %v4386_v57 }
 0x8f0   : > { %v4182_v50 = vpop.f32.mrf.mxu3  ;;  %v4427_v39 = vpack.c.bf16 %v4391_v54, %v4387_v56 }
 0x8f1   : > { %v4329_v43 = vpop.f32.mrf.mxu2  ;;  %v4183_v51 = vadd.f32 %v4182_v50, %v8783_v21 }
 0x8f2   : > { %v4330_v11 = vadd.f32 %v4329_v43, %v8787_v16 }
 0x8f3   : > { %v4389_v7 = vmax.f32 %v4183_v51, 0.0 }
 0x8f4   : > { %v4392_v26 = vmax.f32 %v4330_v11, 0.0  ;;  %v8858_v11 = vld [vmem:[%s8954_s8] ss:$0 sm:$0xff] }
 0x8f5   : > { %v4425_v1 = vpack.c.bf16 %v4389_v7, %v4385_v29 }
 0x8f6   : > { %v4428_v13 = vpack.c.bf16 %v4392_v26, %v4388_v36 }
 0x8f7   : > { %4726 = vmatmul.bf16.gmra.mxu3 %v4421_v45  ;;  %4775 = vmatmul.bf16.gmra.mxu0 %v4422_v30 }
 0x8f8   : > { %4824 = vmatmul.bf16.gmra.mxu1 %v4423_v0  ;;  %4873 = vmatmul.bf16.gmra.mxu2 %v4424_v62 }
 0x907   : > { %4731 = vmatmul.bf16.gmra.mxu3 %v4425_v1  ;;  %4780 = vmatmul.bf16.gmra.mxu0 %v4426_v19 }
 0x908   : > { %4829 = vmatmul.bf16.gmra.mxu1 %v4427_v39  ;;  %4878 = vmatmul.bf16.gmra.mxu2 %v4428_v13 }
 0x914   : > { %v4234_v46 = vpop.f32.mrf.mxu0 }
 0x915   : > { %v4283_v27 = vpop.f32.mrf.mxu1  ;;  %v4235_v49 = vadd.f32 %v4234_v46, %v8781_v2 }
 0x916   : > { %v4284_v9 = vadd.f32 %v4283_v27, %v8785_v18 }
 0x917   : > { %v4394_v31 = vmax.f32 %v4235_v49, 0.0 }
 0x918   : > { %v4395_v35 = vmax.f32 %v4284_v9, 0.0 }
 0x91a   : > { %v4185_v5 = vpop.f32.mrf.mxu3 }
 0x91b   : > { %v4332_v55 = vpop.f32.mrf.mxu2  ;;  %v4186_v40 = vadd.f32 %v4185_v5, %v8783_v21 }
 0x91c   : > { %v4236_v25 = vpop.f32.mrf.mxu0  ;;  %v4333_v30 = vadd.f32 %v4332_v55, %v8787_v16 }
 0x91d   : > { %v4237_v48 = vadd.f32 %v4236_v25, %v8781_v2  ;;  %v4285_v59 = vpop.f32.mrf.mxu1 }
 0x91e   : > { %v4286_v23 = vadd.f32 %v4285_v59, %v8785_v18  ;;  %v4393_v18 = vmax.f32 %v4186_v40, 0.0  ;;  %v4396_v53 = vmax.f32 %v4333_v30, 0.0 }
 0x91f   : > { %v4398_v37 = vmax.f32 %v4237_v48, 0.0 }
 0x920   : > { %v4399_v28 = vmax.f32 %v4286_v23, 0.0 }
 0x921   : > { %v4430_v61 = vpack.c.bf16 %v4398_v37, %v4394_v31 }
 0x922   : > { %v4431_v45 = vpack.c.bf16 %v4399_v28, %v4395_v35  ;;  %v4187_v0 = vpop.f32.mrf.mxu3 }
 0x923   : > { %v4188_v62 = vadd.f32 %v4187_v0, %v8783_v21  ;;  %v4334_v3 = vpop.f32.mrf.mxu2  ;;  %4785 = vmatmul.bf16.gmra.mxu0 %v4430_v61 }
 0x924   : > { %v4335_v2 = vadd.f32 %v4334_v3, %v8787_v16  ;;  %4834 = vmatmul.bf16.gmra.mxu1 %v4431_v45  ;;  %v4751_v50 = vpop.f32.mrf.mxu0 }
 0x925   : > { %v4397_v32 = vmax.f32 %v4188_v62, 0.0  ;;  %v4800_v43 = vpop.f32.mrf.mxu1 }
 0x926   : > { %v4400_v51 = vmax.f32 %v4335_v2, 0.0 }
 0x927   : > { %v4429_v52 = vpack.c.bf16 %v4397_v32, %v4393_v18 }
 0x928   : > { %v4432_v20 = vpack.c.bf16 %v4400_v51, %v4396_v53 }
 0x929   : > { %4736 = vmatmul.bf16.gmra.mxu3 %v4429_v52 }
 0x92a   : > { %4883 = vmatmul.bf16.gmra.mxu2 %v4432_v20  ;;  %v4702_v21 = vpop.f32.mrf.mxu3 }
 0x92b   : > { %v4703_v16 = vadd.f32 %v8858_v11, %v4702_v21  ;;  %v4849_v33 = vpop.f32.mrf.mxu2 }
 0x92c   : > { %v4753_v8 = vpop.f32.mrf.mxu0 }
 0x92d   : > { %v4752_v60 = vadd.f32 %v4751_v50, %v4703_v16  ;;  %v4802_v15 = vpop.f32.mrf.mxu1 }
 0x92f   : > { %v4801_v7 = vadd.f32 %v4800_v43, %v4752_v60 }
 0x931   : > { %v4850_v54 = vadd.f32 %v4849_v33, %v4801_v7 }
 0x932   : > { %v4704_v26 = vpop.f32.mrf.mxu3 }
 0x933   : > { %v4889_v57 = vadd.f32 %v4850_v54, %v8532_v41  ;;  %v4705_v29 = vadd.f32 %v8858_v11, %v4704_v26  ;;  %v4851_v56 = vpop.f32.mrf.mxu2 }
 0x934   : > { %v4756_v36 = vpop.f32.mrf.mxu0 }
 0x935   : > { %4905 = vst [vmem:[%s8865_s22] sm:$0xff] %v4889_v57  ;;  %v4754_v19 = vadd.f32 %v4753_v8, %v4705_v29  ;;  %v4805_v1 = vpop.f32.mrf.mxu1 }
 0x937   : > { %v4803_v39 = vadd.f32 %v4802_v15, %v4754_v19 }
 0x939   : > { %v4852_v13 = vadd.f32 %v4851_v56, %v4803_v39 }
 0x93a   : > { %v4707_v46 = vpop.f32.mrf.mxu3 }
 0x93b   : > { %v4890_v27 = vadd.f32 %v4852_v13, %v8538_v42  ;;  %v4708_v41 = vadd.f32 %v8858_v11, %v4707_v46  ;;  %v4854_v5 = vpop.f32.mrf.mxu2 }
 0x93c   : > { %v4758_v49 = vpop.f32.mrf.mxu0 }
 0x93d   : > { %4906 = vst [vmem:[%s8865_s22 + $0x8] sm:$0xff] %v4890_v27  ;;  %v4757_v55 = vadd.f32 %v4756_v36, %v4708_v41  ;;  %v4807_v9 = vpop.f32.mrf.mxu1 }
 0x93f   : > { %v4806_v25 = vadd.f32 %v4805_v1, %v4757_v55 }
 0x941   : > { %v4855_v48 = vadd.f32 %v4854_v5, %v4806_v25 }
 0x942   : > { %v4709_v59 = vpop.f32.mrf.mxu3 }
 0x943   : > { %v4891_v23 = vadd.f32 %v4855_v48, %v8550_v44  ;;  %v4710_v31 = vadd.f32 %v8858_v11, %v4709_v59  ;;  %v4856_v37 = vpop.f32.mrf.mxu2 }
 0x944   : > { %v4761_v35 = vpop.f32.mrf.mxu0 }
 0x945   : > { %4907 = vst [vmem:[%s8865_s22 + $0x10] sm:$0xff] %v4891_v23  ;;  %v4759_v28 = vadd.f32 %v4758_v49, %v4710_v31  ;;  %v4810_v42 = vpop.f32.mrf.mxu1 }
 0x947   : > { %v4808_v40 = vadd.f32 %v4807_v9, %v4759_v28 }
 0x949   : > { %v4857_v61 = vadd.f32 %v4856_v37, %v4808_v40 }
 0x94a   : > { %v4712_v30 = vpop.f32.mrf.mxu3 }
 0x94b   : > { %v4892_v45 = vadd.f32 %v4857_v61, %v8559_v58  ;;  %v4713_v0 = vadd.f32 %v8858_v11, %v4712_v30  ;;  %v4859_v62 = vpop.f32.mrf.mxu2 }
 0x94c   : > { %v4763_v3 = vpop.f32.mrf.mxu0 }
 0x94d   : > { %4908 = vst [vmem:[%s8865_s22 + $0x18] sm:$0xff] %v4892_v45  ;;  %v4762_v2 = vadd.f32 %v4761_v35, %v4713_v0  ;;  %v4812_v44 = vpop.f32.mrf.mxu1 }
 0x94f   : > { %v4811_v50 = vadd.f32 %v4810_v42, %v4762_v2 }
 0x951   : > { %v4860_v18 = vadd.f32 %v4859_v62, %v4811_v50 }
 0x952   : > { %v4714_v32 = vpop.f32.mrf.mxu3 }
 0x953   : > { %v4893_v43 = vadd.f32 %v4860_v18, %v8568_v47  ;;  %v4715_v53 = vadd.f32 %v8858_v11, %v4714_v32  ;;  %v4861_v51 = vpop.f32.mrf.mxu2 }
 0x954   : > { %v4766_v52 = vpop.f32.mrf.mxu0 }
 0x955   : > { %4909 = vst [vmem:[%s8865_s22 + $0x20] sm:$0xff] %v4893_v43  ;;  %v4764_v20 = vadd.f32 %v4763_v3, %v4715_v53  ;;  %v4815_v58 = vpop.f32.mrf.mxu1 }
 0x957   : > { %v4813_v21 = vadd.f32 %v4812_v44, %v4764_v20 }
 0x959   : > { %v4862_v16 = vadd.f32 %v4861_v51, %v4813_v21 }
 0x95a   : > { %v4717_v33 = vpop.f32.mrf.mxu3 }
 0x95b   : > { %v4894_v8 = vadd.f32 %v4862_v16, %v8574_v63  ;;  %v4718_v60 = vadd.f32 %v8858_v11, %v4717_v33  ;;  %v4864_v15 = vpop.f32.mrf.mxu2 }
 0x95c   : > { %v4768_v7 = vpop.f32.mrf.mxu0 }
 0x95d   : > { %4910 = vst [vmem:[%s8865_s22 + $0x28] sm:$0xff] %v4894_v8  ;;  %v4767_v54 = vadd.f32 %v4766_v52, %v4718_v60  ;;  %v4817_v47 = vpop.f32.mrf.mxu1 }
 0x95f   : > { %v4816_v26 = vadd.f32 %v4815_v58, %v4767_v54 }
 0x961   : > { %v4865_v57 = vadd.f32 %v4864_v15, %v4816_v26 }
 0x962   : > { %v4719_v29 = vpop.f32.mrf.mxu3 }
 0x963   : > { %v4895_v56 = vadd.f32 %v4865_v57, %v8586_v14  ;;  %v4720_v36 = vadd.f32 %v8858_v11, %v4719_v29  ;;  %v4866_v19 = vpop.f32.mrf.mxu2 }
 0x964   : > { %v4771_v1 = vpop.f32.mrf.mxu0 }
 0x965   : > { %4911 = vst [vmem:[%s8865_s22 + $0x30] sm:$0xff] %v4895_v56  ;;  %v4769_v39 = vadd.f32 %v4768_v7, %v4720_v36  ;;  %v4820_v63 = vpop.f32.mrf.mxu1 }
 0x967   : > { %v4818_v13 = vadd.f32 %v4817_v47, %v4769_v39 }
 0x969   : > { %v4867_v46 = vadd.f32 %v4866_v19, %v4818_v13 }
 0x96a   : > { %v4722_v27 = vpop.f32.mrf.mxu3 }
 0x96b   : > { %v4896_v41 = vadd.f32 %v4867_v46, %v8601_v12  ;;  %v4723_v5 = vadd.f32 %v8858_v11, %v4722_v27  ;;  %v4869_v49 = vpop.f32.mrf.mxu2 }
 0x96c   : > { %v4773_v55 = vpop.f32.mrf.mxu0 }
 0x96d   : > { %4912 = vst [vmem:[%s8865_s22 + $0x38] sm:$0xff] %v4896_v41  ;;  %v4772_v9 = vadd.f32 %v4771_v1, %v4723_v5  ;;  %v4822_v14 = vpop.f32.mrf.mxu1 }
 0x96f   : > { %v4821_v25 = vadd.f32 %v4820_v63, %v4772_v9 }
 0x971   : > { %v4870_v48 = vadd.f32 %v4869_v49, %v4821_v25 }
 0x972   : > { %v4724_v59 = vpop.f32.mrf.mxu3 }
 0x973   : > { %v4897_v23 = vadd.f32 %v4870_v48, %v8608_v17  ;;  %v4725_v31 = vadd.f32 %v8858_v11, %v4724_v59  ;;  %v4871_v37 = vpop.f32.mrf.mxu2 }
 0x974   : > { %v4776_v28 = vpop.f32.mrf.mxu0 }
 0x975   : > { %4913 = vst [vmem:[%s8865_s22 + $0x40] sm:$0xff] %v4897_v23  ;;  %v4774_v35 = vadd.f32 %v4773_v55, %v4725_v31  ;;  %v4825_v42 = vpop.f32.mrf.mxu1 }
 0x977   : > { %v4823_v12 = vadd.f32 %v4822_v14, %v4774_v35 }
 0x979   : > { %v4872_v40 = vadd.f32 %v4871_v37, %v4823_v12 }
 0x97a   : > { %v4727_v61 = vpop.f32.mrf.mxu3 }
 0x97b   : > { %v4898_v30 = vadd.f32 %v4872_v40, %v8623_v10  ;;  %v4728_v45 = vadd.f32 %v8858_v11, %v4727_v61  ;;  %v4874_v0 = vpop.f32.mrf.mxu2 }
 0x97c   : > { %v4778_v17 = vpop.f32.mrf.mxu0 }
 0x97d   : > { %4914 = vst [vmem:[%s8865_s22 + $0x48] sm:$0xff] %v4898_v30  ;;  %v4777_v62 = vadd.f32 %v4776_v28, %v4728_v45  ;;  %v4827_v44 = vpop.f32.mrf.mxu1 }
 0x97f   : > { %v4826_v3 = vadd.f32 %v4825_v42, %v4777_v62 }
 0x981   : > { %v4875_v2 = vadd.f32 %v4874_v0, %v4826_v3 }
 0x982   : > { %v4729_v50 = vpop.f32.mrf.mxu3 }
 0x983   : > { %v4899_v18 = vadd.f32 %v4875_v2, %v8634_v34  ;;  %v4730_v32 = vadd.f32 %v8858_v11, %v4729_v50  ;;  %v4876_v43 = vpop.f32.mrf.mxu2 }
 0x984   : > { %v4781_v52 = vpop.f32.mrf.mxu0 }
 0x985   : > { %4915 = vst [vmem:[%s8865_s22 + $0x50] sm:$0xff] %v4899_v18  ;;  %v4779_v53 = vadd.f32 %v4778_v17, %v4730_v32  ;;  %v4830_v16 = vpop.f32.mrf.mxu1 }
 0x987   : > { %v4828_v51 = vadd.f32 %v4827_v44, %v4779_v53 }
 0x989   : > { %v4877_v10 = vadd.f32 %v4876_v43, %v4828_v51 }
 0x98a   : > { %v4732_v20 = vpop.f32.mrf.mxu3 }
 0x98b   : > { %v4900_v58 = vadd.f32 %v4877_v10, %v8645_v38  ;;  %v4733_v21 = vadd.f32 %v8858_v11, %v4732_v20  ;;  %v4879_v8 = vpop.f32.mrf.mxu2 }
 0x98c   : > { %v4783_v47 = vpop.f32.mrf.mxu0 }
 0x98d   : > { %4916 = vst [vmem:[%s8865_s22 + $0x58] sm:$0xff] %v4900_v58  ;;  %v4782_v33 = vadd.f32 %v4781_v52, %v4733_v21  ;;  %v4832_v57 = vpop.f32.mrf.mxu1 }
 0x98f   : > { %v4831_v34 = vadd.f32 %v4830_v16, %v4782_v33 }
 0x991   : > { %v4880_v60 = vadd.f32 %v4879_v8, %v4831_v34 }
 0x992   : > { %v4734_v15 = vpop.f32.mrf.mxu3 }
 0x993   : > { %v4901_v7 = vadd.f32 %v4880_v60, %v8652_v4  ;;  %v4735_v54 = vadd.f32 %v8858_v11, %v4734_v15  ;;  %v4881_v29 = vpop.f32.mrf.mxu2 }
 0x995   : > { %4917 = vst [vmem:[%s8865_s22 + $0x60] sm:$0xff] %v4901_v7  ;;  %v4784_v26 = vadd.f32 %v4783_v47, %v4735_v54 }
 0x997   : > { %v4833_v38 = vadd.f32 %v4832_v57, %v4784_v26 }
 0x999   : > { %v4882_v56 = vadd.f32 %v4881_v29, %v4833_v38 }
 0x99b   : > { %v4902_v36 = vadd.f32 %v4882_v56, %v8663_v24 }
 0x99d   : > { %4918 = vst [vmem:[%s8865_s22 + $0x68] sm:$0xff] %v4902_v36 }
 0x9a0   : > { %v4786_v19 = vpop.f32.mrf.mxu0 }
 0x9a1   : > { %v4835_v4 = vpop.f32.mrf.mxu1 }
 0x9a8   : > { %v4788_v49 = vpop.f32.mrf.mxu0 }
 0x9a9   : > { %v4837_v9 = vpop.f32.mrf.mxu1 }
 0x9ac   : > { %v4737_v1 = vpop.f32.mrf.mxu3 }
 0x9ad   : > { %v4738_v39 = vadd.f32 %v8858_v11, %v4737_v1  ;;  %v4884_v13 = vpop.f32.mrf.mxu2 }
 0x9af   : > { %v4787_v63 = vadd.f32 %v4786_v19, %v4738_v39 }
 0x9b1   : > { %v4836_v46 = vadd.f32 %v4835_v4, %v4787_v63 }
 0x9b3   : > { %v4885_v27 = vadd.f32 %v4884_v13, %v4836_v46 }
 0x9b4   : > { %v4739_v41 = vpop.f32.mrf.mxu3 }
 0x9b5   : > { %v4903_v5 = vadd.f32 %v4885_v27, %v8668_v6  ;;  %v4740_v24 = vadd.f32 %v8858_v11, %v4739_v41  ;;  %v4886_v25 = vpop.f32.mrf.mxu2 }
 0x9b7   : > { %4919 = vst [vmem:[%s8865_s22 + $0x70] sm:$0xff] %v4903_v5  ;;  %v4789_v55 = vadd.f32 %v4788_v49, %v4740_v24 }
 0x9b9   : > { %v4838_v14 = vadd.f32 %v4837_v9, %v4789_v55 }
 0x9bb   : > { %v4887_v48 = vadd.f32 %v4886_v25, %v4838_v14 }
 0x9bd   : > { %v4904_v6 = vadd.f32 %v4887_v48, %v8687_v22 }
 0x9bf   : > { %4920 = vst [vmem:[%s8865_s22 + $0x78] sm:$0xff] %v4904_v6 }
 0x9c0   : > { %6419 = shalt.err (!%p6416_p9)
}
 0x9c1   : > { %s6489_s24 = smov 128   ;;  %s6490_s13 = smov 8  }
 0x9c2   : > { %5663 = dma.vmem_to_hbm [thread:$0]  (%p6631_p0), %s4936_s1, 2048, %s4938_s2, %s4922_s16, %s6489_s24, %s6489_s24, %s6490_s13  }
 0x9c3 PF: > { %s4952_s22 = sand.u32 1, %s6458_s30   ;;  %p9037_p10 = scmp.ge.s32.totalorder %s6470_s12, 2 }
 0x9c4   : > { %s4953_s29 = scalar_lea.sflag [#allocation4], %s4952_s22 }
 0x9c5   : > { %p5686_p11 = pnand %p9037_p10, %p6637_p6 }
 0x9c7   : > { %p5687_p12 = pneg %p5686_p11 }
 0x9c9   : > { %6453 = dma.done.wait (%p5687_p12), %s4953_s29, 2048  }
 0x9ca   : > { %6455 = vsyncadd (%p5687_p12), %s4953_s29, 4294965248  ;;  %p25_p2 = scmp.ge.s32.totalorder %s6607_s21, 4   ;;  %s9038_s30 = smov %s6462_s10 }
 0x9cb   : > { %s9039_s10 = smov %s6466_s11  ;;  %s9040_s11 = smov %s6619_s19 }
 0x9cc   : > { %s9041_s12 = smov %s6607_s21  ;;  %27 = sbr.rel (!%p25_p2) target bundleno = 13 (0xd), region = 121 }
 0x9d1   :  { %4959 = vsyncpa [#allocation3], 1 }
 0x9d2   :  { %4961 = vsyncpa [#allocation3 + $0x1], 1 }
 0x9d3   :  { %4962 = vsyncpa [#allocation6], 1 }
 0x9d4   :  { %4963 = vsyncpa [#allocation9], 1 }
 0x9d5   :  { %4964 = vsyncpa [#allocation12], 1 }
 0x9d6   :  { %4965 = vsyncpa [#allocation4], 1 }
 0x9d7   :  { %4967 = vsyncpa [#allocation4 + $0x1], 1 }

</bundles_post_ra>
